<compile_context>
chip_gen: v7x
topology: tpu7x:2x2x1
jax: 0.10.0
libtpu: 0.0.40
codegen_flags: <defaults>
</compile_context>

<pallas_src>
import functools

import jax
import jax.numpy as jnp
from jax.experimental import pallas as pl
from jax.experimental.pallas import tpu as pltpu


def _round_up(x, m):
    return (x + m - 1) // m * m


def _ssd_loss_kernel(loc_p_ref, loc_t_ref, cls_p_ref, cls_t_ref, out_ref):
    # Blocks (one full image per grid step):
    #   loc_p_ref / loc_t_ref : (1, 4, S, 128)  f32/bf16
    #   cls_p_ref             : (1, C, S, 128)  f32/bf16
    #   cls_t_ref             : (1, S, 128)     int32  (-1 = ignore / pad)
    #   out_ref               : (1, 1, 128)     f32    lanes [loc, cls, npos, ..0]
    cls_t = cls_t_ref[...]                                # (1, S, 128)
    pos = cls_t > 0
    pos_f = pos.astype(jnp.float32)

    # ---- smooth-L1 (beta=1) over positive anchors --------------------------
    d = loc_p_ref[...].astype(jnp.float32) - loc_t_ref[...].astype(jnp.float32)
    ad = jnp.abs(d)
    sl1 = jnp.where(ad < 1.0, 0.5 * d * d, ad - 0.5)      # (1, 4, S, 128)
    loc_sum = jnp.sum(sl1 * pos_f[:, None, :, :])

    # ---- per-anchor cross entropy (classes on the major axis) --------------
    logits = cls_p_ref[...].astype(jnp.float32)           # (1, C, S, 128)
    num_classes = logits.shape[1]
    m = jnp.max(logits, axis=1)                           # (1, S, 128)
    lse = jnp.log(jnp.sum(jnp.exp(logits - m[:, None]), axis=1)) + m
    tgt = jnp.clip(cls_t, 0, num_classes - 1)
    cls_iota = jax.lax.broadcasted_iota(jnp.int32, (1, num_classes, 1, 1), 1)
    picked = jnp.sum(jnp.where(cls_iota == tgt[:, None], logits, 0.0), axis=1)
    ce = lse - picked                                      # (1, S, 128)
    ce = jnp.where(cls_t < 0, 0.0, ce)                     # ignored / pad -> 0

    pos_ce_sum = jnp.sum(jnp.where(pos, ce, 0.0))
    npos_i = jnp.sum(pos.astype(jnp.int32))
    npos_f = jnp.sum(pos_f)
    k_i = 3 * npos_i                   # number of hardest negatives to keep
    k_f = 3.0 * npos_f                 # same count as f32 (exact below 2^24)

    # ---- hard-negative mining: sum of the k_i largest negative-CE values ---
    # CE of true negatives only; clamp >= 0 so the f32 bit pattern is a
    # monotone int32 key for the radix select (keep the clamp!).
    neg_ce = jnp.maximum(jnp.where(cls_t == 0, ce, 0.0), 0.0)
    vbits = pltpu.bitcast(neg_ce, jnp.int32)               # sign bit always 0

    def count_ge(cand):
        return jnp.sum((vbits >= cand).astype(jnp.int32))

    # Bit 30 handled alone so every candidate keeps the sign bit clear
    # (signed int32 compare == unsigned compare for our keys).
    top = jnp.int32(1 << 30)
    prefix0 = jnp.where(count_ge(top) >= k_i, top, jnp.int32(0))

    # 15 radix-4 digits covering bits 29..0; the three candidate counts per
    # step are independent and pipeline on the VPU, only the select is serial.
    def radix4_step(i, prefix):
        shift = 28 - 2 * i
        c1 = prefix | jnp.left_shift(jnp.int32(1), shift)
        c2 = prefix | jnp.left_shift(jnp.int32(2), shift)
        c3 = prefix | jnp.left_shift(jnp.int32(3), shift)
        n1 = count_ge(c1)
        n2 = count_ge(c2)
        n3 = count_ge(c3)
        return jnp.where(n3 >= k_i, c3,
               jnp.where(n2 >= k_i, c2,
               jnp.where(n1 >= k_i, c1, prefix)))

    # prefix ends as the bit pattern of the k-th largest value (0 if k exceeds
    # the number of non-zero negatives -> keep all negatives).
    prefix = jax.lax.fori_loop(0, 15, radix4_step, prefix0, unroll=True)

    vals = pltpu.bitcast(vbits, jnp.float32)                # no-op bitcast back
    gt = vbits > prefix
    sum_gt = jnp.sum(jnp.where(gt, vals, 0.0))
    cnt_gt_f = jnp.sum(gt.astype(jnp.float32))
    thresh = jnp.max(jnp.where(vbits == prefix, vals, 0.0))  # k-th value (f32)
    n_tie_f = jnp.maximum(k_f - cnt_gt_f, 0.0)
    topk_sum = sum_gt + n_tie_f * thresh
    neg_ce_sum = jnp.where(k_i > 0, topk_sum, 0.0)

    cls_sum = pos_ce_sum + neg_ce_sum

    lane = jax.lax.broadcasted_iota(jnp.int32, (1, 1, 128), 2)
    out_ref[...] = (jnp.where(lane == 0, loc_sum, 0.0)
                    + jnp.where(lane == 1, cls_sum, 0.0)
                    + jnp.where(lane == 2, npos_f, 0.0))


@functools.partial(jax.jit, static_argnames=("num_classes",))
def ssd_loss_pallas(loc_preds, loc_targets, cls_preds, cls_targets, *,
                    num_classes):
    """Returns [loc_loss, cls_loss, num_pos, loss] (sums / final divide as in torch)."""
    N, A, _ = loc_preds.shape
    C = cls_preds.shape[-1]
    assert C == num_classes

    # Pad anchors to a multiple of 8*128 so the (S, 128) minor dims of every
    # block map to full, dense vregs.  Full row per grid step:
    #   f32 bytes/row = (4+4+C+1) * 4 * A_pad  ~= 1.1 MB for A=8732, C=21.
    a_pad = _round_up(A, 8 * 128)
    S = a_pad // 128
    pad = a_pad - A

    # Wrapper-side layout plumbing: anchors -> (sublane, lane) minor dims; pad
    # with "ignore" labels so padded anchors contribute nothing.
    loc_p = jnp.transpose(loc_preds, (0, 2, 1))            # [N, 4, A]
    loc_t = jnp.transpose(loc_targets, (0, 2, 1))
    cls_p = jnp.transpose(cls_preds, (0, 2, 1))            # [N, C, A]
    cls_t = cls_targets.astype(jnp.int32)                  # [N, A]
    if pad:
        loc_p = jnp.pad(loc_p, ((0, 0), (0, 0), (0, pad)))
        loc_t = jnp.pad(loc_t, ((0, 0), (0, 0), (0, pad)))
        cls_p = jnp.pad(cls_p, ((0, 0), (0, 0), (0, pad)))
        cls_t = jnp.pad(cls_t, ((0, 0), (0, pad)), constant_values=-1)
    loc_p = loc_p.reshape(N, 4, S, 128)
    loc_t = loc_t.reshape(N, 4, S, 128)
    cls_p = cls_p.reshape(N, C, S, 128)
    cls_t = cls_t.reshape(N, S, 128)

    out = pl.pallas_call(
        _ssd_loss_kernel,
        out_shape=jax.ShapeDtypeStruct((N, 1, 128), jnp.float32),
        grid_spec=pltpu.PrefetchScalarGridSpec(
            num_scalar_prefetch=0,
            grid=(N,),
            in_specs=[
                pl.BlockSpec((1, 4, S, 128), lambda b: (b, 0, 0, 0)),
                pl.BlockSpec((1, 4, S, 128), lambda b: (b, 0, 0, 0)),
                pl.BlockSpec((1, C, S, 128), lambda b: (b, 0, 0, 0)),
                pl.BlockSpec((1, S, 128), lambda b: (b, 0, 0)),
            ],
            out_specs=pl.BlockSpec((1, 1, 128), lambda b: (b, 0, 0)),
        ),
        compiler_params=pltpu.CompilerParams(
            dimension_semantics=("parallel",),
            vmem_limit_bytes=32 * 1024 * 1024,
        ),
    )(loc_p, loc_t, cls_p, cls_t)

    loc_loss = jnp.sum(out[:, 0, 0])
    cls_loss = jnp.sum(out[:, 0, 1])
    num_pos = jnp.sum(out[:, 0, 2])
    # Matches the module: no guard, so num_pos == 0 gives inf/nan like torch.
    loss = (loc_loss + cls_loss) / num_pos
    return jnp.stack([loc_loss, cls_loss, num_pos, loss])


def ssd_loss_reference(loc_preds, loc_targets, cls_preds, cls_targets, num_classes):
    """Pure-JAX mirror of the PyTorch forward, for verification."""
    pos = cls_targets > 0
    num_pos = jnp.sum(pos).astype(jnp.float32)
    d = loc_preds - loc_targets
    ad = jnp.abs(d)
    sl1 = jnp.where(ad < 1.0, 0.5 * d * d, ad - 0.5)
    loc_loss = jnp.sum(sl1 * pos[..., None].astype(jnp.float32))

    logits = cls_preds.reshape(-1, num_classes)
    tgt = jnp.clip(cls_targets.reshape(-1), 0, num_classes - 1)
    ce = jax.nn.logsumexp(logits, axis=-1) - jnp.take_along_axis(
        logits, tgt[:, None], axis=1)[:, 0]
    ce = ce.reshape(cls_targets.shape)
    ce = jnp.where(cls_targets < 0, 0.0, ce)

    v = ce * (pos.astype(jnp.float32) - 1.0)
    idx = jnp.argsort(v, axis=1)
    rank = jnp.argsort(idx, axis=1)
    num_neg = 3 * jnp.sum(pos.astype(jnp.int32), axis=1)
    neg = rank < num_neg[:, None]
    cls_loss = jnp.sum(jnp.where(pos | neg, ce, 0.0))
    return loc_loss, cls_loss, (loc_loss + cls_loss) / num_pos


if __name__ == "__main__":
    # Small shapes consistent with the module's forward signature; A=200 gets
    # padded to 1024 anchors (S=8), exercising the pad/ignore path.
    N, A, C = 2, 200, 8  # batch, anchors, classes

    key = jax.random.PRNGKey(0)
    k1, k2, k3, k4 = jax.random.split(key, 4)
    loc_preds = jax.random.normal(k1, (N, A, 4), dtype=jnp.float32)
    loc_targets = jax.random.normal(k2, (N, A, 4), dtype=jnp.float32)
    cls_preds = jax.random.normal(k3, (N, A, C), dtype=jnp.float32)
    # labels in [-1, C-1]: -1 = ignored, 0 = background, >0 = positive classes
    cls_targets = jax.random.randint(k4, (N, A), -1, C, dtype=jnp.int32)

    out = ssd_loss_pallas(loc_preds, loc_targets, cls_preds, cls_targets,
                          num_classes=C)
    out = jax.block_until_ready(out)
    loc_loss, cls_loss, num_pos, loss = [float(x) for x in out]

    # Mirrors the module's print statement.
    print('loc_loss: %.3f | cls_loss: %.3f' % (loc_loss / num_pos,
                                               cls_loss / num_pos))

    ref_loc, ref_cls, ref_loss = ssd_loss_reference(
        loc_preds, loc_targets, cls_preds, cls_targets, C)
    ref_loc, ref_cls, ref_loss = float(ref_loc), float(ref_cls), float(ref_loss)
    assert abs(loc_loss - ref_loc) < 1e-3 * max(1.0, abs(ref_loc)), (loc_loss, ref_loc)
    assert abs(cls_loss - ref_cls) < 1e-3 * max(1.0, abs(ref_cls)), (cls_loss, ref_cls)
    assert abs(loss - ref_loss) < 1e-3 * max(1.0, abs(ref_loss)), (loss, ref_loss)

    print("KERNEL_OK")
</pallas_src>

<mosaic_0001>
module attributes {stable_mosaic.version = 11 : i64} {
  func.func @_ssd_loss_kernel(%arg0: i32, %arg1: memref<1x4x8x128xf32, #tpu.memory_space<vmem>>, %arg2: memref<1x4x8x128xf32, #tpu.memory_space<vmem>>, %arg3: memref<1x8x8x128xf32, #tpu.memory_space<vmem>>, %arg4: memref<1x8x128xi32, #tpu.memory_space<vmem>>, %arg5: memref<1x1x128xf32, #tpu.memory_space<vmem>>) attributes {dimension_semantics = [#tpu.dimension_semantics<parallel>], iteration_bounds = array<i64: 2>, scalar_prefetch = 0 : i64, scratch_operands = 0 : i64, tpu.core_type = #tpu.core_type<tc>, window_params = [{transform_indices = @transform_0, window_bounds = array<i64: 1, 4, 8, 128>}, {transform_indices = @transform_1, window_bounds = array<i64: 1, 4, 8, 128>}, {transform_indices = @transform_2, window_bounds = array<i64: 1, 8, 8, 128>}, {transform_indices = @transform_3, window_bounds = array<i64: 1, 8, 128>}, {transform_indices = @transform_4, window_bounds = array<i64: 1, 1, 128>}]} {
    %c0 = arith.constant 0 : index
    %c0_0 = arith.constant 0 : index
    %c0_1 = arith.constant 0 : index
    %0 = vector.load %arg4[%c0, %c0_0, %c0_1] : memref<1x8x128xi32, #tpu.memory_space<vmem>>, vector<1x8x128xi32>
    %c0_i32 = arith.constant 0 : i32
    %1 = vector.broadcast %c0_i32 : i32 to vector<1x8x128xi32>
    %2 = arith.cmpi sgt, %0, %1 : vector<1x8x128xi32>
    %3 = arith.extui %2 : vector<1x8x128xi1> to vector<1x8x128xi32>
    %4 = arith.sitofp %3 : vector<1x8x128xi32> to vector<1x8x128xf32>
    %c0_2 = arith.constant 0 : index
    %c0_3 = arith.constant 0 : index
    %c0_4 = arith.constant 0 : index
    %c0_5 = arith.constant 0 : index
    %5 = vector.load %arg1[%c0_2, %c0_3, %c0_4, %c0_5] : memref<1x4x8x128xf32, #tpu.memory_space<vmem>>, vector<1x4x8x128xf32>
    %c0_6 = arith.constant 0 : index
    %c0_7 = arith.constant 0 : index
    %c0_8 = arith.constant 0 : index
    %c0_9 = arith.constant 0 : index
    %6 = vector.load %arg2[%c0_6, %c0_7, %c0_8, %c0_9] : memref<1x4x8x128xf32, #tpu.memory_space<vmem>>, vector<1x4x8x128xf32>
    %7 = arith.subf %5, %6 : vector<1x4x8x128xf32>
    %8 = math.absf %7 : vector<1x4x8x128xf32>
    %cst = arith.constant 1.000000e+00 : f32
    %9 = vector.broadcast %cst : f32 to vector<1x4x8x128xf32>
    %10 = arith.cmpf olt, %8, %9 : vector<1x4x8x128xf32>
    %cst_10 = arith.constant 5.000000e-01 : f32
    %11 = vector.broadcast %cst_10 : f32 to vector<1x4x8x128xf32>
    %12 = arith.mulf %11, %7 : vector<1x4x8x128xf32>
    %13 = arith.mulf %12, %7 : vector<1x4x8x128xf32>
    %cst_11 = arith.constant 5.000000e-01 : f32
    %14 = vector.broadcast %cst_11 : f32 to vector<1x4x8x128xf32>
    %15 = arith.subf %8, %14 : vector<1x4x8x128xf32>
    %16 = arith.select %10, %13, %15 : vector<1x4x8x128xi1>, vector<1x4x8x128xf32>
    %17 = vector.shape_cast %4 : vector<1x8x128xf32> to vector<1x1x8x128xf32>
    %18 = vector.broadcast %17 : vector<1x1x8x128xf32> to vector<1x4x8x128xf32>
    %19 = arith.mulf %16, %18 : vector<1x4x8x128xf32>
    %20 = vector.shape_cast %19 : vector<1x4x8x128xf32> to vector<1x1x4x8x128xf32>
    %cst_12 = arith.constant dense<0.000000e+00> : vector<1xf32>
    %21 = vector.multi_reduction <add>, %20, %cst_12 [1, 2, 3, 4] : vector<1x1x4x8x128xf32> to vector<1xf32>
    %22 = vector.shape_cast %21 : vector<1xf32> to vector<1x1x1x1x1xf32>
    %23 = vector.extract %22[0, 0, 0, 0, 0] : f32 from vector<1x1x1x1x1xf32>
    %c0_13 = arith.constant 0 : index
    %c0_14 = arith.constant 0 : index
    %c0_15 = arith.constant 0 : index
    %c0_16 = arith.constant 0 : index
    %24 = vector.load %arg3[%c0_13, %c0_14, %c0_15, %c0_16] : memref<1x8x8x128xf32, #tpu.memory_space<vmem>>, vector<1x8x8x128xf32>
    %cst_17 = arith.constant dense<0xFF800000> : vector<1x8x128xf32>
    %25 = vector.multi_reduction <maximumf>, %24, %cst_17 [1] : vector<1x8x8x128xf32> to vector<1x8x128xf32>
    %26 = vector.shape_cast %25 : vector<1x8x128xf32> to vector<1x1x8x128xf32>
    %27 = vector.broadcast %26 : vector<1x1x8x128xf32> to vector<1x8x8x128xf32>
    %28 = arith.subf %24, %27 : vector<1x8x8x128xf32>
    %29 = math.exp %28 : vector<1x8x8x128xf32>
    %cst_18 = arith.constant dense<0.000000e+00> : vector<1x8x128xf32>
    %30 = vector.multi_reduction <add>, %29, %cst_18 [1] : vector<1x8x8x128xf32> to vector<1x8x128xf32>
    %31 = math.log %30 : vector<1x8x128xf32>
    %32 = arith.addf %31, %25 : vector<1x8x128xf32>
    %c0_i32_19 = arith.constant 0 : i32
    %c7_i32 = arith.constant 7 : i32
    %33 = vector.broadcast %c0_i32_19 : i32 to vector<1x8x128xi32>
    %34 = arith.maxsi %33, %0 : vector<1x8x128xi32>
    %35 = vector.broadcast %c7_i32 : i32 to vector<1x8x128xi32>
    %36 = arith.minsi %35, %34 : vector<1x8x128xi32>
    %37 = tpu.iota {dimensions = array<i32: 1>} : vector<1x8x1x1xi32>
    %38 = vector.shape_cast %36 : vector<1x8x128xi32> to vector<1x1x8x128xi32>
    %39 = vector.broadcast %37 : vector<1x8x1x1xi32> to vector<1x8x8x128xi32>
    %40 = vector.broadcast %38 : vector<1x1x8x128xi32> to vector<1x8x8x128xi32>
    %41 = arith.cmpi eq, %39, %40 : vector<1x8x8x128xi32>
    %cst_20 = arith.constant 0.000000e+00 : f32
    %42 = vector.broadcast %cst_20 : f32 to vector<1x8x8x128xf32>
    %43 = arith.select %41, %24, %42 : vector<1x8x8x128xi1>, vector<1x8x8x128xf32>
    %cst_21 = arith.constant dense<0.000000e+00> : vector<1x8x128xf32>
    %44 = vector.multi_reduction <add>, %43, %cst_21 [1] : vector<1x8x8x128xf32> to vector<1x8x128xf32>
    %45 = arith.subf %32, %44 : vector<1x8x128xf32>
    %c0_i32_22 = arith.constant 0 : i32
    %46 = vector.broadcast %c0_i32_22 : i32 to vector<1x8x128xi32>
    %47 = arith.cmpi slt, %0, %46 : vector<1x8x128xi32>
    %cst_23 = arith.constant 0.000000e+00 : f32
    %48 = vector.broadcast %cst_23 : f32 to vector<1x8x128xf32>
    %49 = arith.select %47, %48, %45 : vector<1x8x128xi1>, vector<1x8x128xf32>
    %cst_24 = arith.constant 0.000000e+00 : f32
    %50 = vector.broadcast %cst_24 : f32 to vector<1x8x128xf32>
    %51 = arith.select %2, %49, %50 : vector<1x8x128xi1>, vector<1x8x128xf32>
    %52 = vector.shape_cast %51 : vector<1x8x128xf32> to vector<1x1x8x128xf32>
    %cst_25 = arith.constant dense<0.000000e+00> : vector<1xf32>
    %53 = vector.multi_reduction <add>, %52, %cst_25 [1, 2, 3] : vector<1x1x8x128xf32> to vector<1xf32>
    %54 = vector.shape_cast %53 : vector<1xf32> to vector<1x1x1x1xf32>
    %55 = vector.extract %54[0, 0, 0, 0] : f32 from vector<1x1x1x1xf32>
    %56 = arith.extui %2 : vector<1x8x128xi1> to vector<1x8x128xi32>
    %57 = vector.shape_cast %56 : vector<1x8x128xi32> to vector<1x1x8x128xi32>
    %cst_26 = arith.constant dense<0> : vector<1xi32>
    %58 = vector.multi_reduction <add>, %57, %cst_26 [1, 2, 3] : vector<1x1x8x128xi32> to vector<1xi32>
    %59 = vector.shape_cast %58 : vector<1xi32> to vector<1x1x1x1xi32>
    %60 = vector.extract %59[0, 0, 0, 0] : i32 from vector<1x1x1x1xi32>
    %61 = vector.shape_cast %4 : vector<1x8x128xf32> to vector<1x1x8x128xf32>
    %cst_27 = arith.constant dense<0.000000e+00> : vector<1xf32>
    %62 = vector.multi_reduction <add>, %61, %cst_27 [1, 2, 3] : vector<1x1x8x128xf32> to vector<1xf32>
    %63 = vector.shape_cast %62 : vector<1xf32> to vector<1x1x1x1xf32>
    %64 = vector.extract %63[0, 0, 0, 0] : f32 from vector<1x1x1x1xf32>
    %c3_i32 = arith.constant 3 : i32
    %65 = arith.muli %c3_i32, %60 : i32
    %cst_28 = arith.constant 3.000000e+00 : f32
    %66 = arith.mulf %cst_28, %64 : f32
    %c0_i32_29 = arith.constant 0 : i32
    %67 = vector.broadcast %c0_i32_29 : i32 to vector<1x8x128xi32>
    %68 = arith.cmpi eq, %0, %67 : vector<1x8x128xi32>
    %cst_30 = arith.constant 0.000000e+00 : f32
    %69 = vector.broadcast %cst_30 : f32 to vector<1x8x128xf32>
    %70 = arith.select %68, %49, %69 : vector<1x8x128xi1>, vector<1x8x128xf32>
    %cst_31 = arith.constant 0.000000e+00 : f32
    %71 = vector.broadcast %cst_31 : f32 to vector<1x8x128xf32>
    %72 = arith.maximumf %70, %71 : vector<1x8x128xf32>
    %73 = tpu.bitcast %72 : vector<1x8x128xf32> -> vector<1x8x128xi32>
    %c1073741824_i32 = arith.constant 1073741824 : i32
    %74 = vector.broadcast %c1073741824_i32 : i32 to vector<1x8x128xi32>
    %75 = arith.cmpi sge, %73, %74 : vector<1x8x128xi32>
    %76 = arith.extui %75 : vector<1x8x128xi1> to vector<1x8x128xi32>
    %77 = vector.shape_cast %76 : vector<1x8x128xi32> to vector<1x1x8x128xi32>
    %cst_32 = arith.constant dense<0> : vector<1xi32>
    %78 = vector.multi_reduction <add>, %77, %cst_32 [1, 2, 3] : vector<1x1x8x128xi32> to vector<1xi32>
    %79 = vector.shape_cast %78 : vector<1xi32> to vector<1x1x1x1xi32>
    %80 = vector.extract %79[0, 0, 0, 0] : i32 from vector<1x1x1x1xi32>
    %81 = arith.cmpi sge, %80, %65 : i32
    %c1073741824_i32_33 = arith.constant 1073741824 : i32
    %c0_i32_34 = arith.constant 0 : i32
    %82 = arith.select %81, %c1073741824_i32_33, %c0_i32_34 : i32
    %c0_i32_35 = arith.constant 0 : i32
    %c2_i32 = arith.constant 2 : i32
    %83 = arith.muli %c2_i32, %c0_i32_35 : i32
    %c28_i32 = arith.constant 28 : i32
    %84 = arith.subi %c28_i32, %83 : i32
    %c1_i32 = arith.constant 1 : i32
    %85 = arith.shli %c1_i32, %84 : i32
    %86 = arith.ori %82, %85 : i32
    %c2_i32_36 = arith.constant 2 : i32
    %87 = arith.shli %c2_i32_36, %84 : i32
    %88 = arith.ori %82, %87 : i32
    %c3_i32_37 = arith.constant 3 : i32
    %89 = arith.shli %c3_i32_37, %84 : i32
    %90 = arith.ori %82, %89 : i32
    %91 = vector.broadcast %86 : i32 to vector<1x8x128xi32>
    %92 = arith.cmpi sge, %73, %91 : vector<1x8x128xi32>
    %93 = arith.extui %92 : vector<1x8x128xi1> to vector<1x8x128xi32>
    %94 = vector.shape_cast %93 : vector<1x8x128xi32> to vector<1x1x8x128xi32>
    %cst_38 = arith.constant dense<0> : vector<1xi32>
    %95 = vector.multi_reduction <add>, %94, %cst_38 [1, 2, 3] : vector<1x1x8x128xi32> to vector<1xi32>
    %96 = vector.shape_cast %95 : vector<1xi32> to vector<1x1x1x1xi32>
    %97 = vector.extract %96[0, 0, 0, 0] : i32 from vector<1x1x1x1xi32>
    %98 = vector.broadcast %88 : i32 to vector<1x8x128xi32>
    %99 = arith.cmpi sge, %73, %98 : vector<1x8x128xi32>
    %100 = arith.extui %99 : vector<1x8x128xi1> to vector<1x8x128xi32>
    %101 = vector.shape_cast %100 : vector<1x8x128xi32> to vector<1x1x8x128xi32>
    %cst_39 = arith.constant dense<0> : vector<1xi32>
    %102 = vector.multi_reduction <add>, %101, %cst_39 [1, 2, 3] : vector<1x1x8x128xi32> to vector<1xi32>
    %103 = vector.shape_cast %102 : vector<1xi32> to vector<1x1x1x1xi32>
    %104 = vector.extract %103[0, 0, 0, 0] : i32 from vector<1x1x1x1xi32>
    %105 = vector.broadcast %90 : i32 to vector<1x8x128xi32>
    %106 = arith.cmpi sge, %73, %105 : vector<1x8x128xi32>
    %107 = arith.extui %106 : vector<1x8x128xi1> to vector<1x8x128xi32>
    %108 = vector.shape_cast %107 : vector<1x8x128xi32> to vector<1x1x8x128xi32>
    %cst_40 = arith.constant dense<0> : vector<1xi32>
    %109 = vector.multi_reduction <add>, %108, %cst_40 [1, 2, 3] : vector<1x1x8x128xi32> to vector<1xi32>
    %110 = vector.shape_cast %109 : vector<1xi32> to vector<1x1x1x1xi32>
    %111 = vector.extract %110[0, 0, 0, 0] : i32 from vector<1x1x1x1xi32>
    %112 = arith.cmpi sge, %111, %65 : i32
    %113 = arith.cmpi sge, %104, %65 : i32
    %114 = arith.cmpi sge, %97, %65 : i32
    %115 = arith.select %114, %86, %82 : i32
    %116 = arith.select %113, %88, %115 : i32
    %117 = arith.select %112, %90, %116 : i32
    %c1_i32_41 = arith.constant 1 : i32
    %c2_i32_42 = arith.constant 2 : i32
    %118 = arith.muli %c2_i32_42, %c1_i32_41 : i32
    %c28_i32_43 = arith.constant 28 : i32
    %119 = arith.subi %c28_i32_43, %118 : i32
    %c1_i32_44 = arith.constant 1 : i32
    %120 = arith.shli %c1_i32_44, %119 : i32
    %121 = arith.ori %117, %120 : i32
    %c2_i32_45 = arith.constant 2 : i32
    %122 = arith.shli %c2_i32_45, %119 : i32
    %123 = arith.ori %117, %122 : i32
    %c3_i32_46 = arith.constant 3 : i32
    %124 = arith.shli %c3_i32_46, %119 : i32
    %125 = arith.ori %117, %124 : i32
    %126 = vector.broadcast %121 : i32 to vector<1x8x128xi32>
    %127 = arith.cmpi sge, %73, %126 : vector<1x8x128xi32>
    %128 = arith.extui %127 : vector<1x8x128xi1> to vector<1x8x128xi32>
    %129 = vector.shape_cast %128 : vector<1x8x128xi32> to vector<1x1x8x128xi32>
    %cst_47 = arith.constant dense<0> : vector<1xi32>
    %130 = vector.multi_reduction <add>, %129, %cst_47 [1, 2, 3] : vector<1x1x8x128xi32> to vector<1xi32>
    %131 = vector.shape_cast %130 : vector<1xi32> to vector<1x1x1x1xi32>
    %132 = vector.extract %131[0, 0, 0, 0] : i32 from vector<1x1x1x1xi32>
    %133 = vector.broadcast %123 : i32 to vector<1x8x128xi32>
    %134 = arith.cmpi sge, %73, %133 : vector<1x8x128xi32>
    %135 = arith.extui %134 : vector<1x8x128xi1> to vector<1x8x128xi32>
    %136 = vector.shape_cast %135 : vector<1x8x128xi32> to vector<1x1x8x128xi32>
    %cst_48 = arith.constant dense<0> : vector<1xi32>
    %137 = vector.multi_reduction <add>, %136, %cst_48 [1, 2, 3] : vector<1x1x8x128xi32> to vector<1xi32>
    %138 = vector.shape_cast %137 : vector<1xi32> to vector<1x1x1x1xi32>
    %139 = vector.extract %138[0, 0, 0, 0] : i32 from vector<1x1x1x1xi32>
    %140 = vector.broadcast %125 : i32 to vector<1x8x128xi32>
    %141 = arith.cmpi sge, %73, %140 : vector<1x8x128xi32>
    %142 = arith.extui %141 : vector<1x8x128xi1> to vector<1x8x128xi32>
    %143 = vector.shape_cast %142 : vector<1x8x128xi32> to vector<1x1x8x128xi32>
    %cst_49 = arith.constant dense<0> : vector<1xi32>
    %144 = vector.multi_reduction <add>, %143, %cst_49 [1, 2, 3] : vector<1x1x8x128xi32> to vector<1xi32>
    %145 = vector.shape_cast %144 : vector<1xi32> to vector<1x1x1x1xi32>
    %146 = vector.extract %145[0, 0, 0, 0] : i32 from vector<1x1x1x1xi32>
    %147 = arith.cmpi sge, %146, %65 : i32
    %148 = arith.cmpi sge, %139, %65 : i32
    %149 = arith.cmpi sge, %132, %65 : i32
    %150 = arith.select %149, %121, %117 : i32
    %151 = arith.select %148, %123, %150 : i32
    %152 = arith.select %147, %125, %151 : i32
    %c2_i32_50 = arith.constant 2 : i32
    %c2_i32_51 = arith.constant 2 : i32
    %153 = arith.muli %c2_i32_51, %c2_i32_50 : i32
    %c28_i32_52 = arith.constant 28 : i32
    %154 = arith.subi %c28_i32_52, %153 : i32
    %c1_i32_53 = arith.constant 1 : i32
    %155 = arith.shli %c1_i32_53, %154 : i32
    %156 = arith.ori %152, %155 : i32
    %c2_i32_54 = arith.constant 2 : i32
    %157 = arith.shli %c2_i32_54, %154 : i32
    %158 = arith.ori %152, %157 : i32
    %c3_i32_55 = arith.constant 3 : i32
    %159 = arith.shli %c3_i32_55, %154 : i32
    %160 = arith.ori %152, %159 : i32
    %161 = vector.broadcast %156 : i32 to vector<1x8x128xi32>
    %162 = arith.cmpi sge, %73, %161 : vector<1x8x128xi32>
    %163 = arith.extui %162 : vector<1x8x128xi1> to vector<1x8x128xi32>
    %164 = vector.shape_cast %163 : vector<1x8x128xi32> to vector<1x1x8x128xi32>
    %cst_56 = arith.constant dense<0> : vector<1xi32>
    %165 = vector.multi_reduction <add>, %164, %cst_56 [1, 2, 3] : vector<1x1x8x128xi32> to vector<1xi32>
    %166 = vector.shape_cast %165 : vector<1xi32> to vector<1x1x1x1xi32>
    %167 = vector.extract %166[0, 0, 0, 0] : i32 from vector<1x1x1x1xi32>
    %168 = vector.broadcast %158 : i32 to vector<1x8x128xi32>
    %169 = arith.cmpi sge, %73, %168 : vector<1x8x128xi32>
    %170 = arith.extui %169 : vector<1x8x128xi1> to vector<1x8x128xi32>
    %171 = vector.shape_cast %170 : vector<1x8x128xi32> to vector<1x1x8x128xi32>
    %cst_57 = arith.constant dense<0> : vector<1xi32>
    %172 = vector.multi_reduction <add>, %171, %cst_57 [1, 2, 3] : vector<1x1x8x128xi32> to vector<1xi32>
    %173 = vector.shape_cast %172 : vector<1xi32> to vector<1x1x1x1xi32>
    %174 = vector.extract %173[0, 0, 0, 0] : i32 from vector<1x1x1x1xi32>
    %175 = vector.broadcast %160 : i32 to vector<1x8x128xi32>
    %176 = arith.cmpi sge, %73, %175 : vector<1x8x128xi32>
    %177 = arith.extui %176 : vector<1x8x128xi1> to vector<1x8x128xi32>
    %178 = vector.shape_cast %177 : vector<1x8x128xi32> to vector<1x1x8x128xi32>
    %cst_58 = arith.constant dense<0> : vector<1xi32>
    %179 = vector.multi_reduction <add>, %178, %cst_58 [1, 2, 3] : vector<1x1x8x128xi32> to vector<1xi32>
    %180 = vector.shape_cast %179 : vector<1xi32> to vector<1x1x1x1xi32>
    %181 = vector.extract %180[0, 0, 0, 0] : i32 from vector<1x1x1x1xi32>
    %182 = arith.cmpi sge, %181, %65 : i32
    %183 = arith.cmpi sge, %174, %65 : i32
    %184 = arith.cmpi sge, %167, %65 : i32
    %185 = arith.select %184, %156, %152 : i32
    %186 = arith.select %183, %158, %185 : i32
    %187 = arith.select %182, %160, %186 : i32
    %c3_i32_59 = arith.constant 3 : i32
    %c2_i32_60 = arith.constant 2 : i32
    %188 = arith.muli %c2_i32_60, %c3_i32_59 : i32
    %c28_i32_61 = arith.constant 28 : i32
    %189 = arith.subi %c28_i32_61, %188 : i32
    %c1_i32_62 = arith.constant 1 : i32
    %190 = arith.shli %c1_i32_62, %189 : i32
    %191 = arith.ori %187, %190 : i32
    %c2_i32_63 = arith.constant 2 : i32
    %192 = arith.shli %c2_i32_63, %189 : i32
    %193 = arith.ori %187, %192 : i32
    %c3_i32_64 = arith.constant 3 : i32
    %194 = arith.shli %c3_i32_64, %189 : i32
    %195 = arith.ori %187, %194 : i32
    %196 = vector.broadcast %191 : i32 to vector<1x8x128xi32>
    %197 = arith.cmpi sge, %73, %196 : vector<1x8x128xi32>
    %198 = arith.extui %197 : vector<1x8x128xi1> to vector<1x8x128xi32>
    %199 = vector.shape_cast %198 : vector<1x8x128xi32> to vector<1x1x8x128xi32>
    %cst_65 = arith.constant dense<0> : vector<1xi32>
    %200 = vector.multi_reduction <add>, %199, %cst_65 [1, 2, 3] : vector<1x1x8x128xi32> to vector<1xi32>
    %201 = vector.shape_cast %200 : vector<1xi32> to vector<1x1x1x1xi32>
    %202 = vector.extract %201[0, 0, 0, 0] : i32 from vector<1x1x1x1xi32>
    %203 = vector.broadcast %193 : i32 to vector<1x8x128xi32>
    %204 = arith.cmpi sge, %73, %203 : vector<1x8x128xi32>
    %205 = arith.extui %204 : vector<1x8x128xi1> to vector<1x8x128xi32>
    %206 = vector.shape_cast %205 : vector<1x8x128xi32> to vector<1x1x8x128xi32>
    %cst_66 = arith.constant dense<0> : vector<1xi32>
    %207 = vector.multi_reduction <add>, %206, %cst_66 [1, 2, 3] : vector<1x1x8x128xi32> to vector<1xi32>
    %208 = vector.shape_cast %207 : vector<1xi32> to vector<1x1x1x1xi32>
    %209 = vector.extract %208[0, 0, 0, 0] : i32 from vector<1x1x1x1xi32>
    %210 = vector.broadcast %195 : i32 to vector<1x8x128xi32>
    %211 = arith.cmpi sge, %73, %210 : vector<1x8x128xi32>
    %212 = arith.extui %211 : vector<1x8x128xi1> to vector<1x8x128xi32>
    %213 = vector.shape_cast %212 : vector<1x8x128xi32> to vector<1x1x8x128xi32>
    %cst_67 = arith.constant dense<0> : vector<1xi32>
    %214 = vector.multi_reduction <add>, %213, %cst_67 [1, 2, 3] : vector<1x1x8x128xi32> to vector<1xi32>
    %215 = vector.shape_cast %214 : vector<1xi32> to vector<1x1x1x1xi32>
    %216 = vector.extract %215[0, 0, 0, 0] : i32 from vector<1x1x1x1xi32>
    %217 = arith.cmpi sge, %216, %65 : i32
    %218 = arith.cmpi sge, %209, %65 : i32
    %219 = arith.cmpi sge, %202, %65 : i32
    %220 = arith.select %219, %191, %187 : i32
    %221 = arith.select %218, %193, %220 : i32
    %222 = arith.select %217, %195, %221 : i32
    %c4_i32 = arith.constant 4 : i32
    %c2_i32_68 = arith.constant 2 : i32
    %223 = arith.muli %c2_i32_68, %c4_i32 : i32
    %c28_i32_69 = arith.constant 28 : i32
    %224 = arith.subi %c28_i32_69, %223 : i32
    %c1_i32_70 = arith.constant 1 : i32
    %225 = arith.shli %c1_i32_70, %224 : i32
    %226 = arith.ori %222, %225 : i32
    %c2_i32_71 = arith.constant 2 : i32
    %227 = arith.shli %c2_i32_71, %224 : i32
    %228 = arith.ori %222, %227 : i32
    %c3_i32_72 = arith.constant 3 : i32
    %229 = arith.shli %c3_i32_72, %224 : i32
    %230 = arith.ori %222, %229 : i32
    %231 = vector.broadcast %226 : i32 to vector<1x8x128xi32>
    %232 = arith.cmpi sge, %73, %231 : vector<1x8x128xi32>
    %233 = arith.extui %232 : vector<1x8x128xi1> to vector<1x8x128xi32>
    %234 = vector.shape_cast %233 : vector<1x8x128xi32> to vector<1x1x8x128xi32>
    %cst_73 = arith.constant dense<0> : vector<1xi32>
    %235 = vector.multi_reduction <add>, %234, %cst_73 [1, 2, 3] : vector<1x1x8x128xi32> to vector<1xi32>
    %236 = vector.shape_cast %235 : vector<1xi32> to vector<1x1x1x1xi32>
    %237 = vector.extract %236[0, 0, 0, 0] : i32 from vector<1x1x1x1xi32>
    %238 = vector.broadcast %228 : i32 to vector<1x8x128xi32>
    %239 = arith.cmpi sge, %73, %238 : vector<1x8x128xi32>
    %240 = arith.extui %239 : vector<1x8x128xi1> to vector<1x8x128xi32>
    %241 = vector.shape_cast %240 : vector<1x8x128xi32> to vector<1x1x8x128xi32>
    %cst_74 = arith.constant dense<0> : vector<1xi32>
    %242 = vector.multi_reduction <add>, %241, %cst_74 [1, 2, 3] : vector<1x1x8x128xi32> to vector<1xi32>
    %243 = vector.shape_cast %242 : vector<1xi32> to vector<1x1x1x1xi32>
    %244 = vector.extract %243[0, 0, 0, 0] : i32 from vector<1x1x1x1xi32>
    %245 = vector.broadcast %230 : i32 to vector<1x8x128xi32>
    %246 = arith.cmpi sge, %73, %245 : vector<1x8x128xi32>
    %247 = arith.extui %246 : vector<1x8x128xi1> to vector<1x8x128xi32>
    %248 = vector.shape_cast %247 : vector<1x8x128xi32> to vector<1x1x8x128xi32>
    %cst_75 = arith.constant dense<0> : vector<1xi32>
    %249 = vector.multi_reduction <add>, %248, %cst_75 [1, 2, 3] : vector<1x1x8x128xi32> to vector<1xi32>
    %250 = vector.shape_cast %249 : vector<1xi32> to vector<1x1x1x1xi32>
    %251 = vector.extract %250[0, 0, 0, 0] : i32 from vector<1x1x1x1xi32>
    %252 = arith.cmpi sge, %251, %65 : i32
    %253 = arith.cmpi sge, %244, %65 : i32
    %254 = arith.cmpi sge, %237, %65 : i32
    %255 = arith.select %254, %226, %222 : i32
    %256 = arith.select %253, %228, %255 : i32
    %257 = arith.select %252, %230, %256 : i32
    %c5_i32 = arith.constant 5 : i32
    %c2_i32_76 = arith.constant 2 : i32
    %258 = arith.muli %c2_i32_76, %c5_i32 : i32
    %c28_i32_77 = arith.constant 28 : i32
    %259 = arith.subi %c28_i32_77, %258 : i32
    %c1_i32_78 = arith.constant 1 : i32
    %260 = arith.shli %c1_i32_78, %259 : i32
    %261 = arith.ori %257, %260 : i32
    %c2_i32_79 = arith.constant 2 : i32
    %262 = arith.shli %c2_i32_79, %259 : i32
    %263 = arith.ori %257, %262 : i32
    %c3_i32_80 = arith.constant 3 : i32
    %264 = arith.shli %c3_i32_80, %259 : i32
    %265 = arith.ori %257, %264 : i32
    %266 = vector.broadcast %261 : i32 to vector<1x8x128xi32>
    %267 = arith.cmpi sge, %73, %266 : vector<1x8x128xi32>
    %268 = arith.extui %267 : vector<1x8x128xi1> to vector<1x8x128xi32>
    %269 = vector.shape_cast %268 : vector<1x8x128xi32> to vector<1x1x8x128xi32>
    %cst_81 = arith.constant dense<0> : vector<1xi32>
    %270 = vector.multi_reduction <add>, %269, %cst_81 [1, 2, 3] : vector<1x1x8x128xi32> to vector<1xi32>
    %271 = vector.shape_cast %270 : vector<1xi32> to vector<1x1x1x1xi32>
    %272 = vector.extract %271[0, 0, 0, 0] : i32 from vector<1x1x1x1xi32>
    %273 = vector.broadcast %263 : i32 to vector<1x8x128xi32>
    %274 = arith.cmpi sge, %73, %273 : vector<1x8x128xi32>
    %275 = arith.extui %274 : vector<1x8x128xi1> to vector<1x8x128xi32>
    %276 = vector.shape_cast %275 : vector<1x8x128xi32> to vector<1x1x8x128xi32>
    %cst_82 = arith.constant dense<0> : vector<1xi32>
    %277 = vector.multi_reduction <add>, %276, %cst_82 [1, 2, 3] : vector<1x1x8x128xi32> to vector<1xi32>
    %278 = vector.shape_cast %277 : vector<1xi32> to vector<1x1x1x1xi32>
    %279 = vector.extract %278[0, 0, 0, 0] : i32 from vector<1x1x1x1xi32>
    %280 = vector.broadcast %265 : i32 to vector<1x8x128xi32>
    %281 = arith.cmpi sge, %73, %280 : vector<1x8x128xi32>
    %282 = arith.extui %281 : vector<1x8x128xi1> to vector<1x8x128xi32>
    %283 = vector.shape_cast %282 : vector<1x8x128xi32> to vector<1x1x8x128xi32>
    %cst_83 = arith.constant dense<0> : vector<1xi32>
    %284 = vector.multi_reduction <add>, %283, %cst_83 [1, 2, 3] : vector<1x1x8x128xi32> to vector<1xi32>
    %285 = vector.shape_cast %284 : vector<1xi32> to vector<1x1x1x1xi32>
    %286 = vector.extract %285[0, 0, 0, 0] : i32 from vector<1x1x1x1xi32>
    %287 = arith.cmpi sge, %286, %65 : i32
    %288 = arith.cmpi sge, %279, %65 : i32
    %289 = arith.cmpi sge, %272, %65 : i32
    %290 = arith.select %289, %261, %257 : i32
    %291 = arith.select %288, %263, %290 : i32
    %292 = arith.select %287, %265, %291 : i32
    %c6_i32 = arith.constant 6 : i32
    %c2_i32_84 = arith.constant 2 : i32
    %293 = arith.muli %c2_i32_84, %c6_i32 : i32
    %c28_i32_85 = arith.constant 28 : i32
    %294 = arith.subi %c28_i32_85, %293 : i32
    %c1_i32_86 = arith.constant 1 : i32
    %295 = arith.shli %c1_i32_86, %294 : i32
    %296 = arith.ori %292, %295 : i32
    %c2_i32_87 = arith.constant 2 : i32
    %297 = arith.shli %c2_i32_87, %294 : i32
    %298 = arith.ori %292, %297 : i32
    %c3_i32_88 = arith.constant 3 : i32
    %299 = arith.shli %c3_i32_88, %294 : i32
    %300 = arith.ori %292, %299 : i32
    %301 = vector.broadcast %296 : i32 to vector<1x8x128xi32>
    %302 = arith.cmpi sge, %73, %301 : vector<1x8x128xi32>
    %303 = arith.extui %302 : vector<1x8x128xi1> to vector<1x8x128xi32>
    %304 = vector.shape_cast %303 : vector<1x8x128xi32> to vector<1x1x8x128xi32>
    %cst_89 = arith.constant dense<0> : vector<1xi32>
    %305 = vector.multi_reduction <add>, %304, %cst_89 [1, 2, 3] : vector<1x1x8x128xi32> to vector<1xi32>
    %306 = vector.shape_cast %305 : vector<1xi32> to vector<1x1x1x1xi32>
    %307 = vector.extract %306[0, 0, 0, 0] : i32 from vector<1x1x1x1xi32>
    %308 = vector.broadcast %298 : i32 to vector<1x8x128xi32>
    %309 = arith.cmpi sge, %73, %308 : vector<1x8x128xi32>
    %310 = arith.extui %309 : vector<1x8x128xi1> to vector<1x8x128xi32>
    %311 = vector.shape_cast %310 : vector<1x8x128xi32> to vector<1x1x8x128xi32>
    %cst_90 = arith.constant dense<0> : vector<1xi32>
    %312 = vector.multi_reduction <add>, %311, %cst_90 [1, 2, 3] : vector<1x1x8x128xi32> to vector<1xi32>
    %313 = vector.shape_cast %312 : vector<1xi32> to vector<1x1x1x1xi32>
    %314 = vector.extract %313[0, 0, 0, 0] : i32 from vector<1x1x1x1xi32>
    %315 = vector.broadcast %300 : i32 to vector<1x8x128xi32>
    %316 = arith.cmpi sge, %73, %315 : vector<1x8x128xi32>
    %317 = arith.extui %316 : vector<1x8x128xi1> to vector<1x8x128xi32>
    %318 = vector.shape_cast %317 : vector<1x8x128xi32> to vector<1x1x8x128xi32>
    %cst_91 = arith.constant dense<0> : vector<1xi32>
    %319 = vector.multi_reduction <add>, %318, %cst_91 [1, 2, 3] : vector<1x1x8x128xi32> to vector<1xi32>
    %320 = vector.shape_cast %319 : vector<1xi32> to vector<1x1x1x1xi32>
    %321 = vector.extract %320[0, 0, 0, 0] : i32 from vector<1x1x1x1xi32>
    %322 = arith.cmpi sge, %321, %65 : i32
    %323 = arith.cmpi sge, %314, %65 : i32
    %324 = arith.cmpi sge, %307, %65 : i32
    %325 = arith.select %324, %296, %292 : i32
    %326 = arith.select %323, %298, %325 : i32
    %327 = arith.select %322, %300, %326 : i32
    %c7_i32_92 = arith.constant 7 : i32
    %c2_i32_93 = arith.constant 2 : i32
    %328 = arith.muli %c2_i32_93, %c7_i32_92 : i32
    %c28_i32_94 = arith.constant 28 : i32
    %329 = arith.subi %c28_i32_94, %328 : i32
    %c1_i32_95 = arith.constant 1 : i32
    %330 = arith.shli %c1_i32_95, %329 : i32
    %331 = arith.ori %327, %330 : i32
    %c2_i32_96 = arith.constant 2 : i32
    %332 = arith.shli %c2_i32_96, %329 : i32
    %333 = arith.ori %327, %332 : i32
    %c3_i32_97 = arith.constant 3 : i32
    %334 = arith.shli %c3_i32_97, %329 : i32
    %335 = arith.ori %327, %334 : i32
    %336 = vector.broadcast %331 : i32 to vector<1x8x128xi32>
    %337 = arith.cmpi sge, %73, %336 : vector<1x8x128xi32>
    %338 = arith.extui %337 : vector<1x8x128xi1> to vector<1x8x128xi32>
    %339 = vector.shape_cast %338 : vector<1x8x128xi32> to vector<1x1x8x128xi32>
    %cst_98 = arith.constant dense<0> : vector<1xi32>
    %340 = vector.multi_reduction <add>, %339, %cst_98 [1, 2, 3] : vector<1x1x8x128xi32> to vector<1xi32>
    %341 = vector.shape_cast %340 : vector<1xi32> to vector<1x1x1x1xi32>
    %342 = vector.extract %341[0, 0, 0, 0] : i32 from vector<1x1x1x1xi32>
    %343 = vector.broadcast %333 : i32 to vector<1x8x128xi32>
    %344 = arith.cmpi sge, %73, %343 : vector<1x8x128xi32>
    %345 = arith.extui %344 : vector<1x8x128xi1> to vector<1x8x128xi32>
    %346 = vector.shape_cast %345 : vector<1x8x128xi32> to vector<1x1x8x128xi32>
    %cst_99 = arith.constant dense<0> : vector<1xi32>
    %347 = vector.multi_reduction <add>, %346, %cst_99 [1, 2, 3] : vector<1x1x8x128xi32> to vector<1xi32>
    %348 = vector.shape_cast %347 : vector<1xi32> to vector<1x1x1x1xi32>
    %349 = vector.extract %348[0, 0, 0, 0] : i32 from vector<1x1x1x1xi32>
    %350 = vector.broadcast %335 : i32 to vector<1x8x128xi32>
    %351 = arith.cmpi sge, %73, %350 : vector<1x8x128xi32>
    %352 = arith.extui %351 : vector<1x8x128xi1> to vector<1x8x128xi32>
    %353 = vector.shape_cast %352 : vector<1x8x128xi32> to vector<1x1x8x128xi32>
    %cst_100 = arith.constant dense<0> : vector<1xi32>
    %354 = vector.multi_reduction <add>, %353, %cst_100 [1, 2, 3] : vector<1x1x8x128xi32> to vector<1xi32>
    %355 = vector.shape_cast %354 : vector<1xi32> to vector<1x1x1x1xi32>
    %356 = vector.extract %355[0, 0, 0, 0] : i32 from vector<1x1x1x1xi32>
    %357 = arith.cmpi sge, %356, %65 : i32
    %358 = arith.cmpi sge, %349, %65 : i32
    %359 = arith.cmpi sge, %342, %65 : i32
    %360 = arith.select %359, %331, %327 : i32
    %361 = arith.select %358, %333, %360 : i32
    %362 = arith.select %357, %335, %361 : i32
    %c8_i32 = arith.constant 8 : i32
    %c2_i32_101 = arith.constant 2 : i32
    %363 = arith.muli %c2_i32_101, %c8_i32 : i32
    %c28_i32_102 = arith.constant 28 : i32
    %364 = arith.subi %c28_i32_102, %363 : i32
    %c1_i32_103 = arith.constant 1 : i32
    %365 = arith.shli %c1_i32_103, %364 : i32
    %366 = arith.ori %362, %365 : i32
    %c2_i32_104 = arith.constant 2 : i32
    %367 = arith.shli %c2_i32_104, %364 : i32
    %368 = arith.ori %362, %367 : i32
    %c3_i32_105 = arith.constant 3 : i32
    %369 = arith.shli %c3_i32_105, %364 : i32
    %370 = arith.ori %362, %369 : i32
    %371 = vector.broadcast %366 : i32 to vector<1x8x128xi32>
    %372 = arith.cmpi sge, %73, %371 : vector<1x8x128xi32>
    %373 = arith.extui %372 : vector<1x8x128xi1> to vector<1x8x128xi32>
    %374 = vector.shape_cast %373 : vector<1x8x128xi32> to vector<1x1x8x128xi32>
    %cst_106 = arith.constant dense<0> : vector<1xi32>
    %375 = vector.multi_reduction <add>, %374, %cst_106 [1, 2, 3] : vector<1x1x8x128xi32> to vector<1xi32>
    %376 = vector.shape_cast %375 : vector<1xi32> to vector<1x1x1x1xi32>
    %377 = vector.extract %376[0, 0, 0, 0] : i32 from vector<1x1x1x1xi32>
    %378 = vector.broadcast %368 : i32 to vector<1x8x128xi32>
    %379 = arith.cmpi sge, %73, %378 : vector<1x8x128xi32>
    %380 = arith.extui %379 : vector<1x8x128xi1> to vector<1x8x128xi32>
    %381 = vector.shape_cast %380 : vector<1x8x128xi32> to vector<1x1x8x128xi32>
    %cst_107 = arith.constant dense<0> : vector<1xi32>
    %382 = vector.multi_reduction <add>, %381, %cst_107 [1, 2, 3] : vector<1x1x8x128xi32> to vector<1xi32>
    %383 = vector.shape_cast %382 : vector<1xi32> to vector<1x1x1x1xi32>
    %384 = vector.extract %383[0, 0, 0, 0] : i32 from vector<1x1x1x1xi32>
    %385 = vector.broadcast %370 : i32 to vector<1x8x128xi32>
    %386 = arith.cmpi sge, %73, %385 : vector<1x8x128xi32>
    %387 = arith.extui %386 : vector<1x8x128xi1> to vector<1x8x128xi32>
    %388 = vector.shape_cast %387 : vector<1x8x128xi32> to vector<1x1x8x128xi32>
    %cst_108 = arith.constant dense<0> : vector<1xi32>
    %389 = vector.multi_reduction <add>, %388, %cst_108 [1, 2, 3] : vector<1x1x8x128xi32> to vector<1xi32>
    %390 = vector.shape_cast %389 : vector<1xi32> to vector<1x1x1x1xi32>
    %391 = vector.extract %390[0, 0, 0, 0] : i32 from vector<1x1x1x1xi32>
    %392 = arith.cmpi sge, %391, %65 : i32
    %393 = arith.cmpi sge, %384, %65 : i32
    %394 = arith.cmpi sge, %377, %65 : i32
    %395 = arith.select %394, %366, %362 : i32
    %396 = arith.select %393, %368, %395 : i32
    %397 = arith.select %392, %370, %396 : i32
    %c9_i32 = arith.constant 9 : i32
    %c2_i32_109 = arith.constant 2 : i32
    %398 = arith.muli %c2_i32_109, %c9_i32 : i32
    %c28_i32_110 = arith.constant 28 : i32
    %399 = arith.subi %c28_i32_110, %398 : i32
    %c1_i32_111 = arith.constant 1 : i32
    %400 = arith.shli %c1_i32_111, %399 : i32
    %401 = arith.ori %397, %400 : i32
    %c2_i32_112 = arith.constant 2 : i32
    %402 = arith.shli %c2_i32_112, %399 : i32
    %403 = arith.ori %397, %402 : i32
    %c3_i32_113 = arith.constant 3 : i32
    %404 = arith.shli %c3_i32_113, %399 : i32
    %405 = arith.ori %397, %404 : i32
    %406 = vector.broadcast %401 : i32 to vector<1x8x128xi32>
    %407 = arith.cmpi sge, %73, %406 : vector<1x8x128xi32>
    %408 = arith.extui %407 : vector<1x8x128xi1> to vector<1x8x128xi32>
    %409 = vector.shape_cast %408 : vector<1x8x128xi32> to vector<1x1x8x128xi32>
    %cst_114 = arith.constant dense<0> : vector<1xi32>
    %410 = vector.multi_reduction <add>, %409, %cst_114 [1, 2, 3] : vector<1x1x8x128xi32> to vector<1xi32>
    %411 = vector.shape_cast %410 : vector<1xi32> to vector<1x1x1x1xi32>
    %412 = vector.extract %411[0, 0, 0, 0] : i32 from vector<1x1x1x1xi32>
    %413 = vector.broadcast %403 : i32 to vector<1x8x128xi32>
    %414 = arith.cmpi sge, %73, %413 : vector<1x8x128xi32>
    %415 = arith.extui %414 : vector<1x8x128xi1> to vector<1x8x128xi32>
    %416 = vector.shape_cast %415 : vector<1x8x128xi32> to vector<1x1x8x128xi32>
    %cst_115 = arith.constant dense<0> : vector<1xi32>
    %417 = vector.multi_reduction <add>, %416, %cst_115 [1, 2, 3] : vector<1x1x8x128xi32> to vector<1xi32>
    %418 = vector.shape_cast %417 : vector<1xi32> to vector<1x1x1x1xi32>
    %419 = vector.extract %418[0, 0, 0, 0] : i32 from vector<1x1x1x1xi32>
    %420 = vector.broadcast %405 : i32 to vector<1x8x128xi32>
    %421 = arith.cmpi sge, %73, %420 : vector<1x8x128xi32>
    %422 = arith.extui %421 : vector<1x8x128xi1> to vector<1x8x128xi32>
    %423 = vector.shape_cast %422 : vector<1x8x128xi32> to vector<1x1x8x128xi32>
    %cst_116 = arith.constant dense<0> : vector<1xi32>
    %424 = vector.multi_reduction <add>, %423, %cst_116 [1, 2, 3] : vector<1x1x8x128xi32> to vector<1xi32>
    %425 = vector.shape_cast %424 : vector<1xi32> to vector<1x1x1x1xi32>
    %426 = vector.extract %425[0, 0, 0, 0] : i32 from vector<1x1x1x1xi32>
    %427 = arith.cmpi sge, %426, %65 : i32
    %428 = arith.cmpi sge, %419, %65 : i32
    %429 = arith.cmpi sge, %412, %65 : i32
    %430 = arith.select %429, %401, %397 : i32
    %431 = arith.select %428, %403, %430 : i32
    %432 = arith.select %427, %405, %431 : i32
    %c10_i32 = arith.constant 10 : i32
    %c2_i32_117 = arith.constant 2 : i32
    %433 = arith.muli %c2_i32_117, %c10_i32 : i32
    %c28_i32_118 = arith.constant 28 : i32
    %434 = arith.subi %c28_i32_118, %433 : i32
    %c1_i32_119 = arith.constant 1 : i32
    %435 = arith.shli %c1_i32_119, %434 : i32
    %436 = arith.ori %432, %435 : i32
    %c2_i32_120 = arith.constant 2 : i32
    %437 = arith.shli %c2_i32_120, %434 : i32
    %438 = arith.ori %432, %437 : i32
    %c3_i32_121 = arith.constant 3 : i32
    %439 = arith.shli %c3_i32_121, %434 : i32
    %440 = arith.ori %432, %439 : i32
    %441 = vector.broadcast %436 : i32 to vector<1x8x128xi32>
    %442 = arith.cmpi sge, %73, %441 : vector<1x8x128xi32>
    %443 = arith.extui %442 : vector<1x8x128xi1> to vector<1x8x128xi32>
    %444 = vector.shape_cast %443 : vector<1x8x128xi32> to vector<1x1x8x128xi32>
    %cst_122 = arith.constant dense<0> : vector<1xi32>
    %445 = vector.multi_reduction <add>, %444, %cst_122 [1, 2, 3] : vector<1x1x8x128xi32> to vector<1xi32>
    %446 = vector.shape_cast %445 : vector<1xi32> to vector<1x1x1x1xi32>
    %447 = vector.extract %446[0, 0, 0, 0] : i32 from vector<1x1x1x1xi32>
    %448 = vector.broadcast %438 : i32 to vector<1x8x128xi32>
    %449 = arith.cmpi sge, %73, %448 : vector<1x8x128xi32>
    %450 = arith.extui %449 : vector<1x8x128xi1> to vector<1x8x128xi32>
    %451 = vector.shape_cast %450 : vector<1x8x128xi32> to vector<1x1x8x128xi32>
    %cst_123 = arith.constant dense<0> : vector<1xi32>
    %452 = vector.multi_reduction <add>, %451, %cst_123 [1, 2, 3] : vector<1x1x8x128xi32> to vector<1xi32>
    %453 = vector.shape_cast %452 : vector<1xi32> to vector<1x1x1x1xi32>
    %454 = vector.extract %453[0, 0, 0, 0] : i32 from vector<1x1x1x1xi32>
    %455 = vector.broadcast %440 : i32 to vector<1x8x128xi32>
    %456 = arith.cmpi sge, %73, %455 : vector<1x8x128xi32>
    %457 = arith.extui %456 : vector<1x8x128xi1> to vector<1x8x128xi32>
    %458 = vector.shape_cast %457 : vector<1x8x128xi32> to vector<1x1x8x128xi32>
    %cst_124 = arith.constant dense<0> : vector<1xi32>
    %459 = vector.multi_reduction <add>, %458, %cst_124 [1, 2, 3] : vector<1x1x8x128xi32> to vector<1xi32>
    %460 = vector.shape_cast %459 : vector<1xi32> to vector<1x1x1x1xi32>
    %461 = vector.extract %460[0, 0, 0, 0] : i32 from vector<1x1x1x1xi32>
    %462 = arith.cmpi sge, %461, %65 : i32
    %463 = arith.cmpi sge, %454, %65 : i32
    %464 = arith.cmpi sge, %447, %65 : i32
    %465 = arith.select %464, %436, %432 : i32
    %466 = arith.select %463, %438, %465 : i32
    %467 = arith.select %462, %440, %466 : i32
    %c11_i32 = arith.constant 11 : i32
    %c2_i32_125 = arith.constant 2 : i32
    %468 = arith.muli %c2_i32_125, %c11_i32 : i32
    %c28_i32_126 = arith.constant 28 : i32
    %469 = arith.subi %c28_i32_126, %468 : i32
    %c1_i32_127 = arith.constant 1 : i32
    %470 = arith.shli %c1_i32_127, %469 : i32
    %471 = arith.ori %467, %470 : i32
    %c2_i32_128 = arith.constant 2 : i32
    %472 = arith.shli %c2_i32_128, %469 : i32
    %473 = arith.ori %467, %472 : i32
    %c3_i32_129 = arith.constant 3 : i32
    %474 = arith.shli %c3_i32_129, %469 : i32
    %475 = arith.ori %467, %474 : i32
    %476 = vector.broadcast %471 : i32 to vector<1x8x128xi32>
    %477 = arith.cmpi sge, %73, %476 : vector<1x8x128xi32>
    %478 = arith.extui %477 : vector<1x8x128xi1> to vector<1x8x128xi32>
    %479 = vector.shape_cast %478 : vector<1x8x128xi32> to vector<1x1x8x128xi32>
    %cst_130 = arith.constant dense<0> : vector<1xi32>
    %480 = vector.multi_reduction <add>, %479, %cst_130 [1, 2, 3] : vector<1x1x8x128xi32> to vector<1xi32>
    %481 = vector.shape_cast %480 : vector<1xi32> to vector<1x1x1x1xi32>
    %482 = vector.extract %481[0, 0, 0, 0] : i32 from vector<1x1x1x1xi32>
    %483 = vector.broadcast %473 : i32 to vector<1x8x128xi32>
    %484 = arith.cmpi sge, %73, %483 : vector<1x8x128xi32>
    %485 = arith.extui %484 : vector<1x8x128xi1> to vector<1x8x128xi32>
    %486 = vector.shape_cast %485 : vector<1x8x128xi32> to vector<1x1x8x128xi32>
    %cst_131 = arith.constant dense<0> : vector<1xi32>
    %487 = vector.multi_reduction <add>, %486, %cst_131 [1, 2, 3] : vector<1x1x8x128xi32> to vector<1xi32>
    %488 = vector.shape_cast %487 : vector<1xi32> to vector<1x1x1x1xi32>
    %489 = vector.extract %488[0, 0, 0, 0] : i32 from vector<1x1x1x1xi32>
    %490 = vector.broadcast %475 : i32 to vector<1x8x128xi32>
    %491 = arith.cmpi sge, %73, %490 : vector<1x8x128xi32>
    %492 = arith.extui %491 : vector<1x8x128xi1> to vector<1x8x128xi32>
    %493 = vector.shape_cast %492 : vector<1x8x128xi32> to vector<1x1x8x128xi32>
    %cst_132 = arith.constant dense<0> : vector<1xi32>
    %494 = vector.multi_reduction <add>, %493, %cst_132 [1, 2, 3] : vector<1x1x8x128xi32> to vector<1xi32>
    %495 = vector.shape_cast %494 : vector<1xi32> to vector<1x1x1x1xi32>
    %496 = vector.extract %495[0, 0, 0, 0] : i32 from vector<1x1x1x1xi32>
    %497 = arith.cmpi sge, %496, %65 : i32
    %498 = arith.cmpi sge, %489, %65 : i32
    %499 = arith.cmpi sge, %482, %65 : i32
    %500 = arith.select %499, %471, %467 : i32
    %501 = arith.select %498, %473, %500 : i32
    %502 = arith.select %497, %475, %501 : i32
    %c12_i32 = arith.constant 12 : i32
    %c2_i32_133 = arith.constant 2 : i32
    %503 = arith.muli %c2_i32_133, %c12_i32 : i32
    %c28_i32_134 = arith.constant 28 : i32
    %504 = arith.subi %c28_i32_134, %503 : i32
    %c1_i32_135 = arith.constant 1 : i32
    %505 = arith.shli %c1_i32_135, %504 : i32
    %506 = arith.ori %502, %505 : i32
    %c2_i32_136 = arith.constant 2 : i32
    %507 = arith.shli %c2_i32_136, %504 : i32
    %508 = arith.ori %502, %507 : i32
    %c3_i32_137 = arith.constant 3 : i32
    %509 = arith.shli %c3_i32_137, %504 : i32
    %510 = arith.ori %502, %509 : i32
    %511 = vector.broadcast %506 : i32 to vector<1x8x128xi32>
    %512 = arith.cmpi sge, %73, %511 : vector<1x8x128xi32>
    %513 = arith.extui %512 : vector<1x8x128xi1> to vector<1x8x128xi32>
    %514 = vector.shape_cast %513 : vector<1x8x128xi32> to vector<1x1x8x128xi32>
    %cst_138 = arith.constant dense<0> : vector<1xi32>
    %515 = vector.multi_reduction <add>, %514, %cst_138 [1, 2, 3] : vector<1x1x8x128xi32> to vector<1xi32>
    %516 = vector.shape_cast %515 : vector<1xi32> to vector<1x1x1x1xi32>
    %517 = vector.extract %516[0, 0, 0, 0] : i32 from vector<1x1x1x1xi32>
    %518 = vector.broadcast %508 : i32 to vector<1x8x128xi32>
    %519 = arith.cmpi sge, %73, %518 : vector<1x8x128xi32>
    %520 = arith.extui %519 : vector<1x8x128xi1> to vector<1x8x128xi32>
    %521 = vector.shape_cast %520 : vector<1x8x128xi32> to vector<1x1x8x128xi32>
    %cst_139 = arith.constant dense<0> : vector<1xi32>
    %522 = vector.multi_reduction <add>, %521, %cst_139 [1, 2, 3] : vector<1x1x8x128xi32> to vector<1xi32>
    %523 = vector.shape_cast %522 : vector<1xi32> to vector<1x1x1x1xi32>
    %524 = vector.extract %523[0, 0, 0, 0] : i32 from vector<1x1x1x1xi32>
    %525 = vector.broadcast %510 : i32 to vector<1x8x128xi32>
    %526 = arith.cmpi sge, %73, %525 : vector<1x8x128xi32>
    %527 = arith.extui %526 : vector<1x8x128xi1> to vector<1x8x128xi32>
    %528 = vector.shape_cast %527 : vector<1x8x128xi32> to vector<1x1x8x128xi32>
    %cst_140 = arith.constant dense<0> : vector<1xi32>
    %529 = vector.multi_reduction <add>, %528, %cst_140 [1, 2, 3] : vector<1x1x8x128xi32> to vector<1xi32>
    %530 = vector.shape_cast %529 : vector<1xi32> to vector<1x1x1x1xi32>
    %531 = vector.extract %530[0, 0, 0, 0] : i32 from vector<1x1x1x1xi32>
    %532 = arith.cmpi sge, %531, %65 : i32
    %533 = arith.cmpi sge, %524, %65 : i32
    %534 = arith.cmpi sge, %517, %65 : i32
    %535 = arith.select %534, %506, %502 : i32
    %536 = arith.select %533, %508, %535 : i32
    %537 = arith.select %532, %510, %536 : i32
    %c13_i32 = arith.constant 13 : i32
    %c2_i32_141 = arith.constant 2 : i32
    %538 = arith.muli %c2_i32_141, %c13_i32 : i32
    %c28_i32_142 = arith.constant 28 : i32
    %539 = arith.subi %c28_i32_142, %538 : i32
    %c1_i32_143 = arith.constant 1 : i32
    %540 = arith.shli %c1_i32_143, %539 : i32
    %541 = arith.ori %537, %540 : i32
    %c2_i32_144 = arith.constant 2 : i32
    %542 = arith.shli %c2_i32_144, %539 : i32
    %543 = arith.ori %537, %542 : i32
    %c3_i32_145 = arith.constant 3 : i32
    %544 = arith.shli %c3_i32_145, %539 : i32
    %545 = arith.ori %537, %544 : i32
    %546 = vector.broadcast %541 : i32 to vector<1x8x128xi32>
    %547 = arith.cmpi sge, %73, %546 : vector<1x8x128xi32>
    %548 = arith.extui %547 : vector<1x8x128xi1> to vector<1x8x128xi32>
    %549 = vector.shape_cast %548 : vector<1x8x128xi32> to vector<1x1x8x128xi32>
    %cst_146 = arith.constant dense<0> : vector<1xi32>
    %550 = vector.multi_reduction <add>, %549, %cst_146 [1, 2, 3] : vector<1x1x8x128xi32> to vector<1xi32>
    %551 = vector.shape_cast %550 : vector<1xi32> to vector<1x1x1x1xi32>
    %552 = vector.extract %551[0, 0, 0, 0] : i32 from vector<1x1x1x1xi32>
    %553 = vector.broadcast %543 : i32 to vector<1x8x128xi32>
    %554 = arith.cmpi sge, %73, %553 : vector<1x8x128xi32>
    %555 = arith.extui %554 : vector<1x8x128xi1> to vector<1x8x128xi32>
    %556 = vector.shape_cast %555 : vector<1x8x128xi32> to vector<1x1x8x128xi32>
    %cst_147 = arith.constant dense<0> : vector<1xi32>
    %557 = vector.multi_reduction <add>, %556, %cst_147 [1, 2, 3] : vector<1x1x8x128xi32> to vector<1xi32>
    %558 = vector.shape_cast %557 : vector<1xi32> to vector<1x1x1x1xi32>
    %559 = vector.extract %558[0, 0, 0, 0] : i32 from vector<1x1x1x1xi32>
    %560 = vector.broadcast %545 : i32 to vector<1x8x128xi32>
    %561 = arith.cmpi sge, %73, %560 : vector<1x8x128xi32>
    %562 = arith.extui %561 : vector<1x8x128xi1> to vector<1x8x128xi32>
    %563 = vector.shape_cast %562 : vector<1x8x128xi32> to vector<1x1x8x128xi32>
    %cst_148 = arith.constant dense<0> : vector<1xi32>
    %564 = vector.multi_reduction <add>, %563, %cst_148 [1, 2, 3] : vector<1x1x8x128xi32> to vector<1xi32>
    %565 = vector.shape_cast %564 : vector<1xi32> to vector<1x1x1x1xi32>
    %566 = vector.extract %565[0, 0, 0, 0] : i32 from vector<1x1x1x1xi32>
    %567 = arith.cmpi sge, %566, %65 : i32
    %568 = arith.cmpi sge, %559, %65 : i32
    %569 = arith.cmpi sge, %552, %65 : i32
    %570 = arith.select %569, %541, %537 : i32
    %571 = arith.select %568, %543, %570 : i32
    %572 = arith.select %567, %545, %571 : i32
    %c14_i32 = arith.constant 14 : i32
    %c2_i32_149 = arith.constant 2 : i32
    %573 = arith.muli %c2_i32_149, %c14_i32 : i32
    %c28_i32_150 = arith.constant 28 : i32
    %574 = arith.subi %c28_i32_150, %573 : i32
    %c1_i32_151 = arith.constant 1 : i32
    %575 = arith.shli %c1_i32_151, %574 : i32
    %576 = arith.ori %572, %575 : i32
    %c2_i32_152 = arith.constant 2 : i32
    %577 = arith.shli %c2_i32_152, %574 : i32
    %578 = arith.ori %572, %577 : i32
    %c3_i32_153 = arith.constant 3 : i32
    %579 = arith.shli %c3_i32_153, %574 : i32
    %580 = arith.ori %572, %579 : i32
    %581 = vector.broadcast %576 : i32 to vector<1x8x128xi32>
    %582 = arith.cmpi sge, %73, %581 : vector<1x8x128xi32>
    %583 = arith.extui %582 : vector<1x8x128xi1> to vector<1x8x128xi32>
    %584 = vector.shape_cast %583 : vector<1x8x128xi32> to vector<1x1x8x128xi32>
    %cst_154 = arith.constant dense<0> : vector<1xi32>
    %585 = vector.multi_reduction <add>, %584, %cst_154 [1, 2, 3] : vector<1x1x8x128xi32> to vector<1xi32>
    %586 = vector.shape_cast %585 : vector<1xi32> to vector<1x1x1x1xi32>
    %587 = vector.extract %586[0, 0, 0, 0] : i32 from vector<1x1x1x1xi32>
    %588 = vector.broadcast %578 : i32 to vector<1x8x128xi32>
    %589 = arith.cmpi sge, %73, %588 : vector<1x8x128xi32>
    %590 = arith.extui %589 : vector<1x8x128xi1> to vector<1x8x128xi32>
    %591 = vector.shape_cast %590 : vector<1x8x128xi32> to vector<1x1x8x128xi32>
    %cst_155 = arith.constant dense<0> : vector<1xi32>
    %592 = vector.multi_reduction <add>, %591, %cst_155 [1, 2, 3] : vector<1x1x8x128xi32> to vector<1xi32>
    %593 = vector.shape_cast %592 : vector<1xi32> to vector<1x1x1x1xi32>
    %594 = vector.extract %593[0, 0, 0, 0] : i32 from vector<1x1x1x1xi32>
    %595 = vector.broadcast %580 : i32 to vector<1x8x128xi32>
    %596 = arith.cmpi sge, %73, %595 : vector<1x8x128xi32>
    %597 = arith.extui %596 : vector<1x8x128xi1> to vector<1x8x128xi32>
    %598 = vector.shape_cast %597 : vector<1x8x128xi32> to vector<1x1x8x128xi32>
    %cst_156 = arith.constant dense<0> : vector<1xi32>
    %599 = vector.multi_reduction <add>, %598, %cst_156 [1, 2, 3] : vector<1x1x8x128xi32> to vector<1xi32>
    %600 = vector.shape_cast %599 : vector<1xi32> to vector<1x1x1x1xi32>
    %601 = vector.extract %600[0, 0, 0, 0] : i32 from vector<1x1x1x1xi32>
    %602 = arith.cmpi sge, %601, %65 : i32
    %603 = arith.cmpi sge, %594, %65 : i32
    %604 = arith.cmpi sge, %587, %65 : i32
    %605 = arith.select %604, %576, %572 : i32
    %606 = arith.select %603, %578, %605 : i32
    %607 = arith.select %602, %580, %606 : i32
    %c15_i32 = arith.constant 15 : i32
    %608 = tpu.bitcast %73 : vector<1x8x128xi32> -> vector<1x8x128xf32>
    %609 = vector.broadcast %607 : i32 to vector<1x8x128xi32>
    %610 = arith.cmpi sgt, %73, %609 : vector<1x8x128xi32>
    %cst_157 = arith.constant 0.000000e+00 : f32
    %611 = vector.broadcast %cst_157 : f32 to vector<1x8x128xf32>
    %612 = arith.select %610, %608, %611 : vector<1x8x128xi1>, vector<1x8x128xf32>
    %613 = vector.shape_cast %612 : vector<1x8x128xf32> to vector<1x1x8x128xf32>
    %cst_158 = arith.constant dense<0.000000e+00> : vector<1xf32>
    %614 = vector.multi_reduction <add>, %613, %cst_158 [1, 2, 3] : vector<1x1x8x128xf32> to vector<1xf32>
    %615 = vector.shape_cast %614 : vector<1xf32> to vector<1x1x1x1xf32>
    %616 = vector.extract %615[0, 0, 0, 0] : f32 from vector<1x1x1x1xf32>
    %617 = arith.extui %610 : vector<1x8x128xi1> to vector<1x8x128xi32>
    %618 = arith.sitofp %617 : vector<1x8x128xi32> to vector<1x8x128xf32>
    %619 = vector.shape_cast %618 : vector<1x8x128xf32> to vector<1x1x8x128xf32>
    %cst_159 = arith.constant dense<0.000000e+00> : vector<1xf32>
    %620 = vector.multi_reduction <add>, %619, %cst_159 [1, 2, 3] : vector<1x1x8x128xf32> to vector<1xf32>
    %621 = vector.shape_cast %620 : vector<1xf32> to vector<1x1x1x1xf32>
    %622 = vector.extract %621[0, 0, 0, 0] : f32 from vector<1x1x1x1xf32>
    %623 = vector.broadcast %607 : i32 to vector<1x8x128xi32>
    %624 = arith.cmpi eq, %73, %623 : vector<1x8x128xi32>
    %cst_160 = arith.constant 0.000000e+00 : f32
    %625 = vector.broadcast %cst_160 : f32 to vector<1x8x128xf32>
    %626 = arith.select %624, %608, %625 : vector<1x8x128xi1>, vector<1x8x128xf32>
    %627 = vector.shape_cast %626 : vector<1x8x128xf32> to vector<1x1x8x128xf32>
    %cst_161 = arith.constant dense<0xFF800000> : vector<1xf32>
    %628 = vector.multi_reduction <maximumf>, %627, %cst_161 [1, 2, 3] : vector<1x1x8x128xf32> to vector<1xf32>
    %629 = vector.shape_cast %628 : vector<1xf32> to vector<1x1x1x1xf32>
    %630 = vector.extract %629[0, 0, 0, 0] : f32 from vector<1x1x1x1xf32>
    %631 = arith.subf %66, %622 : f32
    %cst_162 = arith.constant 0.000000e+00 : f32
    %632 = arith.maximumf %631, %cst_162 : f32
    %633 = arith.mulf %632, %630 : f32
    %634 = arith.addf %616, %633 : f32
    %c0_i32_163 = arith.constant 0 : i32
    %635 = arith.cmpi sgt, %65, %c0_i32_163 : i32
    %cst_164 = arith.constant 0.000000e+00 : f32
    %636 = arith.select %635, %634, %cst_164 : f32
    %637 = arith.addf %55, %636 : f32
    %638 = tpu.iota {dimensions = array<i32: 2>} : vector<1x1x128xi32>
    %c0_i32_165 = arith.constant 0 : i32
    %639 = vector.broadcast %c0_i32_165 : i32 to vector<1x1x128xi32>
    %640 = arith.cmpi eq, %638, %639 : vector<1x1x128xi32>
    %cst_166 = arith.constant 0.000000e+00 : f32
    %641 = vector.broadcast %23 : f32 to vector<1x1x128xf32>
    %642 = vector.broadcast %cst_166 : f32 to vector<1x1x128xf32>
    %643 = arith.select %640, %641, %642 : vector<1x1x128xi1>, vector<1x1x128xf32>
    %c1_i32_167 = arith.constant 1 : i32
    %644 = vector.broadcast %c1_i32_167 : i32 to vector<1x1x128xi32>
    %645 = arith.cmpi eq, %638, %644 : vector<1x1x128xi32>
    %cst_168 = arith.constant 0.000000e+00 : f32
    %646 = vector.broadcast %637 : f32 to vector<1x1x128xf32>
    %647 = vector.broadcast %cst_168 : f32 to vector<1x1x128xf32>
    %648 = arith.select %645, %646, %647 : vector<1x1x128xi1>, vector<1x1x128xf32>
    %649 = arith.addf %643, %648 : vector<1x1x128xf32>
    %c2_i32_169 = arith.constant 2 : i32
    %650 = vector.broadcast %c2_i32_169 : i32 to vector<1x1x128xi32>
    %651 = arith.cmpi eq, %638, %650 : vector<1x1x128xi32>
    %cst_170 = arith.constant 0.000000e+00 : f32
    %652 = vector.broadcast %64 : f32 to vector<1x1x128xf32>
    %653 = vector.broadcast %cst_170 : f32 to vector<1x1x128xf32>
    %654 = arith.select %651, %652, %653 : vector<1x1x128xi1>, vector<1x1x128xf32>
    %655 = arith.addf %649, %654 : vector<1x1x128xf32>
    %c0_171 = arith.constant 0 : index
    %c0_172 = arith.constant 0 : index
    %c0_173 = arith.constant 0 : index
    %656 = vector.load %arg5[%c0_171, %c0_172, %c0_173] : memref<1x1x128xf32, #tpu.memory_space<vmem>>, vector<1x1x128xf32>
    tpu.vector_store %arg5[%c0_171, %c0_172, %c0_173], %655 {strides = array<i32>} : memref<1x1x128xf32, #tpu.memory_space<vmem>>, vector<1x1x128xf32>,
    return
  }
  func.func @transform_0(%arg0: i32) -> (i32, i32, i32, i32) {
    %c0_i32 = arith.constant 0 : i32
    %c0_i32_0 = arith.constant 0 : i32
    %c0_i32_1 = arith.constant 0 : i32
    %c0_i32_2 = arith.constant 0 : i32
    return %arg0, %c0_i32, %c0_i32_0, %c0_i32_1 : i32, i32, i32, i32
  }
  func.func @transform_1(%arg0: i32) -> (i32, i32, i32, i32) {
    %c0_i32 = arith.constant 0 : i32
    %c0_i32_0 = arith.constant 0 : i32
    %c0_i32_1 = arith.constant 0 : i32
    %c0_i32_2 = arith.constant 0 : i32
    return %arg0, %c0_i32, %c0_i32_0, %c0_i32_1 : i32, i32, i32, i32
  }
  func.func @transform_2(%arg0: i32) -> (i32, i32, i32, i32) {
    %c0_i32 = arith.constant 0 : i32
    %c0_i32_0 = arith.constant 0 : i32
    %c0_i32_1 = arith.constant 0 : i32
    %c0_i32_2 = arith.constant 0 : i32
    return %arg0, %c0_i32, %c0_i32_0, %c0_i32_1 : i32, i32, i32, i32
  }
  func.func @transform_3(%arg0: i32) -> (i32, i32, i32) {
    %c0_i32 = arith.constant 0 : i32
    %c0_i32_0 = arith.constant 0 : i32
    %c0_i32_1 = arith.constant 0 : i32
    return %arg0, %c0_i32, %c0_i32_0 : i32, i32, i32
  }
  func.func @transform_4(%arg0: i32) -> (i32, i32, i32) {
    %c0_i32 = arith.constant 0 : i32
    %c0_i32_0 = arith.constant 0 : i32
    %c0_i32_1 = arith.constant 0 : i32
    return %arg0, %c0_i32, %c0_i32_0 : i32, i32, i32
  }
}

</mosaic_0001>

<bundles_post_ra>
// kernel: ssd_loss_pallas.1
= control target key start
LH: loop header
LB: loop body
LE: loop exit
PB: predicated region body
PF: predicated region fallthrough
CT: control target
= control target key end

     0   :  { %s1910_s15 = smov 0   ;;  %s2483_s0 = inlined_call_operand.vmem [shape: f32[2,4,8,128], index: 0, kind: input, shape index: {}]   ;;  %s2484_s1 = inlined_call_operand.vmem [shape: f32[2,4,8,128], index: 1, kind: input, shape index: {}]   ;;  %s2485_s2 = inlined_call_operand.vmem [shape: f32[2,8,8,128], index: 2, kind: input, shape index: {}]   ;;  %s2486_s3 = inlined_call_operand.vmem [shape: s32[2,8,128], index: 3, kind: input, shape index: {}]   ;;  %s2487_s4 = inlined_call_operand.vmem [shape: f32[2,1,128], index: 4, kind: output, shape index: {}]  }
   0x1 LB: > { %s1716_s16 = sadd.s32 4294967295, %s1880_s15   ;;  %p1720_p0 = scmp.ge.s32.totalorder %s1880_s15, 1  ;;  %s1880_s15 = sphi %s1910_s15, %s14_s15  }
   0x2   : > { %p191_p1 = scmp.lt.s32.totalorder %s1880_s15, 3 }
   0x4   : > { %p192_p2 = pnand %p1720_p0, %p191_p1 }
   0x5   : > { %p229_p3 = scmp.lt.s32.totalorder (!%p192_p2), %s1716_s16, 1  ;;  %v1882_v6 = vmov (!%p192_p2), 0   ;;  %v1883_v42 = vmov (!%p192_p2), 0.0  }
   0x6   : > { %195 = sbr.rel (%p192_p2) target bundleno = 3961 (0xf79), region = 36 }
   0xd   : > { %s2497_s16 = smov (!%p229_p3, %s1716_s16), 1 }
   0xe   : > { %s1727_s17 = sshll.u32 %s2497_s16, 3  ;;  %s1738_s18 = sshll.u32 %s2497_s16, 6 }
   0xf   : > { %s247_s21 = scalar_lea.vmem %s2486_s3, %s1727_s17  ;;  %s243_s24 = scalar_lea.vmem %s2485_s2, %s1738_s18 }
  0x10   : > { %v1928_v0 = vld [vmem:[%s247_s21] sm:$0xff]  ;;  %v1932_v2 = vld [vmem:[%s243_s24 + $0x8] sm:$0xff]  ;;  %v1935_v3 = vld [vmem:[%s243_s24 + $0x10] sm:$0xff]  ;;  %s1736_s25 = sshll.u32 %s2497_s16, 5 }
  0x11   : > { %v1930_v1 = vld [vmem:[%s243_s24] sm:$0xff]  ;;  %vm252_vm0 = vcmp.gt.s32.totalorder %v1928_v0, 0  ;;  %v1937_v4 = vld [vmem:[%s243_s24 + $0x18] sm:$0xff]  ;;  %v1944_v8 = vld [vmem:[%s243_s24 + $0x28] sm:$0xff]  ;;  %s233_s28 = scalar_lea.vmem %s2483_s0, %s1736_s25  ;;  %s238_s5 = scalar_lea.vmem %s2484_s1, %s1736_s25  ;;  %vm384_vm14 = vcmp.lt.s32.totalorder %v1928_v0, 0  ;;  %vm426_vm15 = vcmp.eq.s32.totalorder %v1928_v0, 0 }
  0x12   : > { %v1939_v5 = vld [vmem:[%s243_s24 + $0x20] sm:$0xff]  ;;  %v253_v7 = vsel %vm252_vm0, 1, %v1882_v6  ;;  %v1946_v9 = vld [vmem:[%s243_s24 + $0x30] sm:$0xff]  ;;  %v1948_v10 = vld [vmem:[%s243_s24 + $0x38] sm:$0xff]  ;;  %v316_v13 = vmax.f32 %v1932_v2, %v1944_v8  ;;  %v357_v17 = vsel %vm252_vm0, %v1928_v0, 0  ;;  %v1985_v43 = vsel %vm252_vm0, 1.0, %v1883_v42 }
  0x13   : > { %v397_v11 = vshrl.u32 %v253_v7, 16  ;;  %v315_v12 = vmax.f32 %v1930_v1, %v1939_v5  ;;  %v317_v14 = vmax.f32 %v1935_v3, %v1946_v9  ;;  %v318_v15 = vmax.f32 %v1937_v4, %v1948_v10  ;;  %v255_v21 = vld [vmem:[%s233_s28] sm:$0xff]  ;;  %v256_v23 = vld [vmem:[%s233_s28 + $0x8] sm:$0xff]  ;;  %v257_v31 = vld [vmem:[%s233_s28 + $0x10] sm:$0xff] }
  0x14   : > { %v396_v16 = vand.u32 65535, %v253_v7  ;;  %v259_v24 = vld [vmem:[%s238_s5] sm:$0xff]  ;;  %v260_v25 = vld [vmem:[%s238_s5 + $0x8] sm:$0xff]  ;;  %vm358_vm1 = vcmp.lt.s32.totalorder %v357_v17, 7  ;;  %v261_v32 = vld [vmem:[%s238_s5 + $0x10] sm:$0xff] }
  0x15   : > { %v399_v18 = vcvt.s32.f32 %v397_v11  ;;  %v319_v19 = vmax.f32 %v315_v12, %v316_v13  ;;  %v320_v20 = vmax.f32 %v317_v14, %v318_v15  ;;  %v258_v34 = vld [vmem:[%s233_s28 + $0x18] sm:$0xff]  ;;  %v263_v36 = vsub.f32 %v255_v21, %v259_v24 }
  0x16   : > { %v398_v26 = vcvt.s32.f32 %v396_v16  ;;  %v262_v35 = vld [vmem:[%s238_s5 + $0x18] sm:$0xff]  ;;  %v264_v37 = vsub.f32 %v256_v23, %v260_v25  ;;  %v1988_v44 = vsel %vm358_vm1, %v357_v17, 7  ;;  %v265_v46 = vsub.f32 %v257_v31, %v261_v32 }
  0x17   : > { %402 = vadd.xlane.f32.xlu0 %v399_v18  ;;  %v1968_v22 = vmax.f32 %v319_v19, %v320_v20  ;;  %v266_v50 = vsub.f32 %v258_v34, %v262_v35  ;;  %v267_v51 = vand.u32 2147483647, %v263_v36  ;;  %v275_v55 = vmul.f32 0.5, %v263_v36 }
  0x18   : > { %v268_v52 = vand.u32 2147483647, %v264_v37  ;;  %v269_v54 = vand.u32 2147483647, %v265_v46  ;;  %vm360_vm2 = vcmp.eq.s32.totalorder %v1988_v44, 0  ;;  %vm361_vm3 = vcmp.eq.s32.totalorder %v1988_v44, 1 }
  0x19   : > { %v322_v27 = vsub.f32 %v1930_v1, %v1968_v22  ;;  %v323_v28 = vsub.f32 %v1932_v2, %v1968_v22  ;;  %v324_v29 = vsub.f32 %v1935_v3, %v1968_v22  ;;  %v325_v30 = vsub.f32 %v1937_v4, %v1968_v22 }
  0x1a   : > { %v326_v33 = vsub.f32 %v1939_v5, %v1968_v22  ;;  %v327_v38 = vsub.f32 %v1944_v8, %v1968_v22  ;;  %v328_v47 = vsub.f32 %v1946_v9, %v1968_v22  ;;  %v329_v48 = vsub.f32 %v1948_v10, %v1968_v22 }
  0x1b   : > { %v330_v39 = vmul.f32 1.442695, %v322_v27  ;;  %v332_v40 = vmul.f32 1.442695, %v323_v28  ;;  %v334_v41 = vmul.f32 1.442695, %v324_v29  ;;  %400 = vadd.xlane.f32.xlu0 %v398_v26  ;;  %v279_v11 = vmul.f32 %v275_v55, %v263_v36 }
  0x1c   : > { %v336_v45 = vmul.f32 1.442695, %v325_v30  ;;  %v338_v49 = vmul.f32 1.442695, %v326_v33  ;;  %v340_v53 = vmul.f32 1.442695, %v327_v38 }
  0x1d   : > { %1856 = vpow2.f32 %v330_v39  ;;  %v270_v56 = vand.u32 2147483647, %v266_v50  ;;  %v342_v57 = vmul.f32 1.442695, %v328_v47  ;;  %v344_v58 = vmul.f32 1.442695, %v329_v48 }
  0x1e   : > { %1858 = vpow2.f32 %v332_v40  ;;  %vm1996_vm4 = vcmp.lt.f32.partialorder %v267_v51, 1.0  ;;  %v276_v60 = vmul.f32 0.5, %v264_v37  ;;  %vm2000_vm5 = vcmp.lt.f32.partialorder %v268_v52, 1.0 }
  0x1f   : > { %1860 = vpow2.f32 %v334_v41  ;;  %v277_v62 = vmul.f32 0.5, %v265_v46  ;;  %v278_v63 = vmul.f32 0.5, %v266_v50  ;;  %vm2004_vm6 = vcmp.lt.f32.partialorder %v269_v54, 1.0 }
  0x20   : > { %1862 = vpow2.f32 %v336_v45  ;;  %v280_v12 = vmul.f32 %v276_v60, %v264_v37  ;;  %vm2008_vm7 = vcmp.lt.f32.partialorder %v270_v56, 1.0  ;;  %v1729_v16 = vadd.f32 -0.5, %v267_v51 }
  0x21   : > { %1864 = vpow2.f32 %v338_v49  ;;  %v281_v14 = vmul.f32 %v277_v62, %v265_v46  ;;  %v282_v15 = vmul.f32 %v278_v63, %v266_v50  ;;  %v1730_v17 = vadd.f32 -0.5, %v268_v52 }
  0x22   : > { %1866 = vpow2.f32 %v340_v53  ;;  %v1731_v18 = vadd.f32 -0.5, %v269_v54  ;;  %v1732_v19 = vadd.f32 -0.5, %v270_v56  ;;  %v368_v20 = vsel %vm360_vm2, %v1930_v1, 0.0 }
  0x23   : > { %1868 = vpow2.f32 %v342_v57  ;;  %v369_v21 = vsel %vm361_vm3, %v1932_v2, 0.0  ;;  %v287_v23 = vsel %vm1996_vm4, %v279_v11, %v1729_v16  ;;  %v288_v25 = vsel %vm2000_vm5, %v280_v12, %v1730_v17 }
  0x24   : > { %v289_v26 = vsel %vm2004_vm6, %v281_v14, %v1731_v18  ;;  %v290_v27 = vsel %vm2008_vm7, %v282_v15, %v1732_v19  ;;  %v291_v28 = vmul.f32 %v1985_v43, %v287_v23  ;;  %vm362_vm8 = vcmp.eq.s32.totalorder %v1988_v44, 2 }
  0x25   : > { %1870 = vpow2.f32 %v344_v58  ;;  %v292_v2 = vmul.f32 %v1985_v43, %v288_v25  ;;  %v293_v29 = vmul.f32 %v1985_v43, %v289_v26  ;;  %v376_v33 = vadd.f32 %v369_v21, %v368_v20 }
  0x26   : > { %v294_v34 = vmul.f32 %v1985_v43, %v290_v27  ;;  %v370_v37 = vsel %vm362_vm8, %v1935_v3, 0.0  ;;  %vm363_vm9 = vcmp.eq.s32.totalorder %v1988_v44, 3  ;;  %vm364_vm10 = vcmp.eq.s32.totalorder %v1988_v44, 4 }
  0x27   : > { %v1857_v24 = vpop.eup %1856  ;;  %v295_v35 = vadd.f32 %v292_v2, %v291_v28  ;;  %v377_v45 = vadd.f32 %v376_v33, %v370_v37  ;;  %v371_v48 = vsel %vm363_vm9, %v1937_v4, 0.0  ;;  %v372_v3 = vsel %vm364_vm10, %v1939_v5, 0.0 }
  0x28   : > { %v1859_v1 = vpop.eup %1858  ;;  %vm365_vm11 = vcmp.eq.s32.totalorder %v1988_v44, 5  ;;  %vm366_vm12 = vcmp.eq.s32.totalorder %v1988_v44, 6  ;;  %vm367_vm13 = vcmp.eq.s32.totalorder %v1988_v44, 7 }
  0x29   : > { %v1861_v30 = vpop.eup %1860  ;;  %v346_v31 = vadd.f32 %v1859_v1, %v1857_v24  ;;  %v296_v39 = vadd.f32 %v295_v35, %v293_v29  ;;  %v378_v52 = vadd.f32 %v377_v45, %v371_v48  ;;  %v373_v56 = vsel %vm365_vm11, %v1944_v8, 0.0 }
  0x2a   : > { %v1863_v32 = vpop.eup %1862  ;;  %v374_v57 = vsel %vm366_vm12, %v1946_v9, 0.0  ;;  %v375_v59 = vsel %vm367_vm13, %v1948_v10, 0.0 }
  0x2b   : > { %v347_v36 = vadd.f32 %v1861_v30, %v346_v31  ;;  %v1865_v38 = vpop.eup %1864  ;;  %v297_v46 = vadd.f32 %v296_v39, %v294_v34  ;;  %v379_v55 = vadd.f32 %v378_v52, %v372_v3 }
  0x2c   : > { %v1867_v40 = vpop.eup %1866 }
  0x2d   : > { %v348_v41 = vadd.f32 %v1863_v32, %v347_v36  ;;  %v1869_v49 = vpop.eup %1868  ;;  %298 = vadd.xlane.f32.xlu0 %v297_v46  ;;  %v380_v4 = vadd.f32 %v379_v55, %v373_v56 }
  0x2f   : > { %v349_v47 = vadd.f32 %v1865_v38, %v348_v41  ;;  %v1871_v51 = vpop.eup %1870  ;;  %v381_v58 = vadd.f32 %v380_v4, %v374_v57 }
  0x31   : > { %v350_v50 = vadd.f32 %v1867_v40, %v349_v47  ;;  %415 = vadd.xlane.f32.xlu0 %v1985_v43  ;;  %v382_v61 = vadd.f32 %v381_v58, %v375_v59 }
  0x33   : > { %v351_v53 = vadd.f32 %v1869_v49, %v350_v50 }
  0x35   : > { %v352_v54 = vadd.f32 %v1871_v51, %v351_v53 }
  0x37   : > { %1872 = vlog2.f32 %v352_v54 }
  0x41   : > { %v1873_v5 = vpop.eup %1872 }
  0x42   : > { %v354_v60 = vmul.f32 0.6931472, %v1873_v5 }
  0x44   : > { %v355_v43 = vadd.f32 %v354_v60, %v1968_v22 }
  0x46   : > { %v383_v8 = vsub.f32 %v355_v43, %v382_v61 }
  0x48   : > { %v385_v62 = vsel %vm384_vm14, 0.0, %v383_v8 }
  0x49   : > { %v427_v63 = vsel %vm426_vm15, %v385_v62, 0.0  ;;  %v386_v22 = vsel %vm252_vm0, %v385_v62, 0.0 }
  0x4a   : > { %v2046_v7 = vmax.f32 %v427_v63, 0.0 }
  0x4c   : > { %vm430_vm1 = vcmp.ge.s32.totalorder %v2046_v7, 1073741824 }
  0x4d   : > { %v431_v9 = vsel %vm430_vm1, 1, %v1882_v6 }
  0x4e   : > { %v433_v44 = vshrl.u32 %v431_v9, 16  ;;  %v432_v10 = vand.u32 65535, %v431_v9 }
  0x50   : > { %v435_v11 = vcvt.s32.f32 %v433_v44  ;;  %v434_v12 = vcvt.s32.f32 %v432_v10 }
  0x52   : > { %438 = vadd.xlane.f32.xlu1 %v435_v11 }
  0x56   : > { %436 = vadd.xlane.f32.xlu1 %v434_v12 }
  0x5a   : > { %387 = vadd.xlane.f32.xlu1 %v386_v22 }
  0xa4   : > { %v403_v13 = vpop.xlane.xlu0 %402 }
  0xa5   : > { %v405_v23 = vcvt.f32.s32 %v403_v13 }
  0xa7   : > { %v406_v24 = vshll.u32 %v405_v23, 16 }
  0xa8   : > { %v401_v14 = vpop.xlane.xlu0 %400 }
  0xa9   : > { %v404_v25 = vcvt.f32.s32 %v401_v14 }
  0xab   : > { %v407_v26 = vadd.s32 %v406_v24, %v404_v25 }
  0xad   : > { %v408_v28 = vrot.slane %v407_v26, 4 }
  0xaf   : > { %v409_v29 = vadd.s32 %v408_v28, %v407_v26 }
  0xb1   : > { %v410_v36 = vrot.slane %v409_v29, 2 }
  0xb3   : > { %v411_v45 = vadd.s32 %v410_v36, %v409_v29 }
  0xb5   : > { %v412_v51 = vrot.slane %v411_v45, 1 }
  0xb7   : > { %v413_v55 = vadd.s32 %v412_v51, %v411_v45 }
  0xba   : > { %v299_v15 = vpop.xlane.xlu0 %298 }
  0xbb   : > { %v300_v16 = vrot.slane %v299_v15, 4 }
  0xbd   : > { %v301_v17 = vadd.f32 %v300_v16, %v299_v15 }
  0xbe   : > { %v416_v27 = vpop.xlane.xlu0 %415 }
  0xbf   : > { %v302_v18 = vrot.slane %v301_v17, 2  ;;  %v417_v2 = vrot.slane %v416_v27, 4 }
  0xc1   : > { %v303_v19 = vadd.f32 %v302_v18, %v301_v17  ;;  %v418_v33 = vadd.f32 %v417_v2, %v416_v27 }
  0xc3   : > { %v304_v20 = vrot.slane %v303_v19, 1  ;;  %v419_v38 = vrot.slane %v418_v33, 2 }
  0xc5   : > { %v305_v21 = vadd.f32 %v304_v20, %v303_v19  ;;  %v420_v47 = vadd.f32 %v419_v38, %v418_v33 }
  0xc7   : > { %1739 = vpush %v305_v21  ;;  %v421_v53 = vrot.slane %v420_v47, 1 }
  0xc9   : > { %v422_v4 = vadd.f32 %v421_v53, %v420_v47 }
  0xdf   : > { %v439_v1 = vpop.xlane.xlu1 %438 }
  0xe0   : > { %v441_v0 = vcvt.f32.s32 %v439_v1 }
  0xe2   : > { %v442_v31 = vshll.u32 %v441_v0, 16 }
  0xe3   : > { %v437_v30 = vpop.xlane.xlu1 %436 }
  0xe4   : > { %v440_v32 = vcvt.f32.s32 %v437_v30 }
  0xe6   : > { %v443_v34 = vadd.s32 %v442_v31, %v440_v32 }
  0xe7   : > { %v388_v35 = vpop.xlane.xlu1 %387 }
  0xe8   : > { %v444_v37 = vrot.slane %v443_v34, 4  ;;  %v389_v39 = vrot.slane %v388_v35, 4 }
  0xea   : > { %v445_v40 = vadd.s32 %v444_v37, %v443_v34  ;;  %v390_v41 = vadd.f32 %v389_v39, %v388_v35 }
  0xec   : > { %v391_v46 = vrot.slane %v390_v41, 2  ;;  %v446_v48 = vrot.slane %v445_v40, 2 }
  0xee   : > { %v392_v49 = vadd.f32 %v391_v46, %v390_v41  ;;  %v447_v50 = vadd.s32 %v446_v48, %v445_v40 }
  0xf0   : > { %v393_v52 = vrot.slane %v392_v49, 1  ;;  %v448_v3 = vrot.slane %v447_v50, 1 }
  0xf2   : > { %v394_v54 = vadd.f32 %v393_v52, %v392_v49  ;;  %v449_v56 = vadd.s32 %v448_v3, %v447_v50 }
  0xf4   : > { %1741 = vpush %v394_v54 }
  0xf5   : > { %1743 = vpush %v413_v55 }
  0xf6   : > { %1745 = vpush %v422_v4 }
  0xf7   : > { %1747 = vpush %v449_v56 }
  0xf8   : > { %s2052_s6 = spop %1739 }
 0x125   : > { %s2054_s7 = spop %1741 }
 0x126   : > { %s1744_s8 = spop %1743 }
 0x127   : > { %s2056_s9 = smul.u32 3, %s1744_s8  ;;  %s2058_s10 = spop %1745 }
 0x128   : > { %s1748_s11 = spop %1747 }
 0x129   : > { %p451_p4 = scmp.ge.s32.totalorder %s1748_s11, %s2056_s9 }
 0x12b   : > { %s2061_s12 = scalar_select %p451_p4, 1073741824, 0 }
 0x12d   : > { %s453_s13 = sor.u32 268435456, %s2061_s12  ;;  %s454_s14 = sor.u32 536870912, %s2061_s12 }
 0x12e   : > { %v456_v57 = vstv %s453_s13  ;;  %v478_v58 = vstv %s454_s14  ;;  %s455_s17 = sor.u32 805306368, %s2061_s12 }
 0x12f   : > { %vm457_vm0 = vcmp.ge.s32.totalorder %v2046_v7, %v456_v57  ;;  %vm479_vm2 = vcmp.ge.s32.totalorder %v2046_v7, %v478_v58  ;;  %v500_v59 = vstv %s455_s17 }
 0x130   : > { %v458_v5 = vsel %vm457_vm0, 1, %v1882_v6  ;;  %v480_v60 = vsel %vm479_vm2, 1, %v1882_v6  ;;  %vm501_vm3 = vcmp.ge.s32.totalorder %v2046_v7, %v500_v59 }
 0x131   : > { %v460_v61 = vshrl.u32 %v458_v5, 16  ;;  %v459_v43 = vand.u32 65535, %v458_v5  ;;  %v482_v63 = vshrl.u32 %v480_v60, 16  ;;  %v481_v9 = vand.u32 65535, %v480_v60 }
 0x132   : > { %v502_v44 = vsel %vm501_vm3, 1, %v1882_v6 }
 0x133   : > { %v462_v8 = vcvt.s32.f32 %v460_v61  ;;  %v461_v62 = vcvt.s32.f32 %v459_v43  ;;  %v484_v10 = vcvt.s32.f32 %v482_v63  ;;  %v483_v11 = vcvt.s32.f32 %v481_v9 }
 0x134   : > { %v504_v12 = vshrl.u32 %v502_v44, 16  ;;  %v503_v22 = vand.u32 65535, %v502_v44 }
 0x135   : > { %465 = vadd.xlane.f32.xlu1 %v462_v8  ;;  %463 = vadd.xlane.f32.xlu0 %v461_v62 }
 0x136   : > { %v506_v13 = vcvt.s32.f32 %v504_v12  ;;  %v505_v14 = vcvt.s32.f32 %v503_v22 }
 0x139   : > { %487 = vadd.xlane.f32.xlu1 %v484_v10  ;;  %485 = vadd.xlane.f32.xlu0 %v483_v11 }
 0x13d   : > { %509 = vadd.xlane.f32.xlu1 %v506_v13  ;;  %507 = vadd.xlane.f32.xlu0 %v505_v14 }
 0x1c2   : > { %v466_v15 = vpop.xlane.xlu1 %465  ;;  %v464_v16 = vpop.xlane.xlu0 %463 }
 0x1c3   : > { %v468_v17 = vcvt.f32.s32 %v466_v15  ;;  %v467_v19 = vcvt.f32.s32 %v464_v16 }
 0x1c5   : > { %v469_v18 = vshll.u32 %v468_v17, 16 }
 0x1c6   : > { %v488_v20 = vpop.xlane.xlu1 %487  ;;  %v486_v21 = vpop.xlane.xlu0 %485 }
 0x1c7   : > { %v470_v23 = vadd.s32 %v469_v18, %v467_v19  ;;  %v490_v24 = vcvt.f32.s32 %v488_v20  ;;  %v489_v27 = vcvt.f32.s32 %v486_v21 }
 0x1c9   : > { %v471_v25 = vrot.slane %v470_v23, 4  ;;  %v491_v26 = vshll.u32 %v490_v24, 16 }
 0x1ca   : > { %v510_v28 = vpop.xlane.xlu1 %509  ;;  %v508_v1 = vpop.xlane.xlu0 %507 }
 0x1cb   : > { %v472_v0 = vadd.s32 %v471_v25, %v470_v23  ;;  %v492_v2 = vadd.s32 %v491_v26, %v489_v27  ;;  %v512_v29 = vcvt.f32.s32 %v510_v28  ;;  %v511_v32 = vcvt.f32.s32 %v508_v1 }
 0x1cd   : > { %v493_v30 = vrot.slane %v492_v2, 4  ;;  %v513_v31 = vshll.u32 %v512_v29, 16  ;;  %v473_v33 = vrot.slane %v472_v0, 2 }
 0x1cf   : > { %v494_v34 = vadd.s32 %v493_v30, %v492_v2  ;;  %v514_v35 = vadd.s32 %v513_v31, %v511_v32  ;;  %v474_v36 = vadd.s32 %v473_v33, %v472_v0 }
 0x1d1   : > { %v515_v37 = vrot.slane %v514_v35, 4  ;;  %v475_v38 = vrot.slane %v474_v36, 1  ;;  %v495_v39 = vrot.slane %v494_v34, 2 }
 0x1d3   : > { %v516_v40 = vadd.s32 %v515_v37, %v514_v35  ;;  %v476_v41 = vadd.s32 %v475_v38, %v474_v36  ;;  %v496_v45 = vadd.s32 %v495_v39, %v494_v34 }
 0x1d5   : > { %1749 = vpush %v476_v41  ;;  %v497_v46 = vrot.slane %v496_v45, 1  ;;  %v517_v47 = vrot.slane %v516_v40, 2 }
 0x1d7   : > { %v498_v48 = vadd.s32 %v497_v46, %v496_v45  ;;  %v518_v49 = vadd.s32 %v517_v47, %v516_v40 }
 0x1d9   : > { %1751 = vpush %v498_v48  ;;  %v519_v50 = vrot.slane %v518_v49, 1 }
 0x1db   : > { %v520_v51 = vadd.s32 %v519_v50, %v518_v49 }
 0x1dd   : > { %1753 = vpush %v520_v51 }
 0x206   : > { %s1750_s18 = spop %1749 }
 0x207   : > { %p524_p5 = scmp.ge.s32.totalorder %s1750_s18, %s2056_s9 }
 0x209   : > { %s2499_s13 = smov (!%p524_p5, %s453_s13), %s2061_s12 }
 0x20a   : > { %s1752_s19 = spop %1751 }
 0x20b   : > { %p523_p6 = scmp.ge.s32.totalorder %s1752_s19, %s2056_s9 }
 0x20d   : > { %s2501_s14 = smov (!%p523_p6, %s454_s14), %s2499_s13 }
 0x20e   : > { %s1754_s20 = spop %1753 }
 0x20f   : > { %p522_p7 = scmp.ge.s32.totalorder %s1754_s20, %s2056_s9 }
 0x211   : > { %s2503_s17 = smov (!%p522_p7, %s455_s17), %s2501_s14 }
 0x212   : > { %s528_s21 = sor.u32 67108864, %s2503_s17  ;;  %s529_s22 = sor.u32 134217728, %s2503_s17 }
 0x213   : > { %v531_v52 = vstv %s528_s21  ;;  %v553_v53 = vstv %s529_s22  ;;  %s530_s23 = sor.u32 201326592, %s2503_s17 }
 0x214   : > { %vm532_vm4 = vcmp.ge.s32.totalorder %v2046_v7, %v531_v52  ;;  %vm554_vm5 = vcmp.ge.s32.totalorder %v2046_v7, %v553_v53  ;;  %v575_v3 = vstv %s530_s23 }
 0x215   : > { %v533_v54 = vsel %vm532_vm4, 1, %v1882_v6  ;;  %v555_v55 = vsel %vm554_vm5, 1, %v1882_v6  ;;  %vm576_vm6 = vcmp.ge.s32.totalorder %v2046_v7, %v575_v3 }
 0x216   : > { %v535_v56 = vshrl.u32 %v533_v54, 16  ;;  %v534_v4 = vand.u32 65535, %v533_v54  ;;  %v557_v59 = vshrl.u32 %v555_v55, 16  ;;  %v556_v5 = vand.u32 65535, %v555_v55 }
 0x217   : > { %v577_v60 = vsel %vm576_vm6, 1, %v1882_v6 }
 0x218   : > { %v537_v57 = vcvt.s32.f32 %v535_v56  ;;  %v536_v58 = vcvt.s32.f32 %v534_v4  ;;  %v559_v61 = vcvt.s32.f32 %v557_v59  ;;  %v558_v43 = vcvt.s32.f32 %v556_v5 }
 0x219   : > { %v579_v8 = vshrl.u32 %v577_v60, 16  ;;  %v578_v62 = vand.u32 65535, %v577_v60 }
 0x21a   : > { %540 = vadd.xlane.f32.xlu1 %v537_v57  ;;  %538 = vadd.xlane.f32.xlu0 %v536_v58 }
 0x21b   : > { %v581_v63 = vcvt.s32.f32 %v579_v8  ;;  %v580_v9 = vcvt.s32.f32 %v578_v62 }
 0x21e   : > { %562 = vadd.xlane.f32.xlu1 %v559_v61  ;;  %560 = vadd.xlane.f32.xlu0 %v558_v43 }
 0x222   : > { %584 = vadd.xlane.f32.xlu1 %v581_v63  ;;  %582 = vadd.xlane.f32.xlu0 %v580_v9 }
 0x2a7   : > { %v541_v44 = vpop.xlane.xlu1 %540  ;;  %v539_v10 = vpop.xlane.xlu0 %538 }
 0x2a8   : > { %v543_v11 = vcvt.f32.s32 %v541_v44  ;;  %v542_v22 = vcvt.f32.s32 %v539_v10 }
 0x2aa   : > { %v544_v12 = vshll.u32 %v543_v11, 16 }
 0x2ab   : > { %v563_v13 = vpop.xlane.xlu1 %562  ;;  %v561_v14 = vpop.xlane.xlu0 %560 }
 0x2ac   : > { %v545_v15 = vadd.s32 %v544_v12, %v542_v22  ;;  %v565_v16 = vcvt.f32.s32 %v563_v13  ;;  %v564_v19 = vcvt.f32.s32 %v561_v14 }
 0x2ae   : > { %v546_v17 = vrot.slane %v545_v15, 4  ;;  %v566_v18 = vshll.u32 %v565_v16, 16 }
 0x2af   : > { %v585_v20 = vpop.xlane.xlu1 %584  ;;  %v583_v21 = vpop.xlane.xlu0 %582 }
 0x2b0   : > { %v547_v23 = vadd.s32 %v546_v17, %v545_v15  ;;  %v567_v24 = vadd.s32 %v566_v18, %v564_v19  ;;  %v587_v25 = vcvt.f32.s32 %v585_v20  ;;  %v586_v28 = vcvt.f32.s32 %v583_v21 }
 0x2b2   : > { %v568_v26 = vrot.slane %v567_v24, 4  ;;  %v588_v27 = vshll.u32 %v587_v25, 16  ;;  %v548_v1 = vrot.slane %v547_v23, 2 }
 0x2b4   : > { %v569_v0 = vadd.s32 %v568_v26, %v567_v24  ;;  %v589_v2 = vadd.s32 %v588_v27, %v586_v28  ;;  %v549_v29 = vadd.s32 %v548_v1, %v547_v23 }
 0x2b6   : > { %v590_v30 = vrot.slane %v589_v2, 4  ;;  %v550_v31 = vrot.slane %v549_v29, 1  ;;  %v570_v32 = vrot.slane %v569_v0, 2 }
 0x2b8   : > { %v591_v33 = vadd.s32 %v590_v30, %v589_v2  ;;  %v551_v34 = vadd.s32 %v550_v31, %v549_v29  ;;  %v571_v35 = vadd.s32 %v570_v32, %v569_v0 }
 0x2ba   : > { %1755 = vpush %v551_v34  ;;  %v572_v36 = vrot.slane %v571_v35, 1  ;;  %v592_v37 = vrot.slane %v591_v33, 2 }
 0x2bc   : > { %v573_v38 = vadd.s32 %v572_v36, %v571_v35  ;;  %v593_v39 = vadd.s32 %v592_v37, %v591_v33 }
 0x2be   : > { %1757 = vpush %v573_v38  ;;  %v594_v40 = vrot.slane %v593_v39, 1 }
 0x2c0   : > { %v595_v41 = vadd.s32 %v594_v40, %v593_v39 }
 0x2c2   : > { %1759 = vpush %v595_v41 }
 0x2eb   : > { %s1756_s24 = spop %1755 }
 0x2ec   : > { %p599_p8 = scmp.ge.s32.totalorder %s1756_s24, %s2056_s9 }
 0x2ee   : > { %s2505_s21 = smov (!%p599_p8, %s528_s21), %s2503_s17 }
 0x2ef   : > { %s1758_s25 = spop %1757 }
 0x2f0   : > { %p598_p9 = scmp.ge.s32.totalorder %s1758_s25, %s2056_s9 }
 0x2f2   : > { %s2507_s22 = smov (!%p598_p9, %s529_s22), %s2505_s21 }
 0x2f3   : > { %s1760_s26 = spop %1759 }
 0x2f4   : > { %p597_p10 = scmp.ge.s32.totalorder %s1760_s26, %s2056_s9 }
 0x2f6   : > { %s2509_s23 = smov (!%p597_p10, %s530_s23), %s2507_s22 }
 0x2f7   : > { %s603_s27 = sor.u32 16777216, %s2509_s23  ;;  %s604_s28 = sor.u32 33554432, %s2509_s23 }
 0x2f8   : > { %v606_v45 = vstv %s603_s27  ;;  %v628_v46 = vstv %s604_s28  ;;  %s605_s29 = sor.u32 50331648, %s2509_s23 }
 0x2f9   : > { %vm607_vm7 = vcmp.ge.s32.totalorder %v2046_v7, %v606_v45  ;;  %vm629_vm8 = vcmp.ge.s32.totalorder %v2046_v7, %v628_v46  ;;  %v650_v47 = vstv %s605_s29 }
 0x2fa   : > { %v608_v48 = vsel %vm607_vm7, 1, %v1882_v6  ;;  %v630_v49 = vsel %vm629_vm8, 1, %v1882_v6  ;;  %vm651_vm9 = vcmp.ge.s32.totalorder %v2046_v7, %v650_v47 }
 0x2fb   : > { %v610_v50 = vshrl.u32 %v608_v48, 16  ;;  %v609_v51 = vand.u32 65535, %v608_v48  ;;  %v632_v3 = vshrl.u32 %v630_v49, 16  ;;  %v631_v54 = vand.u32 65535, %v630_v49 }
 0x2fc   : > { %v652_v55 = vsel %vm651_vm9, 1, %v1882_v6 }
 0x2fd   : > { %v612_v52 = vcvt.s32.f32 %v610_v50  ;;  %v611_v53 = vcvt.s32.f32 %v609_v51  ;;  %v634_v56 = vcvt.s32.f32 %v632_v3  ;;  %v633_v4 = vcvt.s32.f32 %v631_v54 }
 0x2fe   : > { %v654_v57 = vshrl.u32 %v652_v55, 16  ;;  %v653_v58 = vand.u32 65535, %v652_v55 }
 0x2ff   : > { %615 = vadd.xlane.f32.xlu1 %v612_v52  ;;  %613 = vadd.xlane.f32.xlu0 %v611_v53 }
 0x300   : > { %v656_v59 = vcvt.s32.f32 %v654_v57  ;;  %v655_v5 = vcvt.s32.f32 %v653_v58 }
 0x303   : > { %637 = vadd.xlane.f32.xlu1 %v634_v56  ;;  %635 = vadd.xlane.f32.xlu0 %v633_v4 }
 0x307   : > { %659 = vadd.xlane.f32.xlu1 %v656_v59  ;;  %657 = vadd.xlane.f32.xlu0 %v655_v5 }
 0x38c   : > { %v616_v60 = vpop.xlane.xlu1 %615  ;;  %v614_v61 = vpop.xlane.xlu0 %613 }
 0x38d   : > { %v618_v43 = vcvt.f32.s32 %v616_v60  ;;  %v617_v62 = vcvt.f32.s32 %v614_v61 }
 0x38f   : > { %v619_v8 = vshll.u32 %v618_v43, 16 }
 0x390   : > { %v638_v63 = vpop.xlane.xlu1 %637  ;;  %v636_v9 = vpop.xlane.xlu0 %635 }
 0x391   : > { %v620_v44 = vadd.s32 %v619_v8, %v617_v62  ;;  %v640_v10 = vcvt.f32.s32 %v638_v63  ;;  %v639_v22 = vcvt.f32.s32 %v636_v9 }
 0x393   : > { %v621_v11 = vrot.slane %v620_v44, 4  ;;  %v641_v12 = vshll.u32 %v640_v10, 16 }
 0x394   : > { %v660_v13 = vpop.xlane.xlu1 %659  ;;  %v658_v14 = vpop.xlane.xlu0 %657 }
 0x395   : > { %v622_v15 = vadd.s32 %v621_v11, %v620_v44  ;;  %v642_v16 = vadd.s32 %v641_v12, %v639_v22  ;;  %v662_v17 = vcvt.f32.s32 %v660_v13  ;;  %v661_v20 = vcvt.f32.s32 %v658_v14 }
 0x397   : > { %v643_v18 = vrot.slane %v642_v16, 4  ;;  %v663_v19 = vshll.u32 %v662_v17, 16  ;;  %v623_v21 = vrot.slane %v622_v15, 2 }
 0x399   : > { %v644_v23 = vadd.s32 %v643_v18, %v642_v16  ;;  %v664_v24 = vadd.s32 %v663_v19, %v661_v20  ;;  %v624_v25 = vadd.s32 %v623_v21, %v622_v15 }
 0x39b   : > { %v665_v26 = vrot.slane %v664_v24, 4  ;;  %v625_v27 = vrot.slane %v624_v25, 1  ;;  %v645_v28 = vrot.slane %v644_v23, 2 }
 0x39d   : > { %v666_v1 = vadd.s32 %v665_v26, %v664_v24  ;;  %v626_v0 = vadd.s32 %v625_v27, %v624_v25  ;;  %v646_v2 = vadd.s32 %v645_v28, %v644_v23 }
 0x39f   : > { %1761 = vpush %v626_v0  ;;  %v647_v29 = vrot.slane %v646_v2, 1  ;;  %v667_v30 = vrot.slane %v666_v1, 2 }
 0x3a1   : > { %v648_v31 = vadd.s32 %v647_v29, %v646_v2  ;;  %v668_v32 = vadd.s32 %v667_v30, %v666_v1 }
 0x3a3   : > { %1763 = vpush %v648_v31  ;;  %v669_v33 = vrot.slane %v668_v32, 1 }
 0x3a5   : > { %v670_v34 = vadd.s32 %v669_v33, %v668_v32 }
 0x3a7   : > { %1765 = vpush %v670_v34 }
 0x3d0   : > { %s1762_s30 = spop %1761 }
 0x3d1   : > { %p674_p11 = scmp.ge.s32.totalorder %s1762_s30, %s2056_s9 }
 0x3d3   : > { %s2511_s27 = smov (!%p674_p11, %s603_s27), %s2509_s23 }
 0x3d4   : > { %s1764_s5 = spop %1763 }
 0x3d5   : > { %p673_p12 = scmp.ge.s32.totalorder %s1764_s5, %s2056_s9 }
 0x3d7   : > { %s2513_s28 = smov (!%p673_p12, %s604_s28), %s2511_s27 }
 0x3d8   : > { %s1766_s8 = spop %1765 }
 0x3d9   : > { %p672_p13 = scmp.ge.s32.totalorder %s1766_s8, %s2056_s9 }
 0x3db   : > { %s2515_s29 = smov (!%p672_p13, %s605_s29), %s2513_s28 }
 0x3dc   : > { %s678_s11 = sor.u32 4194304, %s2515_s29  ;;  %s679_s12 = sor.u32 8388608, %s2515_s29 }
 0x3dd   : > { %v681_v35 = vstv %s678_s11  ;;  %v703_v36 = vstv %s679_s12  ;;  %s680_s13 = sor.u32 12582912, %s2515_s29 }
 0x3de   : > { %vm682_vm10 = vcmp.ge.s32.totalorder %v2046_v7, %v681_v35  ;;  %vm704_vm11 = vcmp.ge.s32.totalorder %v2046_v7, %v703_v36  ;;  %v725_v37 = vstv %s680_s13 }
 0x3df   : > { %v683_v38 = vsel %vm682_vm10, 1, %v1882_v6  ;;  %v705_v39 = vsel %vm704_vm11, 1, %v1882_v6  ;;  %vm726_vm12 = vcmp.ge.s32.totalorder %v2046_v7, %v725_v37 }
 0x3e0   : > { %v685_v40 = vshrl.u32 %v683_v38, 16  ;;  %v684_v41 = vand.u32 65535, %v683_v38  ;;  %v707_v47 = vshrl.u32 %v705_v39, 16  ;;  %v706_v48 = vand.u32 65535, %v705_v39 }
 0x3e1   : > { %v727_v49 = vsel %vm726_vm12, 1, %v1882_v6 }
 0x3e2   : > { %v687_v45 = vcvt.s32.f32 %v685_v40  ;;  %v686_v46 = vcvt.s32.f32 %v684_v41  ;;  %v709_v50 = vcvt.s32.f32 %v707_v47  ;;  %v708_v51 = vcvt.s32.f32 %v706_v48 }
 0x3e3   : > { %v729_v52 = vshrl.u32 %v727_v49, 16  ;;  %v728_v53 = vand.u32 65535, %v727_v49 }
 0x3e4   : > { %690 = vadd.xlane.f32.xlu1 %v687_v45  ;;  %688 = vadd.xlane.f32.xlu0 %v686_v46 }
 0x3e5   : > { %v731_v3 = vcvt.s32.f32 %v729_v52  ;;  %v730_v54 = vcvt.s32.f32 %v728_v53 }
 0x3e8   : > { %712 = vadd.xlane.f32.xlu1 %v709_v50  ;;  %710 = vadd.xlane.f32.xlu0 %v708_v51 }
 0x3ec   : > { %734 = vadd.xlane.f32.xlu1 %v731_v3  ;;  %732 = vadd.xlane.f32.xlu0 %v730_v54 }
 0x471   : > { %v691_v55 = vpop.xlane.xlu1 %690  ;;  %v689_v56 = vpop.xlane.xlu0 %688 }
 0x472   : > { %v693_v4 = vcvt.f32.s32 %v691_v55  ;;  %v692_v58 = vcvt.f32.s32 %v689_v56 }
 0x474   : > { %v694_v57 = vshll.u32 %v693_v4, 16 }
 0x475   : > { %v713_v59 = vpop.xlane.xlu1 %712  ;;  %v711_v5 = vpop.xlane.xlu0 %710 }
 0x476   : > { %v695_v60 = vadd.s32 %v694_v57, %v692_v58  ;;  %v715_v61 = vcvt.f32.s32 %v713_v59  ;;  %v714_v62 = vcvt.f32.s32 %v711_v5 }
 0x478   : > { %v696_v43 = vrot.slane %v695_v60, 4  ;;  %v716_v8 = vshll.u32 %v715_v61, 16 }
 0x479   : > { %v735_v63 = vpop.xlane.xlu1 %734  ;;  %v733_v9 = vpop.xlane.xlu0 %732 }
 0x47a   : > { %v697_v44 = vadd.s32 %v696_v43, %v695_v60  ;;  %v717_v10 = vadd.s32 %v716_v8, %v714_v62  ;;  %v737_v11 = vcvt.f32.s32 %v735_v63  ;;  %v736_v13 = vcvt.f32.s32 %v733_v9 }
 0x47c   : > { %v718_v12 = vrot.slane %v717_v10, 4  ;;  %v738_v22 = vshll.u32 %v737_v11, 16  ;;  %v698_v14 = vrot.slane %v697_v44, 2 }
 0x47e   : > { %v719_v15 = vadd.s32 %v718_v12, %v717_v10  ;;  %v739_v16 = vadd.s32 %v738_v22, %v736_v13  ;;  %v699_v17 = vadd.s32 %v698_v14, %v697_v44 }
 0x480   : > { %v740_v18 = vrot.slane %v739_v16, 4  ;;  %v700_v19 = vrot.slane %v699_v17, 1  ;;  %v720_v20 = vrot.slane %v719_v15, 2 }
 0x482   : > { %v741_v21 = vadd.s32 %v740_v18, %v739_v16  ;;  %v701_v23 = vadd.s32 %v700_v19, %v699_v17  ;;  %v721_v24 = vadd.s32 %v720_v20, %v719_v15 }
 0x484   : > { %1767 = vpush %v701_v23  ;;  %v722_v25 = vrot.slane %v721_v24, 1  ;;  %v742_v26 = vrot.slane %v741_v21, 2 }
 0x486   : > { %v723_v27 = vadd.s32 %v722_v25, %v721_v24  ;;  %v743_v28 = vadd.s32 %v742_v26, %v741_v21 }
 0x488   : > { %1769 = vpush %v723_v27  ;;  %v744_v1 = vrot.slane %v743_v28, 1 }
 0x48a   : > { %v745_v0 = vadd.s32 %v744_v1, %v743_v28 }
 0x48c   : > { %1771 = vpush %v745_v0 }
 0x4b5   : > { %s1768_s14 = spop %1767 }
 0x4b6   : > { %p749_p0 = scmp.ge.s32.totalorder %s1768_s14, %s2056_s9 }
 0x4b8   : > { %s2517_s11 = smov (!%p749_p0, %s678_s11), %s2515_s29 }
 0x4b9   : > { %s1770_s17 = spop %1769 }
 0x4ba   : > { %p748_p1 = scmp.ge.s32.totalorder %s1770_s17, %s2056_s9 }
 0x4bc   : > { %s2519_s12 = smov (!%p748_p1, %s679_s12), %s2517_s11 }
 0x4bd   : > { %s1772_s18 = spop %1771 }
 0x4be   : > { %p747_p2 = scmp.ge.s32.totalorder %s1772_s18, %s2056_s9 }
 0x4c0   : > { %s2521_s13 = smov (!%p747_p2, %s680_s13), %s2519_s12 }
 0x4c1   : > { %s753_s19 = sor.u32 1048576, %s2521_s13  ;;  %s754_s20 = sor.u32 2097152, %s2521_s13 }
 0x4c2   : > { %v756_v2 = vstv %s753_s19  ;;  %v778_v29 = vstv %s754_s20  ;;  %s755_s21 = sor.u32 3145728, %s2521_s13 }
 0x4c3   : > { %vm757_vm13 = vcmp.ge.s32.totalorder %v2046_v7, %v756_v2  ;;  %vm779_vm14 = vcmp.ge.s32.totalorder %v2046_v7, %v778_v29  ;;  %v800_v30 = vstv %s755_s21 }
 0x4c4   : > { %v758_v31 = vsel %vm757_vm13, 1, %v1882_v6  ;;  %v780_v32 = vsel %vm779_vm14, 1, %v1882_v6  ;;  %vm801_vm15 = vcmp.ge.s32.totalorder %v2046_v7, %v800_v30 }
 0x4c5   : > { %v760_v33 = vshrl.u32 %v758_v31, 16  ;;  %v759_v34 = vand.u32 65535, %v758_v31  ;;  %v782_v37 = vshrl.u32 %v780_v32, 16  ;;  %v781_v38 = vand.u32 65535, %v780_v32 }
 0x4c6   : > { %v802_v39 = vsel %vm801_vm15, 1, %v1882_v6 }
 0x4c7   : > { %v762_v35 = vcvt.s32.f32 %v760_v33  ;;  %v761_v36 = vcvt.s32.f32 %v759_v34  ;;  %v784_v40 = vcvt.s32.f32 %v782_v37  ;;  %v783_v41 = vcvt.s32.f32 %v781_v38 }
 0x4c8   : > { %v804_v45 = vshrl.u32 %v802_v39, 16  ;;  %v803_v46 = vand.u32 65535, %v802_v39 }
 0x4c9   : > { %765 = vadd.xlane.f32.xlu1 %v762_v35  ;;  %763 = vadd.xlane.f32.xlu0 %v761_v36 }
 0x4ca   : > { %v806_v47 = vcvt.s32.f32 %v804_v45  ;;  %v805_v48 = vcvt.s32.f32 %v803_v46 }
 0x4cd   : > { %787 = vadd.xlane.f32.xlu1 %v784_v40  ;;  %785 = vadd.xlane.f32.xlu0 %v783_v41 }
 0x4d1   : > { %809 = vadd.xlane.f32.xlu1 %v806_v47  ;;  %807 = vadd.xlane.f32.xlu0 %v805_v48 }
 0x556   : > { %v766_v49 = vpop.xlane.xlu1 %765  ;;  %v764_v50 = vpop.xlane.xlu0 %763 }
 0x557   : > { %v768_v51 = vcvt.f32.s32 %v766_v49  ;;  %v767_v53 = vcvt.f32.s32 %v764_v50 }
 0x559   : > { %v769_v52 = vshll.u32 %v768_v51, 16 }
 0x55a   : > { %v788_v3 = vpop.xlane.xlu1 %787  ;;  %v786_v54 = vpop.xlane.xlu0 %785 }
 0x55b   : > { %v770_v55 = vadd.s32 %v769_v52, %v767_v53  ;;  %v790_v56 = vcvt.f32.s32 %v788_v3  ;;  %v789_v58 = vcvt.f32.s32 %v786_v54 }
 0x55d   : > { %v771_v4 = vrot.slane %v770_v55, 4  ;;  %v791_v57 = vshll.u32 %v790_v56, 16 }
 0x55e   : > { %v810_v59 = vpop.xlane.xlu1 %809  ;;  %v808_v5 = vpop.xlane.xlu0 %807 }
 0x55f   : > { %v772_v60 = vadd.s32 %v771_v4, %v770_v55  ;;  %v792_v61 = vadd.s32 %v791_v57, %v789_v58  ;;  %v812_v43 = vcvt.f32.s32 %v810_v59  ;;  %v811_v63 = vcvt.f32.s32 %v808_v5 }
 0x561   : > { %v793_v8 = vrot.slane %v792_v61, 4  ;;  %v813_v62 = vshll.u32 %v812_v43, 16  ;;  %v773_v9 = vrot.slane %v772_v60, 2 }
 0x563   : > { %v794_v44 = vadd.s32 %v793_v8, %v792_v61  ;;  %v814_v10 = vadd.s32 %v813_v62, %v811_v63  ;;  %v774_v11 = vadd.s32 %v773_v9, %v772_v60 }
 0x565   : > { %v815_v12 = vrot.slane %v814_v10, 4  ;;  %v775_v22 = vrot.slane %v774_v11, 1  ;;  %v795_v13 = vrot.slane %v794_v44, 2 }
 0x567   : > { %v816_v14 = vadd.s32 %v815_v12, %v814_v10  ;;  %v776_v15 = vadd.s32 %v775_v22, %v774_v11  ;;  %v796_v16 = vadd.s32 %v795_v13, %v794_v44 }
 0x569   : > { %1773 = vpush %v776_v15  ;;  %v797_v17 = vrot.slane %v796_v16, 1  ;;  %v817_v18 = vrot.slane %v816_v14, 2 }
 0x56b   : > { %v798_v19 = vadd.s32 %v797_v17, %v796_v16  ;;  %v818_v20 = vadd.s32 %v817_v18, %v816_v14 }
 0x56d   : > { %1775 = vpush %v798_v19  ;;  %v819_v21 = vrot.slane %v818_v20, 1 }
 0x56f   : > { %v820_v23 = vadd.s32 %v819_v21, %v818_v20 }
 0x571   : > { %1777 = vpush %v820_v23 }
 0x59a   : > { %s1774_s22 = spop %1773 }
 0x59b   : > { %p824_p3 = scmp.ge.s32.totalorder %s1774_s22, %s2056_s9 }
 0x59d   : > { %s2523_s19 = smov (!%p824_p3, %s753_s19), %s2521_s13 }
 0x59e   : > { %s1776_s23 = spop %1775 }
 0x59f   : > { %p823_p4 = scmp.ge.s32.totalorder %s1776_s23, %s2056_s9 }
 0x5a1   : > { %s2525_s20 = smov (!%p823_p4, %s754_s20), %s2523_s19 }
 0x5a2   : > { %s1778_s24 = spop %1777 }
 0x5a3   : > { %p822_p5 = scmp.ge.s32.totalorder %s1778_s24, %s2056_s9 }
 0x5a5   : > { %s2527_s21 = smov (!%p822_p5, %s755_s21), %s2525_s20 }
 0x5a6   : > { %s828_s25 = sor.u32 262144, %s2527_s21  ;;  %s829_s26 = sor.u32 524288, %s2527_s21 }
 0x5a7   : > { %v831_v24 = vstv %s828_s25  ;;  %v853_v25 = vstv %s829_s26  ;;  %s830_s27 = sor.u32 786432, %s2527_s21 }
 0x5a8   : > { %vm832_vm1 = vcmp.ge.s32.totalorder %v2046_v7, %v831_v24  ;;  %vm854_vm0 = vcmp.ge.s32.totalorder %v2046_v7, %v853_v25  ;;  %v875_v26 = vstv %s830_s27 }
 0x5a9   : > { %v833_v27 = vsel %vm832_vm1, 1, %v1882_v6  ;;  %v855_v28 = vsel %vm854_vm0, 1, %v1882_v6  ;;  %vm876_vm2 = vcmp.ge.s32.totalorder %v2046_v7, %v875_v26 }
 0x5aa   : > { %v835_v1 = vshrl.u32 %v833_v27, 16  ;;  %v834_v0 = vand.u32 65535, %v833_v27  ;;  %v857_v30 = vshrl.u32 %v855_v28, 16  ;;  %v856_v31 = vand.u32 65535, %v855_v28 }
 0x5ab   : > { %v877_v32 = vsel %vm876_vm2, 1, %v1882_v6 }
 0x5ac   : > { %v837_v2 = vcvt.s32.f32 %v835_v1  ;;  %v836_v29 = vcvt.s32.f32 %v834_v0  ;;  %v859_v33 = vcvt.s32.f32 %v857_v30  ;;  %v858_v34 = vcvt.s32.f32 %v856_v31 }
 0x5ad   : > { %v879_v35 = vshrl.u32 %v877_v32, 16  ;;  %v878_v36 = vand.u32 65535, %v877_v32 }
 0x5ae   : > { %840 = vadd.xlane.f32.xlu1 %v837_v2  ;;  %838 = vadd.xlane.f32.xlu0 %v836_v29 }
 0x5af   : > { %v881_v37 = vcvt.s32.f32 %v879_v35  ;;  %v880_v38 = vcvt.s32.f32 %v878_v36 }
 0x5b2   : > { %862 = vadd.xlane.f32.xlu1 %v859_v33  ;;  %860 = vadd.xlane.f32.xlu0 %v858_v34 }
 0x5b6   : > { %884 = vadd.xlane.f32.xlu1 %v881_v37  ;;  %882 = vadd.xlane.f32.xlu0 %v880_v38 }
 0x63b   : > { %v841_v39 = vpop.xlane.xlu1 %840  ;;  %v839_v40 = vpop.xlane.xlu0 %838 }
 0x63c   : > { %v843_v41 = vcvt.f32.s32 %v841_v39  ;;  %v842_v46 = vcvt.f32.s32 %v839_v40 }
 0x63e   : > { %v844_v45 = vshll.u32 %v843_v41, 16 }
 0x63f   : > { %v863_v47 = vpop.xlane.xlu1 %862  ;;  %v861_v48 = vpop.xlane.xlu0 %860 }
 0x640   : > { %v845_v49 = vadd.s32 %v844_v45, %v842_v46  ;;  %v865_v50 = vcvt.f32.s32 %v863_v47  ;;  %v864_v53 = vcvt.f32.s32 %v861_v48 }
 0x642   : > { %v846_v51 = vrot.slane %v845_v49, 4  ;;  %v866_v52 = vshll.u32 %v865_v50, 16 }
 0x643   : > { %v885_v3 = vpop.xlane.xlu1 %884  ;;  %v883_v54 = vpop.xlane.xlu0 %882 }
 0x644   : > { %v847_v55 = vadd.s32 %v846_v51, %v845_v49  ;;  %v867_v56 = vadd.s32 %v866_v52, %v864_v53  ;;  %v887_v4 = vcvt.f32.s32 %v885_v3  ;;  %v886_v59 = vcvt.f32.s32 %v883_v54 }
 0x646   : > { %v868_v57 = vrot.slane %v867_v56, 4  ;;  %v888_v58 = vshll.u32 %v887_v4, 16  ;;  %v848_v5 = vrot.slane %v847_v55, 2 }
 0x648   : > { %v869_v60 = vadd.s32 %v868_v57, %v867_v56  ;;  %v889_v61 = vadd.s32 %v888_v58, %v886_v59  ;;  %v849_v43 = vadd.s32 %v848_v5, %v847_v55 }
 0x64a   : > { %v890_v8 = vrot.slane %v889_v61, 4  ;;  %v850_v62 = vrot.slane %v849_v43, 1  ;;  %v870_v63 = vrot.slane %v869_v60, 2 }
 0x64c   : > { %v891_v9 = vadd.s32 %v890_v8, %v889_v61  ;;  %v851_v44 = vadd.s32 %v850_v62, %v849_v43  ;;  %v871_v10 = vadd.s32 %v870_v63, %v869_v60 }
 0x64e   : > { %1779 = vpush %v851_v44  ;;  %v872_v11 = vrot.slane %v871_v10, 1  ;;  %v892_v12 = vrot.slane %v891_v9, 2 }
 0x650   : > { %v873_v22 = vadd.s32 %v872_v11, %v871_v10  ;;  %v893_v13 = vadd.s32 %v892_v12, %v891_v9 }
 0x652   : > { %1781 = vpush %v873_v22  ;;  %v894_v14 = vrot.slane %v893_v13, 1 }
 0x654   : > { %v895_v15 = vadd.s32 %v894_v14, %v893_v13 }
 0x656   : > { %1783 = vpush %v895_v15 }
 0x67f   : > { %s1780_s28 = spop %1779 }
 0x680   : > { %p899_p6 = scmp.ge.s32.totalorder %s1780_s28, %s2056_s9 }
 0x682   : > { %s2529_s25 = smov (!%p899_p6, %s828_s25), %s2527_s21 }
 0x683   : > { %s1782_s29 = spop %1781 }
 0x684   : > { %p898_p7 = scmp.ge.s32.totalorder %s1782_s29, %s2056_s9 }
 0x686   : > { %s2531_s26 = smov (!%p898_p7, %s829_s26), %s2529_s25 }
 0x687   : > { %s1784_s30 = spop %1783 }
 0x688   : > { %p897_p8 = scmp.ge.s32.totalorder %s1784_s30, %s2056_s9 }
 0x68a   : > { %s2533_s27 = smov (!%p897_p8, %s830_s27), %s2531_s26 }
 0x68b   : > { %s903_s5 = sor.u32 65536, %s2533_s27  ;;  %s904_s8 = sor.u32 131072, %s2533_s27 }
 0x68c   : > { %v906_v16 = vstv %s903_s5  ;;  %v928_v17 = vstv %s904_s8  ;;  %s905_s11 = sor.u32 196608, %s2533_s27 }
 0x68d   : > { %vm907_vm3 = vcmp.ge.s32.totalorder %v2046_v7, %v906_v16  ;;  %vm929_vm4 = vcmp.ge.s32.totalorder %v2046_v7, %v928_v17  ;;  %v950_v18 = vstv %s905_s11 }
 0x68e   : > { %v908_v19 = vsel %vm907_vm3, 1, %v1882_v6  ;;  %v930_v20 = vsel %vm929_vm4, 1, %v1882_v6  ;;  %vm951_vm5 = vcmp.ge.s32.totalorder %v2046_v7, %v950_v18 }
 0x68f   : > { %v910_v21 = vshrl.u32 %v908_v19, 16  ;;  %v909_v23 = vand.u32 65535, %v908_v19  ;;  %v932_v26 = vshrl.u32 %v930_v20, 16  ;;  %v931_v27 = vand.u32 65535, %v930_v20 }
 0x690   : > { %v952_v28 = vsel %vm951_vm5, 1, %v1882_v6 }
 0x691   : > { %v912_v24 = vcvt.s32.f32 %v910_v21  ;;  %v911_v25 = vcvt.s32.f32 %v909_v23  ;;  %v934_v1 = vcvt.s32.f32 %v932_v26  ;;  %v933_v0 = vcvt.s32.f32 %v931_v27 }
 0x692   : > { %v954_v2 = vshrl.u32 %v952_v28, 16  ;;  %v953_v29 = vand.u32 65535, %v952_v28 }
 0x693   : > { %915 = vadd.xlane.f32.xlu1 %v912_v24  ;;  %913 = vadd.xlane.f32.xlu0 %v911_v25 }
 0x694   : > { %v956_v30 = vcvt.s32.f32 %v954_v2  ;;  %v955_v31 = vcvt.s32.f32 %v953_v29 }
 0x697   : > { %937 = vadd.xlane.f32.xlu1 %v934_v1  ;;  %935 = vadd.xlane.f32.xlu0 %v933_v0 }
 0x69b   : > { %959 = vadd.xlane.f32.xlu1 %v956_v30  ;;  %957 = vadd.xlane.f32.xlu0 %v955_v31 }
 0x720   : > { %v916_v32 = vpop.xlane.xlu1 %915  ;;  %v914_v33 = vpop.xlane.xlu0 %913 }
 0x721   : > { %v918_v34 = vcvt.f32.s32 %v916_v32  ;;  %v917_v36 = vcvt.f32.s32 %v914_v33 }
 0x723   : > { %v919_v35 = vshll.u32 %v918_v34, 16 }
 0x724   : > { %v938_v37 = vpop.xlane.xlu1 %937  ;;  %v936_v38 = vpop.xlane.xlu0 %935 }
 0x725   : > { %v920_v39 = vadd.s32 %v919_v35, %v917_v36  ;;  %v940_v40 = vcvt.f32.s32 %v938_v37  ;;  %v939_v46 = vcvt.f32.s32 %v936_v38 }
 0x727   : > { %v921_v41 = vrot.slane %v920_v39, 4  ;;  %v941_v45 = vshll.u32 %v940_v40, 16 }
 0x728   : > { %v960_v47 = vpop.xlane.xlu1 %959  ;;  %v958_v48 = vpop.xlane.xlu0 %957 }
 0x729   : > { %v922_v49 = vadd.s32 %v921_v41, %v920_v39  ;;  %v942_v50 = vadd.s32 %v941_v45, %v939_v46  ;;  %v962_v51 = vcvt.f32.s32 %v960_v47  ;;  %v961_v3 = vcvt.f32.s32 %v958_v48 }
 0x72b   : > { %v943_v52 = vrot.slane %v942_v50, 4  ;;  %v963_v53 = vshll.u32 %v962_v51, 16  ;;  %v923_v54 = vrot.slane %v922_v49, 2 }
 0x72d   : > { %v944_v55 = vadd.s32 %v943_v52, %v942_v50  ;;  %v964_v56 = vadd.s32 %v963_v53, %v961_v3  ;;  %v924_v4 = vadd.s32 %v923_v54, %v922_v49 }
 0x72f   : > { %v965_v57 = vrot.slane %v964_v56, 4  ;;  %v925_v58 = vrot.slane %v924_v4, 1  ;;  %v945_v59 = vrot.slane %v944_v55, 2 }
 0x731   : > { %v966_v5 = vadd.s32 %v965_v57, %v964_v56  ;;  %v926_v60 = vadd.s32 %v925_v58, %v924_v4  ;;  %v946_v61 = vadd.s32 %v945_v59, %v944_v55 }
 0x733   : > { %1785 = vpush %v926_v60  ;;  %v947_v43 = vrot.slane %v946_v61, 1  ;;  %v967_v8 = vrot.slane %v966_v5, 2 }
 0x735   : > { %v948_v62 = vadd.s32 %v947_v43, %v946_v61  ;;  %v968_v63 = vadd.s32 %v967_v8, %v966_v5 }
 0x737   : > { %1787 = vpush %v948_v62  ;;  %v969_v9 = vrot.slane %v968_v63, 1 }
 0x739   : > { %v970_v44 = vadd.s32 %v969_v9, %v968_v63 }
 0x73b   : > { %1789 = vpush %v970_v44 }
 0x764   : > { %s1786_s12 = spop %1785 }
 0x765   : > { %p974_p9 = scmp.ge.s32.totalorder %s1786_s12, %s2056_s9 }
 0x767   : > { %s2535_s5 = smov (!%p974_p9, %s903_s5), %s2533_s27 }
 0x768   : > { %s1788_s13 = spop %1787 }
 0x769   : > { %p973_p10 = scmp.ge.s32.totalorder %s1788_s13, %s2056_s9 }
 0x76b   : > { %s2537_s8 = smov (!%p973_p10, %s904_s8), %s2535_s5 }
 0x76c   : > { %s1790_s14 = spop %1789 }
 0x76d   : > { %p972_p11 = scmp.ge.s32.totalorder %s1790_s14, %s2056_s9 }
 0x76f   : > { %s2539_s11 = smov (!%p972_p11, %s905_s11), %s2537_s8 }
 0x770   : > { %s978_s17 = sor.u32 16384, %s2539_s11  ;;  %s979_s18 = sor.u32 32768, %s2539_s11 }
 0x771   : > { %v981_v10 = vstv %s978_s17  ;;  %v1003_v11 = vstv %s979_s18  ;;  %s980_s19 = sor.u32 49152, %s2539_s11 }
 0x772   : > { %vm982_vm6 = vcmp.ge.s32.totalorder %v2046_v7, %v981_v10  ;;  %vm1004_vm7 = vcmp.ge.s32.totalorder %v2046_v7, %v1003_v11  ;;  %v1025_v12 = vstv %s980_s19 }
 0x773   : > { %v983_v22 = vsel %vm982_vm6, 1, %v1882_v6  ;;  %v1005_v13 = vsel %vm1004_vm7, 1, %v1882_v6  ;;  %vm1026_vm8 = vcmp.ge.s32.totalorder %v2046_v7, %v1025_v12 }
 0x774   : > { %v985_v14 = vshrl.u32 %v983_v22, 16  ;;  %v984_v15 = vand.u32 65535, %v983_v22  ;;  %v1007_v18 = vshrl.u32 %v1005_v13, 16  ;;  %v1006_v19 = vand.u32 65535, %v1005_v13 }
 0x775   : > { %v1027_v20 = vsel %vm1026_vm8, 1, %v1882_v6 }
 0x776   : > { %v987_v16 = vcvt.s32.f32 %v985_v14  ;;  %v986_v17 = vcvt.s32.f32 %v984_v15  ;;  %v1009_v21 = vcvt.s32.f32 %v1007_v18  ;;  %v1008_v23 = vcvt.s32.f32 %v1006_v19 }
 0x777   : > { %v1029_v24 = vshrl.u32 %v1027_v20, 16  ;;  %v1028_v25 = vand.u32 65535, %v1027_v20 }
 0x778   : > { %990 = vadd.xlane.f32.xlu1 %v987_v16  ;;  %988 = vadd.xlane.f32.xlu0 %v986_v17 }
 0x779   : > { %v1031_v26 = vcvt.s32.f32 %v1029_v24  ;;  %v1030_v27 = vcvt.s32.f32 %v1028_v25 }
 0x77c   : > { %1012 = vadd.xlane.f32.xlu1 %v1009_v21  ;;  %1010 = vadd.xlane.f32.xlu0 %v1008_v23 }
 0x780   : > { %1034 = vadd.xlane.f32.xlu1 %v1031_v26  ;;  %1032 = vadd.xlane.f32.xlu0 %v1030_v27 }
 0x805   : > { %v991_v28 = vpop.xlane.xlu1 %990  ;;  %v989_v1 = vpop.xlane.xlu0 %988 }
 0x806   : > { %v993_v0 = vcvt.f32.s32 %v991_v28  ;;  %v992_v29 = vcvt.f32.s32 %v989_v1 }
 0x808   : > { %v994_v2 = vshll.u32 %v993_v0, 16 }
 0x809   : > { %v1013_v30 = vpop.xlane.xlu1 %1012  ;;  %v1011_v31 = vpop.xlane.xlu0 %1010 }
 0x80a   : > { %v995_v32 = vadd.s32 %v994_v2, %v992_v29  ;;  %v1015_v33 = vcvt.f32.s32 %v1013_v30  ;;  %v1014_v36 = vcvt.f32.s32 %v1011_v31 }
 0x80c   : > { %v996_v34 = vrot.slane %v995_v32, 4  ;;  %v1016_v35 = vshll.u32 %v1015_v33, 16 }
 0x80d   : > { %v1035_v37 = vpop.xlane.xlu1 %1034  ;;  %v1033_v38 = vpop.xlane.xlu0 %1032 }
 0x80e   : > { %v997_v39 = vadd.s32 %v996_v34, %v995_v32  ;;  %v1017_v40 = vadd.s32 %v1016_v35, %v1014_v36  ;;  %v1037_v41 = vcvt.f32.s32 %v1035_v37  ;;  %v1036_v47 = vcvt.f32.s32 %v1033_v38 }
 0x810   : > { %v1018_v45 = vrot.slane %v1017_v40, 4  ;;  %v1038_v46 = vshll.u32 %v1037_v41, 16  ;;  %v998_v48 = vrot.slane %v997_v39, 2 }
 0x812   : > { %v1019_v49 = vadd.s32 %v1018_v45, %v1017_v40  ;;  %v1039_v50 = vadd.s32 %v1038_v46, %v1036_v47  ;;  %v999_v51 = vadd.s32 %v998_v48, %v997_v39 }
 0x814   : > { %v1040_v52 = vrot.slane %v1039_v50, 4  ;;  %v1000_v53 = vrot.slane %v999_v51, 1  ;;  %v1020_v3 = vrot.slane %v1019_v49, 2 }
 0x816   : > { %v1041_v54 = vadd.s32 %v1040_v52, %v1039_v50  ;;  %v1001_v55 = vadd.s32 %v1000_v53, %v999_v51  ;;  %v1021_v56 = vadd.s32 %v1020_v3, %v1019_v49 }
 0x818   : > { %1791 = vpush %v1001_v55  ;;  %v1022_v4 = vrot.slane %v1021_v56, 1  ;;  %v1042_v57 = vrot.slane %v1041_v54, 2 }
 0x81a   : > { %v1023_v58 = vadd.s32 %v1022_v4, %v1021_v56  ;;  %v1043_v59 = vadd.s32 %v1042_v57, %v1041_v54 }
 0x81c   : > { %1793 = vpush %v1023_v58  ;;  %v1044_v5 = vrot.slane %v1043_v59, 1 }
 0x81e   : > { %v1045_v60 = vadd.s32 %v1044_v5, %v1043_v59 }
 0x820   : > { %1795 = vpush %v1045_v60 }
 0x849   : > { %s1792_s20 = spop %1791 }
 0x84a   : > { %p1049_p12 = scmp.ge.s32.totalorder %s1792_s20, %s2056_s9 }
 0x84c   : > { %s2541_s17 = smov (!%p1049_p12, %s978_s17), %s2539_s11 }
 0x84d   : > { %s1794_s21 = spop %1793 }
 0x84e   : > { %p1048_p13 = scmp.ge.s32.totalorder %s1794_s21, %s2056_s9 }
 0x850   : > { %s2543_s18 = smov (!%p1048_p13, %s979_s18), %s2541_s17 }
 0x851   : > { %s1796_s22 = spop %1795 }
 0x852   : > { %p1047_p0 = scmp.ge.s32.totalorder %s1796_s22, %s2056_s9 }
 0x854   : > { %s2545_s19 = smov (!%p1047_p0, %s980_s19), %s2543_s18 }
 0x855   : > { %s1053_s23 = sor.u32 4096, %s2545_s19  ;;  %s1054_s24 = sor.u32 8192, %s2545_s19 }
 0x856   : > { %v1056_v61 = vstv %s1053_s23  ;;  %v1078_v43 = vstv %s1054_s24  ;;  %s1055_s25 = sor.u32 12288, %s2545_s19 }
 0x857   : > { %vm1057_vm9 = vcmp.ge.s32.totalorder %v2046_v7, %v1056_v61  ;;  %vm1079_vm10 = vcmp.ge.s32.totalorder %v2046_v7, %v1078_v43  ;;  %v1100_v8 = vstv %s1055_s25 }
 0x858   : > { %v1058_v62 = vsel %vm1057_vm9, 1, %v1882_v6  ;;  %v1080_v63 = vsel %vm1079_vm10, 1, %v1882_v6  ;;  %vm1101_vm11 = vcmp.ge.s32.totalorder %v2046_v7, %v1100_v8 }
 0x859   : > { %v1060_v9 = vshrl.u32 %v1058_v62, 16  ;;  %v1059_v44 = vand.u32 65535, %v1058_v62  ;;  %v1082_v12 = vshrl.u32 %v1080_v63, 16  ;;  %v1081_v22 = vand.u32 65535, %v1080_v63 }
 0x85a   : > { %v1102_v13 = vsel %vm1101_vm11, 1, %v1882_v6 }
 0x85b   : > { %v1062_v10 = vcvt.s32.f32 %v1060_v9  ;;  %v1061_v11 = vcvt.s32.f32 %v1059_v44  ;;  %v1084_v14 = vcvt.s32.f32 %v1082_v12  ;;  %v1083_v15 = vcvt.s32.f32 %v1081_v22 }
 0x85c   : > { %v1104_v16 = vshrl.u32 %v1102_v13, 16  ;;  %v1103_v17 = vand.u32 65535, %v1102_v13 }
 0x85d   : > { %1065 = vadd.xlane.f32.xlu1 %v1062_v10  ;;  %1063 = vadd.xlane.f32.xlu0 %v1061_v11 }
 0x85e   : > { %v1106_v18 = vcvt.s32.f32 %v1104_v16  ;;  %v1105_v19 = vcvt.s32.f32 %v1103_v17 }
 0x861   : > { %1087 = vadd.xlane.f32.xlu1 %v1084_v14  ;;  %1085 = vadd.xlane.f32.xlu0 %v1083_v15 }
 0x865   : > { %1109 = vadd.xlane.f32.xlu1 %v1106_v18  ;;  %1107 = vadd.xlane.f32.xlu0 %v1105_v19 }
 0x8ea   : > { %v1066_v20 = vpop.xlane.xlu1 %1065  ;;  %v1064_v21 = vpop.xlane.xlu0 %1063 }
 0x8eb   : > { %v1068_v23 = vcvt.f32.s32 %v1066_v20  ;;  %v1067_v25 = vcvt.f32.s32 %v1064_v21 }
 0x8ed   : > { %v1069_v24 = vshll.u32 %v1068_v23, 16 }
 0x8ee   : > { %v1088_v26 = vpop.xlane.xlu1 %1087  ;;  %v1086_v27 = vpop.xlane.xlu0 %1085 }
 0x8ef   : > { %v1070_v28 = vadd.s32 %v1069_v24, %v1067_v25  ;;  %v1090_v1 = vcvt.f32.s32 %v1088_v26  ;;  %v1089_v29 = vcvt.f32.s32 %v1086_v27 }
 0x8f1   : > { %v1071_v0 = vrot.slane %v1070_v28, 4  ;;  %v1091_v2 = vshll.u32 %v1090_v1, 16 }
 0x8f2   : > { %v1110_v30 = vpop.xlane.xlu1 %1109  ;;  %v1108_v31 = vpop.xlane.xlu0 %1107 }
 0x8f3   : > { %v1072_v32 = vadd.s32 %v1071_v0, %v1070_v28  ;;  %v1092_v33 = vadd.s32 %v1091_v2, %v1089_v29  ;;  %v1112_v34 = vcvt.f32.s32 %v1110_v30  ;;  %v1111_v37 = vcvt.f32.s32 %v1108_v31 }
 0x8f5   : > { %v1093_v35 = vrot.slane %v1092_v33, 4  ;;  %v1113_v36 = vshll.u32 %v1112_v34, 16  ;;  %v1073_v38 = vrot.slane %v1072_v32, 2 }
 0x8f7   : > { %v1094_v39 = vadd.s32 %v1093_v35, %v1092_v33  ;;  %v1114_v40 = vadd.s32 %v1113_v36, %v1111_v37  ;;  %v1074_v41 = vadd.s32 %v1073_v38, %v1072_v32 }
 0x8f9   : > { %v1115_v45 = vrot.slane %v1114_v40, 4  ;;  %v1075_v46 = vrot.slane %v1074_v41, 1  ;;  %v1095_v47 = vrot.slane %v1094_v39, 2 }
 0x8fb   : > { %v1116_v48 = vadd.s32 %v1115_v45, %v1114_v40  ;;  %v1076_v49 = vadd.s32 %v1075_v46, %v1074_v41  ;;  %v1096_v50 = vadd.s32 %v1095_v47, %v1094_v39 }
 0x8fd   : > { %1797 = vpush %v1076_v49  ;;  %v1097_v51 = vrot.slane %v1096_v50, 1  ;;  %v1117_v52 = vrot.slane %v1116_v48, 2 }
 0x8ff   : > { %v1098_v53 = vadd.s32 %v1097_v51, %v1096_v50  ;;  %v1118_v3 = vadd.s32 %v1117_v52, %v1116_v48 }
 0x901   : > { %1799 = vpush %v1098_v53  ;;  %v1119_v54 = vrot.slane %v1118_v3, 1 }
 0x903   : > { %v1120_v55 = vadd.s32 %v1119_v54, %v1118_v3 }
 0x905   : > { %1801 = vpush %v1120_v55 }
 0x92e   : > { %s1798_s26 = spop %1797 }
 0x92f   : > { %p1124_p1 = scmp.ge.s32.totalorder %s1798_s26, %s2056_s9 }
 0x931   : > { %s2547_s23 = smov (!%p1124_p1, %s1053_s23), %s2545_s19 }
 0x932   : > { %s1800_s27 = spop %1799 }
 0x933   : > { %p1123_p2 = scmp.ge.s32.totalorder %s1800_s27, %s2056_s9 }
 0x935   : > { %s2549_s24 = smov (!%p1123_p2, %s1054_s24), %s2547_s23 }
 0x936   : > { %s1802_s28 = spop %1801 }
 0x937   : > { %p1122_p3 = scmp.ge.s32.totalorder %s1802_s28, %s2056_s9 }
 0x939   : > { %s2551_s25 = smov (!%p1122_p3, %s1055_s25), %s2549_s24 }
 0x93a   : > { %s1128_s29 = sor.u32 1024, %s2551_s25  ;;  %s1129_s30 = sor.u32 2048, %s2551_s25 }
 0x93b   : > { %v1131_v56 = vstv %s1128_s29  ;;  %v1153_v4 = vstv %s1129_s30  ;;  %s1130_s5 = sor.u32 3072, %s2551_s25 }
 0x93c   : > { %vm1132_vm12 = vcmp.ge.s32.totalorder %v2046_v7, %v1131_v56  ;;  %vm1154_vm13 = vcmp.ge.s32.totalorder %v2046_v7, %v1153_v4  ;;  %v1175_v57 = vstv %s1130_s5 }
 0x93d   : > { %v1133_v58 = vsel %vm1132_vm12, 1, %v1882_v6  ;;  %v1155_v59 = vsel %vm1154_vm13, 1, %v1882_v6  ;;  %vm1176_vm14 = vcmp.ge.s32.totalorder %v2046_v7, %v1175_v57 }
 0x93e   : > { %v1135_v5 = vshrl.u32 %v1133_v58, 16  ;;  %v1134_v60 = vand.u32 65535, %v1133_v58  ;;  %v1157_v8 = vshrl.u32 %v1155_v59, 16  ;;  %v1156_v62 = vand.u32 65535, %v1155_v59 }
 0x93f   : > { %v1177_v63 = vsel %vm1176_vm14, 1, %v1882_v6 }
 0x940   : > { %v1137_v61 = vcvt.s32.f32 %v1135_v5  ;;  %v1136_v43 = vcvt.s32.f32 %v1134_v60  ;;  %v1159_v9 = vcvt.s32.f32 %v1157_v8  ;;  %v1158_v44 = vcvt.s32.f32 %v1156_v62 }
 0x941   : > { %v1179_v10 = vshrl.u32 %v1177_v63, 16  ;;  %v1178_v11 = vand.u32 65535, %v1177_v63 }
 0x942   : > { %1140 = vadd.xlane.f32.xlu1 %v1137_v61  ;;  %1138 = vadd.xlane.f32.xlu0 %v1136_v43 }
 0x943   : > { %v1181_v12 = vcvt.s32.f32 %v1179_v10  ;;  %v1180_v22 = vcvt.s32.f32 %v1178_v11 }
 0x946   : > { %1162 = vadd.xlane.f32.xlu1 %v1159_v9  ;;  %1160 = vadd.xlane.f32.xlu0 %v1158_v44 }
 0x94a   : > { %1184 = vadd.xlane.f32.xlu1 %v1181_v12  ;;  %1182 = vadd.xlane.f32.xlu0 %v1180_v22 }
 0x9cf   : > { %v1141_v13 = vpop.xlane.xlu1 %1140  ;;  %v1139_v14 = vpop.xlane.xlu0 %1138 }
 0x9d0   : > { %v1143_v15 = vcvt.f32.s32 %v1141_v13  ;;  %v1142_v17 = vcvt.f32.s32 %v1139_v14 }
 0x9d2   : > { %v1144_v16 = vshll.u32 %v1143_v15, 16 }
 0x9d3   : > { %v1163_v18 = vpop.xlane.xlu1 %1162  ;;  %v1161_v19 = vpop.xlane.xlu0 %1160 }
 0x9d4   : > { %v1145_v20 = vadd.s32 %v1144_v16, %v1142_v17  ;;  %v1165_v21 = vcvt.f32.s32 %v1163_v18  ;;  %v1164_v25 = vcvt.f32.s32 %v1161_v19 }
 0x9d6   : > { %v1146_v23 = vrot.slane %v1145_v20, 4  ;;  %v1166_v24 = vshll.u32 %v1165_v21, 16 }
 0x9d7   : > { %v1185_v26 = vpop.xlane.xlu1 %1184  ;;  %v1183_v27 = vpop.xlane.xlu0 %1182 }
 0x9d8   : > { %v1147_v28 = vadd.s32 %v1146_v23, %v1145_v20  ;;  %v1167_v1 = vadd.s32 %v1166_v24, %v1164_v25  ;;  %v1187_v0 = vcvt.f32.s32 %v1185_v26  ;;  %v1186_v30 = vcvt.f32.s32 %v1183_v27 }
 0x9da   : > { %v1168_v2 = vrot.slane %v1167_v1, 4  ;;  %v1188_v29 = vshll.u32 %v1187_v0, 16  ;;  %v1148_v31 = vrot.slane %v1147_v28, 2 }
 0x9dc   : > { %v1169_v32 = vadd.s32 %v1168_v2, %v1167_v1  ;;  %v1189_v33 = vadd.s32 %v1188_v29, %v1186_v30  ;;  %v1149_v34 = vadd.s32 %v1148_v31, %v1147_v28 }
 0x9de   : > { %v1190_v35 = vrot.slane %v1189_v33, 4  ;;  %v1150_v36 = vrot.slane %v1149_v34, 1  ;;  %v1170_v37 = vrot.slane %v1169_v32, 2 }
 0x9e0   : > { %v1191_v38 = vadd.s32 %v1190_v35, %v1189_v33  ;;  %v1151_v39 = vadd.s32 %v1150_v36, %v1149_v34  ;;  %v1171_v40 = vadd.s32 %v1170_v37, %v1169_v32 }
 0x9e2   : > { %1803 = vpush %v1151_v39  ;;  %v1172_v41 = vrot.slane %v1171_v40, 1  ;;  %v1192_v45 = vrot.slane %v1191_v38, 2 }
 0x9e4   : > { %v1173_v46 = vadd.s32 %v1172_v41, %v1171_v40  ;;  %v1193_v47 = vadd.s32 %v1192_v45, %v1191_v38 }
 0x9e6   : > { %1805 = vpush %v1173_v46  ;;  %v1194_v48 = vrot.slane %v1193_v47, 1 }
 0x9e8   : > { %v1195_v49 = vadd.s32 %v1194_v48, %v1193_v47 }
 0x9ea   : > { %1807 = vpush %v1195_v49 }
 0xa13   : > { %s1804_s8 = spop %1803 }
 0xa14   : > { %p1199_p4 = scmp.ge.s32.totalorder %s1804_s8, %s2056_s9 }
 0xa16   : > { %s2553_s29 = smov (!%p1199_p4, %s1128_s29), %s2551_s25 }
 0xa17   : > { %s1806_s11 = spop %1805 }
 0xa18   : > { %p1198_p5 = scmp.ge.s32.totalorder %s1806_s11, %s2056_s9 }
 0xa1a   : > { %s2555_s30 = smov (!%p1198_p5, %s1129_s30), %s2553_s29 }
 0xa1b   : > { %s1808_s12 = spop %1807 }
 0xa1c   : > { %p1197_p6 = scmp.ge.s32.totalorder %s1808_s12, %s2056_s9 }
 0xa1e   : > { %s2557_s5 = smov (!%p1197_p6, %s1130_s5), %s2555_s30 }
 0xa1f   : > { %s1203_s13 = sor.u32 256, %s2557_s5  ;;  %s1204_s14 = sor.u32 512, %s2557_s5 }
 0xa20   : > { %v1206_v50 = vstv %s1203_s13  ;;  %v1228_v51 = vstv %s1204_s14  ;;  %s1205_s17 = sor.u32 768, %s2557_s5 }
 0xa21   : > { %vm1207_vm15 = vcmp.ge.s32.totalorder %v2046_v7, %v1206_v50  ;;  %vm1229_vm1 = vcmp.ge.s32.totalorder %v2046_v7, %v1228_v51  ;;  %v1250_v52 = vstv %s1205_s17 }
 0xa22   : > { %v1208_v53 = vsel %vm1207_vm15, 1, %v1882_v6  ;;  %v1230_v3 = vsel %vm1229_vm1, 1, %v1882_v6  ;;  %vm1251_vm0 = vcmp.ge.s32.totalorder %v2046_v7, %v1250_v52 }
 0xa23   : > { %v1210_v54 = vshrl.u32 %v1208_v53, 16  ;;  %v1209_v55 = vand.u32 65535, %v1208_v53  ;;  %v1232_v57 = vshrl.u32 %v1230_v3, 16  ;;  %v1231_v58 = vand.u32 65535, %v1230_v3 }
 0xa24   : > { %v1252_v59 = vsel %vm1251_vm0, 1, %v1882_v6 }
 0xa25   : > { %v1212_v56 = vcvt.s32.f32 %v1210_v54  ;;  %v1211_v4 = vcvt.s32.f32 %v1209_v55  ;;  %v1234_v5 = vcvt.s32.f32 %v1232_v57  ;;  %v1233_v60 = vcvt.s32.f32 %v1231_v58 }
 0xa26   : > { %v1254_v61 = vshrl.u32 %v1252_v59, 16  ;;  %v1253_v43 = vand.u32 65535, %v1252_v59 }
 0xa27   : > { %1215 = vadd.xlane.f32.xlu1 %v1212_v56  ;;  %1213 = vadd.xlane.f32.xlu0 %v1211_v4 }
 0xa28   : > { %v1256_v8 = vcvt.s32.f32 %v1254_v61  ;;  %v1255_v62 = vcvt.s32.f32 %v1253_v43 }
 0xa2b   : > { %1237 = vadd.xlane.f32.xlu1 %v1234_v5  ;;  %1235 = vadd.xlane.f32.xlu0 %v1233_v60 }
 0xa2f   : > { %1259 = vadd.xlane.f32.xlu1 %v1256_v8  ;;  %1257 = vadd.xlane.f32.xlu0 %v1255_v62 }
 0xab4   : > { %v1216_v63 = vpop.xlane.xlu1 %1215  ;;  %v1214_v9 = vpop.xlane.xlu0 %1213 }
 0xab5   : > { %v1218_v44 = vcvt.f32.s32 %v1216_v63  ;;  %v1217_v11 = vcvt.f32.s32 %v1214_v9 }
 0xab7   : > { %v1219_v10 = vshll.u32 %v1218_v44, 16 }
 0xab8   : > { %v1238_v12 = vpop.xlane.xlu1 %1237  ;;  %v1236_v22 = vpop.xlane.xlu0 %1235 }
 0xab9   : > { %v1220_v13 = vadd.s32 %v1219_v10, %v1217_v11  ;;  %v1240_v14 = vcvt.f32.s32 %v1238_v12  ;;  %v1239_v17 = vcvt.f32.s32 %v1236_v22 }
 0xabb   : > { %v1221_v15 = vrot.slane %v1220_v13, 4  ;;  %v1241_v16 = vshll.u32 %v1240_v14, 16 }
 0xabc   : > { %v1260_v18 = vpop.xlane.xlu1 %1259  ;;  %v1258_v19 = vpop.xlane.xlu0 %1257 }
 0xabd   : > { %v1222_v20 = vadd.s32 %v1221_v15, %v1220_v13  ;;  %v1242_v21 = vadd.s32 %v1241_v16, %v1239_v17  ;;  %v1262_v23 = vcvt.f32.s32 %v1260_v18  ;;  %v1261_v26 = vcvt.f32.s32 %v1258_v19 }
 0xabf   : > { %v1243_v24 = vrot.slane %v1242_v21, 4  ;;  %v1263_v25 = vshll.u32 %v1262_v23, 16  ;;  %v1223_v27 = vrot.slane %v1222_v20, 2 }
 0xac1   : > { %v1244_v28 = vadd.s32 %v1243_v24, %v1242_v21  ;;  %v1264_v1 = vadd.s32 %v1263_v25, %v1261_v26  ;;  %v1224_v0 = vadd.s32 %v1223_v27, %v1222_v20 }
 0xac3   : > { %v1265_v2 = vrot.slane %v1264_v1, 4  ;;  %v1225_v29 = vrot.slane %v1224_v0, 1  ;;  %v1245_v30 = vrot.slane %v1244_v28, 2 }
 0xac5   : > { %v1266_v31 = vadd.s32 %v1265_v2, %v1264_v1  ;;  %v1226_v32 = vadd.s32 %v1225_v29, %v1224_v0  ;;  %v1246_v33 = vadd.s32 %v1245_v30, %v1244_v28 }
 0xac7   : > { %1809 = vpush %v1226_v32  ;;  %v1247_v34 = vrot.slane %v1246_v33, 1  ;;  %v1267_v35 = vrot.slane %v1266_v31, 2 }
 0xac9   : > { %v1248_v36 = vadd.s32 %v1247_v34, %v1246_v33  ;;  %v1268_v37 = vadd.s32 %v1267_v35, %v1266_v31 }
 0xacb   : > { %1811 = vpush %v1248_v36  ;;  %v1269_v38 = vrot.slane %v1268_v37, 1 }
 0xacd   : > { %v1270_v39 = vadd.s32 %v1269_v38, %v1268_v37 }
 0xacf   : > { %1813 = vpush %v1270_v39 }
 0xaf8   : > { %s1810_s18 = spop %1809 }
 0xaf9   : > { %p1274_p7 = scmp.ge.s32.totalorder %s1810_s18, %s2056_s9 }
 0xafb   : > { %s2559_s13 = smov (!%p1274_p7, %s1203_s13), %s2557_s5 }
 0xafc   : > { %s1812_s19 = spop %1811 }
 0xafd   : > { %p1273_p8 = scmp.ge.s32.totalorder %s1812_s19, %s2056_s9 }
 0xaff   : > { %s2561_s14 = smov (!%p1273_p8, %s1204_s14), %s2559_s13  ;;  %p1616_p8 = scmp.gt.s32.totalorder %s2056_s9, 0 }
 0xb00   : > { %s1814_s20 = spop %1813 }
 0xb01   : > { %p1272_p9 = scmp.ge.s32.totalorder %s1814_s20, %s2056_s9 }
 0xb03   : > { %s2563_s17 = smov (!%p1272_p9, %s1205_s17), %s2561_s14 }
 0xb04   : > { %s1278_s21 = sor.u32 64, %s2563_s17  ;;  %s1279_s22 = sor.u32 128, %s2563_s17 }
 0xb05   : > { %v1281_v40 = vstv %s1278_s21  ;;  %v1303_v41 = vstv %s1279_s22  ;;  %s1280_s23 = sor.u32 192, %s2563_s17 }
 0xb06   : > { %vm1282_vm2 = vcmp.ge.s32.totalorder %v2046_v7, %v1281_v40  ;;  %vm1304_vm3 = vcmp.ge.s32.totalorder %v2046_v7, %v1303_v41  ;;  %v1325_v45 = vstv %s1280_s23 }
 0xb07   : > { %v1283_v46 = vsel %vm1282_vm2, 1, %v1882_v6  ;;  %v1305_v47 = vsel %vm1304_vm3, 1, %v1882_v6  ;;  %vm1326_vm4 = vcmp.ge.s32.totalorder %v2046_v7, %v1325_v45 }
 0xb08   : > { %v1285_v48 = vshrl.u32 %v1283_v46, 16  ;;  %v1284_v49 = vand.u32 65535, %v1283_v46  ;;  %v1307_v52 = vshrl.u32 %v1305_v47, 16  ;;  %v1306_v53 = vand.u32 65535, %v1305_v47 }
 0xb09   : > { %v1327_v3 = vsel %vm1326_vm4, 1, %v1882_v6 }
 0xb0a   : > { %v1287_v50 = vcvt.s32.f32 %v1285_v48  ;;  %v1286_v51 = vcvt.s32.f32 %v1284_v49  ;;  %v1309_v54 = vcvt.s32.f32 %v1307_v52  ;;  %v1308_v55 = vcvt.s32.f32 %v1306_v53 }
 0xb0b   : > { %v1329_v56 = vshrl.u32 %v1327_v3, 16  ;;  %v1328_v4 = vand.u32 65535, %v1327_v3 }
 0xb0c   : > { %1290 = vadd.xlane.f32.xlu1 %v1287_v50  ;;  %1288 = vadd.xlane.f32.xlu0 %v1286_v51 }
 0xb0d   : > { %v1331_v57 = vcvt.s32.f32 %v1329_v56  ;;  %v1330_v58 = vcvt.s32.f32 %v1328_v4 }
 0xb10   : > { %1312 = vadd.xlane.f32.xlu1 %v1309_v54  ;;  %1310 = vadd.xlane.f32.xlu0 %v1308_v55 }
 0xb14   : > { %1334 = vadd.xlane.f32.xlu1 %v1331_v57  ;;  %1332 = vadd.xlane.f32.xlu0 %v1330_v58 }
 0xb99   : > { %v1291_v59 = vpop.xlane.xlu1 %1290  ;;  %v1289_v5 = vpop.xlane.xlu0 %1288 }
 0xb9a   : > { %v1293_v60 = vcvt.f32.s32 %v1291_v59  ;;  %v1292_v43 = vcvt.f32.s32 %v1289_v5 }
 0xb9c   : > { %v1294_v61 = vshll.u32 %v1293_v60, 16 }
 0xb9d   : > { %v1313_v8 = vpop.xlane.xlu1 %1312  ;;  %v1311_v62 = vpop.xlane.xlu0 %1310 }
 0xb9e   : > { %v1295_v63 = vadd.s32 %v1294_v61, %v1292_v43  ;;  %v1315_v9 = vcvt.f32.s32 %v1313_v8  ;;  %v1314_v11 = vcvt.f32.s32 %v1311_v62 }
 0xba0   : > { %v1296_v44 = vrot.slane %v1295_v63, 4  ;;  %v1316_v10 = vshll.u32 %v1315_v9, 16 }
 0xba1   : > { %v1335_v12 = vpop.xlane.xlu1 %1334  ;;  %v1333_v22 = vpop.xlane.xlu0 %1332 }
 0xba2   : > { %v1297_v13 = vadd.s32 %v1296_v44, %v1295_v63  ;;  %v1317_v14 = vadd.s32 %v1316_v10, %v1314_v11  ;;  %v1337_v15 = vcvt.f32.s32 %v1335_v12  ;;  %v1336_v18 = vcvt.f32.s32 %v1333_v22 }
 0xba4   : > { %v1318_v16 = vrot.slane %v1317_v14, 4  ;;  %v1338_v17 = vshll.u32 %v1337_v15, 16  ;;  %v1298_v19 = vrot.slane %v1297_v13, 2 }
 0xba6   : > { %v1319_v20 = vadd.s32 %v1318_v16, %v1317_v14  ;;  %v1339_v21 = vadd.s32 %v1338_v17, %v1336_v18  ;;  %v1299_v23 = vadd.s32 %v1298_v19, %v1297_v13 }
 0xba8   : > { %v1340_v24 = vrot.slane %v1339_v21, 4  ;;  %v1300_v25 = vrot.slane %v1299_v23, 1  ;;  %v1320_v26 = vrot.slane %v1319_v20, 2 }
 0xbaa   : > { %v1341_v27 = vadd.s32 %v1340_v24, %v1339_v21  ;;  %v1301_v28 = vadd.s32 %v1300_v25, %v1299_v23  ;;  %v1321_v1 = vadd.s32 %v1320_v26, %v1319_v20 }
 0xbac   : > { %1815 = vpush %v1301_v28  ;;  %v1322_v0 = vrot.slane %v1321_v1, 1  ;;  %v1342_v2 = vrot.slane %v1341_v27, 2 }
 0xbae   : > { %v1323_v29 = vadd.s32 %v1322_v0, %v1321_v1  ;;  %v1343_v30 = vadd.s32 %v1342_v2, %v1341_v27 }
 0xbb0   : > { %1817 = vpush %v1323_v29  ;;  %v1344_v31 = vrot.slane %v1343_v30, 1 }
 0xbb2   : > { %v1345_v32 = vadd.s32 %v1344_v31, %v1343_v30 }
 0xbb4   : > { %1819 = vpush %v1345_v32 }
 0xbdd   : > { %s1816_s24 = spop %1815 }
 0xbde   : > { %p1349_p10 = scmp.ge.s32.totalorder %s1816_s24, %s2056_s9 }
 0xbe0   : > { %s2565_s21 = smov (!%p1349_p10, %s1278_s21), %s2563_s17 }
 0xbe1   : > { %s1818_s25 = spop %1817 }
 0xbe2   : > { %p1348_p11 = scmp.ge.s32.totalorder %s1818_s25, %s2056_s9  ;;  %s425_s25 = smul.f32 3.0, %s2058_s10 }
 0xbe4   : > { %s2567_s22 = smov (!%p1348_p11, %s1279_s22), %s2565_s21 }
 0xbe5   : > { %s1820_s26 = spop %1819 }
 0xbe6   : > { %p1347_p12 = scmp.ge.s32.totalorder %s1820_s26, %s2056_s9 }
 0xbe8   : > { %s2569_s23 = smov (!%p1347_p12, %s1280_s23), %s2567_s22 }
 0xbe9   : > { %s1353_s27 = sor.u32 16, %s2569_s23  ;;  %s1354_s28 = sor.u32 32, %s2569_s23 }
 0xbea   : > { %v1356_v33 = vstv %s1353_s27  ;;  %v1378_v34 = vstv %s1354_s28  ;;  %s1355_s29 = sor.u32 48, %s2569_s23 }
 0xbeb   : > { %vm1357_vm5 = vcmp.ge.s32.totalorder %v2046_v7, %v1356_v33  ;;  %vm1379_vm6 = vcmp.ge.s32.totalorder %v2046_v7, %v1378_v34  ;;  %v1400_v35 = vstv %s1355_s29 }
 0xbec   : > { %v1358_v36 = vsel %vm1357_vm5, 1, %v1882_v6  ;;  %v1380_v37 = vsel %vm1379_vm6, 1, %v1882_v6  ;;  %vm1401_vm7 = vcmp.ge.s32.totalorder %v2046_v7, %v1400_v35 }
 0xbed   : > { %v1360_v38 = vshrl.u32 %v1358_v36, 16  ;;  %v1359_v39 = vand.u32 65535, %v1358_v36  ;;  %v1382_v45 = vshrl.u32 %v1380_v37, 16  ;;  %v1381_v46 = vand.u32 65535, %v1380_v37 }
 0xbee   : > { %v1402_v47 = vsel %vm1401_vm7, 1, %v1882_v6 }
 0xbef   : > { %v1362_v40 = vcvt.s32.f32 %v1360_v38  ;;  %v1361_v41 = vcvt.s32.f32 %v1359_v39  ;;  %v1384_v48 = vcvt.s32.f32 %v1382_v45  ;;  %v1383_v49 = vcvt.s32.f32 %v1381_v46 }
 0xbf0   : > { %v1404_v50 = vshrl.u32 %v1402_v47, 16  ;;  %v1403_v51 = vand.u32 65535, %v1402_v47 }
 0xbf1   : > { %1365 = vadd.xlane.f32.xlu1 %v1362_v40  ;;  %1363 = vadd.xlane.f32.xlu0 %v1361_v41 }
 0xbf2   : > { %v1406_v52 = vcvt.s32.f32 %v1404_v50  ;;  %v1405_v53 = vcvt.s32.f32 %v1403_v51 }
 0xbf5   : > { %1387 = vadd.xlane.f32.xlu1 %v1384_v48  ;;  %1385 = vadd.xlane.f32.xlu0 %v1383_v49 }
 0xbf9   : > { %1409 = vadd.xlane.f32.xlu1 %v1406_v52  ;;  %1407 = vadd.xlane.f32.xlu0 %v1405_v53 }
 0xc7e   : > { %v1366_v3 = vpop.xlane.xlu1 %1365  ;;  %v1364_v54 = vpop.xlane.xlu0 %1363 }
 0xc7f   : > { %v1368_v55 = vcvt.f32.s32 %v1366_v3  ;;  %v1367_v4 = vcvt.f32.s32 %v1364_v54 }
 0xc81   : > { %v1369_v56 = vshll.u32 %v1368_v55, 16 }
 0xc82   : > { %v1388_v57 = vpop.xlane.xlu1 %1387  ;;  %v1386_v58 = vpop.xlane.xlu0 %1385 }
 0xc83   : > { %v1370_v59 = vadd.s32 %v1369_v56, %v1367_v4  ;;  %v1390_v5 = vcvt.f32.s32 %v1388_v57  ;;  %v1389_v43 = vcvt.f32.s32 %v1386_v58 }
 0xc85   : > { %v1371_v60 = vrot.slane %v1370_v59, 4  ;;  %v1391_v61 = vshll.u32 %v1390_v5, 16 }
 0xc86   : > { %v1410_v8 = vpop.xlane.xlu1 %1409  ;;  %v1408_v62 = vpop.xlane.xlu0 %1407 }
 0xc87   : > { %v1372_v63 = vadd.s32 %v1371_v60, %v1370_v59  ;;  %v1392_v9 = vadd.s32 %v1391_v61, %v1389_v43  ;;  %v1412_v44 = vcvt.f32.s32 %v1410_v8  ;;  %v1411_v12 = vcvt.f32.s32 %v1408_v62 }
 0xc89   : > { %v1393_v10 = vrot.slane %v1392_v9, 4  ;;  %v1413_v11 = vshll.u32 %v1412_v44, 16  ;;  %v1373_v22 = vrot.slane %v1372_v63, 2 }
 0xc8b   : > { %v1394_v13 = vadd.s32 %v1393_v10, %v1392_v9  ;;  %v1414_v14 = vadd.s32 %v1413_v11, %v1411_v12  ;;  %v1374_v15 = vadd.s32 %v1373_v22, %v1372_v63 }
 0xc8d   : > { %v1415_v16 = vrot.slane %v1414_v14, 4  ;;  %v1375_v17 = vrot.slane %v1374_v15, 1  ;;  %v1395_v18 = vrot.slane %v1394_v13, 2 }
 0xc8f   : > { %v1416_v19 = vadd.s32 %v1415_v16, %v1414_v14  ;;  %v1376_v20 = vadd.s32 %v1375_v17, %v1374_v15  ;;  %v1396_v21 = vadd.s32 %v1395_v18, %v1394_v13 }
 0xc91   : > { %1821 = vpush %v1376_v20  ;;  %v1397_v23 = vrot.slane %v1396_v21, 1  ;;  %v1417_v24 = vrot.slane %v1416_v19, 2 }
 0xc93   : > { %v1398_v25 = vadd.s32 %v1397_v23, %v1396_v21  ;;  %v1418_v26 = vadd.s32 %v1417_v24, %v1416_v19 }
 0xc95   : > { %1823 = vpush %v1398_v25  ;;  %v1419_v27 = vrot.slane %v1418_v26, 1 }
 0xc97   : > { %v1420_v28 = vadd.s32 %v1419_v27, %v1418_v26 }
 0xc99   : > { %1825 = vpush %v1420_v28 }
 0xcc2   : > { %s1822_s30 = spop %1821 }
 0xcc3   : > { %p1424_p13 = scmp.ge.s32.totalorder %s1822_s30, %s2056_s9  ;;  %s1884_s30 = smov 0.0  }
 0xcc5   : > { %s2571_s27 = smov (!%p1424_p13, %s1353_s27), %s2569_s23 }
 0xcc6   : > { %s1824_s5 = spop %1823 }
 0xcc7   : > { %p1423_p0 = scmp.ge.s32.totalorder %s1824_s5, %s2056_s9 }
 0xcc9   : > { %s2573_s28 = smov (!%p1423_p0, %s1354_s28), %s2571_s27 }
 0xcca   : > { %s1826_s8 = spop %1825 }
 0xccb   : > { %p1422_p1 = scmp.ge.s32.totalorder %s1826_s8, %s2056_s9 }
 0xccd   : > { %s2575_s29 = smov (!%p1422_p1, %s1355_s29), %s2573_s28 }
 0xcce   : > { %s1428_s11 = sor.u32 4, %s2575_s29  ;;  %s1429_s12 = sor.u32 8, %s2575_s29 }
 0xccf   : > { %v1431_v1 = vstv %s1428_s11  ;;  %v1453_v0 = vstv %s1429_s12  ;;  %s1430_s13 = sor.u32 12, %s2575_s29 }
 0xcd0   : > { %vm1432_vm8 = vcmp.ge.s32.totalorder %v2046_v7, %v1431_v1  ;;  %vm1454_vm9 = vcmp.ge.s32.totalorder %v2046_v7, %v1453_v0  ;;  %v1475_v2 = vstv %s1430_s13 }
 0xcd1   : > { %v1433_v29 = vsel %vm1432_vm8, 1, %v1882_v6  ;;  %v1455_v30 = vsel %vm1454_vm9, 1, %v1882_v6  ;;  %vm1476_vm10 = vcmp.ge.s32.totalorder %v2046_v7, %v1475_v2 }
 0xcd2   : > { %v1435_v31 = vshrl.u32 %v1433_v29, 16  ;;  %v1434_v32 = vand.u32 65535, %v1433_v29  ;;  %v1457_v35 = vshrl.u32 %v1455_v30, 16  ;;  %v1456_v36 = vand.u32 65535, %v1455_v30 }
 0xcd3   : > { %v1477_v37 = vsel %vm1476_vm10, 1, %v1882_v6 }
 0xcd4   : > { %v1437_v33 = vcvt.s32.f32 %v1435_v31  ;;  %v1436_v34 = vcvt.s32.f32 %v1434_v32  ;;  %v1459_v38 = vcvt.s32.f32 %v1457_v35  ;;  %v1458_v39 = vcvt.s32.f32 %v1456_v36 }
 0xcd5   : > { %v1479_v40 = vshrl.u32 %v1477_v37, 16  ;;  %v1478_v41 = vand.u32 65535, %v1477_v37 }
 0xcd6   : > { %1440 = vadd.xlane.f32.xlu1 %v1437_v33  ;;  %1438 = vadd.xlane.f32.xlu0 %v1436_v34 }
 0xcd7   : > { %v1481_v45 = vcvt.s32.f32 %v1479_v40  ;;  %v1480_v46 = vcvt.s32.f32 %v1478_v41 }
 0xcda   : > { %1462 = vadd.xlane.f32.xlu1 %v1459_v38  ;;  %1460 = vadd.xlane.f32.xlu0 %v1458_v39 }
 0xcde   : > { %1484 = vadd.xlane.f32.xlu1 %v1481_v45  ;;  %1482 = vadd.xlane.f32.xlu0 %v1480_v46 }
 0xd63   : > { %v1441_v47 = vpop.xlane.xlu1 %1440  ;;  %v1439_v48 = vpop.xlane.xlu0 %1438 }
 0xd64   : > { %v1443_v49 = vcvt.f32.s32 %v1441_v47  ;;  %v1442_v51 = vcvt.f32.s32 %v1439_v48 }
 0xd66   : > { %v1444_v50 = vshll.u32 %v1443_v49, 16 }
 0xd67   : > { %v1463_v52 = vpop.xlane.xlu1 %1462  ;;  %v1461_v53 = vpop.xlane.xlu0 %1460 }
 0xd68   : > { %v1445_v3 = vadd.s32 %v1444_v50, %v1442_v51  ;;  %v1465_v54 = vcvt.f32.s32 %v1463_v52  ;;  %v1464_v4 = vcvt.f32.s32 %v1461_v53 }
 0xd6a   : > { %v1446_v55 = vrot.slane %v1445_v3, 4  ;;  %v1466_v56 = vshll.u32 %v1465_v54, 16 }
 0xd6b   : > { %v1485_v57 = vpop.xlane.xlu1 %1484  ;;  %v1483_v58 = vpop.xlane.xlu0 %1482 }
 0xd6c   : > { %v1447_v59 = vadd.s32 %v1446_v55, %v1445_v3  ;;  %v1467_v5 = vadd.s32 %v1466_v56, %v1464_v4  ;;  %v1487_v60 = vcvt.f32.s32 %v1485_v57  ;;  %v1486_v8 = vcvt.f32.s32 %v1483_v58 }
 0xd6e   : > { %v1468_v61 = vrot.slane %v1467_v5, 4  ;;  %v1488_v43 = vshll.u32 %v1487_v60, 16  ;;  %v1448_v62 = vrot.slane %v1447_v59, 2 }
 0xd70   : > { %v1469_v63 = vadd.s32 %v1468_v61, %v1467_v5  ;;  %v1489_v9 = vadd.s32 %v1488_v43, %v1486_v8  ;;  %v1449_v44 = vadd.s32 %v1448_v62, %v1447_v59 }
 0xd72   : > { %v1490_v10 = vrot.slane %v1489_v9, 4  ;;  %v1450_v11 = vrot.slane %v1449_v44, 1  ;;  %v1470_v12 = vrot.slane %v1469_v63, 2 }
 0xd74   : > { %v1491_v22 = vadd.s32 %v1490_v10, %v1489_v9  ;;  %v1451_v13 = vadd.s32 %v1450_v11, %v1449_v44  ;;  %v1471_v14 = vadd.s32 %v1470_v12, %v1469_v63 }
 0xd76   : > { %1827 = vpush %v1451_v13  ;;  %v1472_v15 = vrot.slane %v1471_v14, 1  ;;  %v1492_v16 = vrot.slane %v1491_v22, 2 }
 0xd78   : > { %v1473_v17 = vadd.s32 %v1472_v15, %v1471_v14  ;;  %v1493_v18 = vadd.s32 %v1492_v16, %v1491_v22 }
 0xd7a   : > { %1829 = vpush %v1473_v17  ;;  %v1494_v19 = vrot.slane %v1493_v18, 1 }
 0xd7c   : > { %v1495_v20 = vadd.s32 %v1494_v19, %v1493_v18 }
 0xd7e   : > { %1831 = vpush %v1495_v20 }
 0xda7   : > { %s1828_s14 = spop %1827 }
 0xda8   : > { %p1499_p2 = scmp.ge.s32.totalorder %s1828_s14, %s2056_s9 }
 0xdaa   : > { %s2577_s11 = smov (!%p1499_p2, %s1428_s11), %s2575_s29 }
 0xdab   : > { %s1830_s17 = spop %1829 }
 0xdac   : > { %p1498_p3 = scmp.ge.s32.totalorder %s1830_s17, %s2056_s9  ;;  %s250_s17 = scalar_lea.vmem %s2487_s4, %s2497_s16 }
 0xdae   : > { %s2579_s12 = smov (!%p1498_p3, %s1429_s12), %s2577_s11 }
 0xdaf   : > { %s1832_s18 = spop %1831 }
 0xdb0   : > { %p1497_p4 = scmp.ge.s32.totalorder %s1832_s18, %s2056_s9 }
 0xdb2   : > { %s2581_s13 = smov (!%p1497_p4, %s1430_s13), %s2579_s12 }
 0xdb3   : > { %s1503_s19 = sor.u32 1, %s2581_s13  ;;  %s1504_s20 = sor.u32 2, %s2581_s13 }
 0xdb4   : > { %v1506_v21 = vstv %s1503_s19  ;;  %v1528_v23 = vstv %s1504_s20  ;;  %s1505_s21 = sor.u32 3, %s2581_s13 }
 0xdb5   : > { %vm1507_vm11 = vcmp.ge.s32.totalorder %v2046_v7, %v1506_v21  ;;  %vm1529_vm12 = vcmp.ge.s32.totalorder %v2046_v7, %v1528_v23  ;;  %v1550_v24 = vstv %s1505_s21 }
 0xdb6   : > { %v1508_v25 = vsel %vm1507_vm11, 1, %v1882_v6  ;;  %v1530_v26 = vsel %vm1529_vm12, 1, %v1882_v6  ;;  %vm1551_vm13 = vcmp.ge.s32.totalorder %v2046_v7, %v1550_v24 }
 0xdb7   : > { %v1510_v27 = vshrl.u32 %v1508_v25, 16  ;;  %v1509_v28 = vand.u32 65535, %v1508_v25  ;;  %v1532_v2 = vshrl.u32 %v1530_v26, 16  ;;  %v1531_v29 = vand.u32 65535, %v1530_v26 }
 0xdb8   : > { %v1552_v30 = vsel %vm1551_vm13, 1, %v1882_v6 }
 0xdb9   : > { %v1512_v1 = vcvt.s32.f32 %v1510_v27  ;;  %v1511_v0 = vcvt.s32.f32 %v1509_v28  ;;  %v1534_v31 = vcvt.s32.f32 %v1532_v2  ;;  %v1533_v32 = vcvt.s32.f32 %v1531_v29 }
 0xdba   : > { %v1554_v33 = vshrl.u32 %v1552_v30, 16  ;;  %v1553_v34 = vand.u32 65535, %v1552_v30 }
 0xdbb   : > { %1515 = vadd.xlane.f32.xlu1 %v1512_v1  ;;  %1513 = vadd.xlane.f32.xlu0 %v1511_v0 }
 0xdbc   : > { %v1556_v35 = vcvt.s32.f32 %v1554_v33  ;;  %v1555_v36 = vcvt.s32.f32 %v1553_v34  ;;  %v1619_v34 = vlaneseq }
 0xdbf   : > { %1537 = vadd.xlane.f32.xlu1 %v1534_v31  ;;  %1535 = vadd.xlane.f32.xlu0 %v1533_v32 }
 0xdc3   : > { %1559 = vadd.xlane.f32.xlu1 %v1556_v35  ;;  %1557 = vadd.xlane.f32.xlu0 %v1555_v36  ;;  %v1620_v35 = vand.u32 127, %v1619_v34  ;;  %v1622_v36 = vstv %s2052_s6 }
 0xdc5   : > { %vm1621_vm1 = vcmp.eq.s32.totalorder %v1620_v35, 0  ;;  %vm1624_vm0 = vcmp.eq.s32.totalorder %v1620_v35, 1  ;;  %vm1628_vm2 = vcmp.eq.s32.totalorder %v1620_v35, 2 }
 0xe48   : > { %v1516_v37 = vpop.xlane.xlu1 %1515  ;;  %v1514_v38 = vpop.xlane.xlu0 %1513 }
 0xe49   : > { %v1518_v39 = vcvt.f32.s32 %v1516_v37  ;;  %v1517_v41 = vcvt.f32.s32 %v1514_v38  ;;  %v1629_v37 = vstv %s2058_s10 }
 0xe4b   : > { %v1519_v40 = vshll.u32 %v1518_v39, 16  ;;  %v1623_v39 = vsel %vm1621_vm1, %v1622_v36, 0.0 }
 0xe4c   : > { %v1538_v45 = vpop.xlane.xlu1 %1537  ;;  %v1536_v46 = vpop.xlane.xlu0 %1535 }
 0xe4d   : > { %v1520_v6 = vadd.s32 %v1519_v40, %v1517_v41  ;;  %v1540_v47 = vcvt.f32.s32 %v1538_v45  ;;  %v1539_v50 = vcvt.f32.s32 %v1536_v46  ;;  %v1630_v45 = vsel %vm1628_vm2, %v1629_v37, 0.0 }
 0xe4f   : > { %v1521_v48 = vrot.slane %v1520_v6, 4  ;;  %v1541_v49 = vshll.u32 %v1540_v47, 16 }
 0xe50   : > { %v1560_v51 = vpop.xlane.xlu1 %1559  ;;  %v1558_v52 = vpop.xlane.xlu0 %1557 }
 0xe51   : > { %v1522_v53 = vadd.s32 %v1521_v48, %v1520_v6  ;;  %v1542_v3 = vadd.s32 %v1541_v49, %v1539_v50  ;;  %v1562_v54 = vcvt.f32.s32 %v1560_v51  ;;  %v1561_v4 = vcvt.f32.s32 %v1558_v52 }
 0xe53   : > { %v1543_v55 = vrot.slane %v1542_v3, 4  ;;  %v1563_v56 = vshll.u32 %v1562_v54, 16  ;;  %v1523_v57 = vrot.slane %v1522_v53, 2 }
 0xe55   : > { %v1544_v58 = vadd.s32 %v1543_v55, %v1542_v3  ;;  %v1564_v59 = vadd.s32 %v1563_v56, %v1561_v4  ;;  %v1524_v5 = vadd.s32 %v1523_v57, %v1522_v53 }
 0xe57   : > { %v1565_v60 = vrot.slane %v1564_v59, 4  ;;  %v1525_v61 = vrot.slane %v1524_v5, 1  ;;  %v1545_v43 = vrot.slane %v1544_v58, 2 }
 0xe59   : > { %v1566_v8 = vadd.s32 %v1565_v60, %v1564_v59  ;;  %v1526_v62 = vadd.s32 %v1525_v61, %v1524_v5  ;;  %v1546_v63 = vadd.s32 %v1545_v43, %v1544_v58 }
 0xe5b   : > { %1833 = vpush %v1526_v62  ;;  %v1547_v9 = vrot.slane %v1546_v63, 1  ;;  %v1567_v44 = vrot.slane %v1566_v8, 2 }
 0xe5d   : > { %v1548_v10 = vadd.s32 %v1547_v9, %v1546_v63  ;;  %v1568_v11 = vadd.s32 %v1567_v44, %v1566_v8 }
 0xe5f   : > { %1835 = vpush %v1548_v10  ;;  %v1569_v12 = vrot.slane %v1568_v11, 1 }
 0xe61   : > { %v1570_v22 = vadd.s32 %v1569_v12, %v1568_v11 }
 0xe63   : > { %1837 = vpush %v1570_v22 }
 0xe8c   : > { %s1834_s22 = spop %1833 }
 0xe8d   : > { %p1574_p5 = scmp.ge.s32.totalorder %s1834_s22, %s2056_s9 }
 0xe8f   : > { %s2583_s19 = smov (!%p1574_p5, %s1503_s19), %s2581_s13 }
 0xe90   : > { %s1836_s23 = spop %1835 }
 0xe91   : > { %p1573_p6 = scmp.ge.s32.totalorder %s1836_s23, %s2056_s9 }
 0xe93   : > { %s2585_s20 = smov (!%p1573_p6, %s1504_s20), %s2583_s19 }
 0xe94   : > { %s1838_s24 = spop %1837 }
 0xe95   : > { %p1572_p7 = scmp.ge.s32.totalorder %s1838_s24, %s2056_s9 }
 0xe97   : > { %s2587_s21 = smov (!%p1572_p7, %s1505_s21), %s2585_s20 }
 0xe98   : > { %v1578_v13 = vstv %s2587_s21 }
 0xe99   : > { %vm1579_vm14 = vcmp.gt.s32.totalorder %v2046_v7, %v1578_v13  ;;  %vm1601_vm15 = vcmp.eq.s32.totalorder %v2046_v7, %v1578_v13 }
 0xe9a   : > { %v1733_v14 = vsel %vm1579_vm14, 1.0, %v1883_v42  ;;  %v1580_v15 = vsel %vm1579_vm14, %v2046_v7, 0.0  ;;  %v1602_v16 = vsel %vm1601_vm15, %v2046_v7, 0.0 }
 0xe9b   : > { %1592 = vadd.xlane.f32.xlu0 %v1733_v14  ;;  %1581 = vadd.xlane.f32.xlu1 %v1580_v15 }
 0xe9f   : > { %1603 = vmax.xlane.f32.xlu1 %v1602_v16 }
 0xf28   : > { %v1593_v17 = vpop.xlane.xlu0 %1592  ;;  %v1582_v18 = vpop.xlane.xlu1 %1581 }
 0xf29   : > { %v1594_v19 = vrot.slane %v1593_v17, 4  ;;  %v1583_v20 = vrot.slane %v1582_v18, 4 }
 0xf2b   : > { %v1595_v21 = vadd.f32 %v1594_v19, %v1593_v17  ;;  %v1584_v23 = vadd.f32 %v1583_v20, %v1582_v18 }
 0xf2c   : > { %v1604_v24 = vpop.xlane.xlu1 %1603 }
 0xf2d   : > { %v1596_v25 = vrot.slane %v1595_v21, 2  ;;  %v1585_v26 = vrot.slane %v1584_v23, 2  ;;  %v1605_v42 = vrot.slane %v1604_v24, 4 }
 0xf2f   : > { %v1597_v27 = vadd.f32 %v1596_v25, %v1595_v21  ;;  %v1606_v28 = vmax.f32 %v1604_v24, %v1605_v42  ;;  %v1586_v1 = vadd.f32 %v1585_v26, %v1584_v23 }
 0xf31   : > { %v1607_v0 = vrot.slane %v1606_v28, 2  ;;  %v1587_v2 = vrot.slane %v1586_v1, 1  ;;  %v1598_v29 = vrot.slane %v1597_v27, 1 }
 0xf33   : > { %v1608_v30 = vmax.f32 %v1606_v28, %v1607_v0  ;;  %v1588_v7 = vadd.f32 %v1587_v2, %v1586_v1  ;;  %v1599_v31 = vadd.f32 %v1598_v29, %v1597_v27 }
 0xf35   : > { %1839 = vpush %v1588_v7  ;;  %v1609_v32 = vrot.slane %v1608_v30, 1 }
 0xf36   : > { %1841 = vpush %v1599_v31 }
 0xf37   : > { %v1610_v33 = vmax.f32 %v1608_v30, %v1609_v32 }
 0xf39   : > { %1843 = vpush %v1610_v33 }
 0xf66   : > { %s1840_s26 = spop %1839 }
 0xf67   : > { %s1842_s27 = spop %1841 }
 0xf68   : > { %s1612_s28 = ssub.f32 %s425_s25, %s1842_s27 }
 0xf6a   : > { %s1844_s29 = spop %1843  ;;  %s1613_s5 = smax.f32 %s1884_s30, %s1612_s28 }
 0xf6b   : > { %s1614_s8 = smul.f32 %s1844_s29, %s1613_s5 }
 0xf6d   : > { %s1615_s11 = sadd.f32 %s1840_s26, %s1614_s8 }
 0xf6f   : > { %s2589_s11 = smov (!%p1616_p8, %s1615_s11), 0.0 }
 0xf70   : > { %s1618_s12 = sadd.f32 %s2054_s7, %s2589_s11 }
 0xf72   : > { %v1625_v38 = vstv %s1618_s12 }
 0xf73   : > { %v1626_v40 = vsel %vm1624_vm0, %v1625_v38, 0.0 }
 0xf74   : > { %v1627_v41 = vadd.f32 %v1626_v40, %v1623_v39 }
 0xf76   : > { %v1631_v46 = vadd.f32 %v1630_v45, %v1627_v41 }
 0xf78   : > { %1632 = vst [vmem:[%s250_s17] sm:$0x1] %v1631_v46 }
 0xf79 PF: > { %s14_s15 = sadd.s32 1, %s1880_s15  }
 0xf7a   : > { %p11_p9 = scmp.ge.s32.totalorder %s14_s15, 4  }
 0xf7c   :  { %13 = sbr.rel (!%p11_p9) target bundleno = 1 (0x1), region = 75 }

</bundles_post_ra>
